<compile_context>
chip_gen: v5e
topology: v5e:2x2
jax: 0.10.0
libtpu: 0.0.40
codegen_flags: <defaults>
</compile_context>

<pallas_src>
import functools

import jax
import jax.numpy as jnp
import numpy as np
from jax.experimental import pallas as pl
from jax.experimental.pallas import tpu as pltpu


def _round_up(n, m):
    return ((n + m - 1) // m) * m


# ----------------------------------------------------------------------------
# Fused kernel: diagonal layer + masked-linear chain + per-layer sigmoid heads.
# All (small, padded) layer weights live in VMEM for the whole problem; the
# grid tiles only the batch dimension.
# ----------------------------------------------------------------------------
def _bnet_kernel(k, d0p, dims, dims_p, fold, rows, x_ref, p_ref, *refs):
    n_hidden = len(dims) - 1
    out_ref = refs[-1]
    w_refs = refs[:-1]                      # n_hidden bf16 (d_in_p, d_out_p) weights

    P = p_ref[...]                          # (R, max_dp) f32 packed small params
    x = x_ref[...].astype(jnp.float32)      # (tb, k*d0p); bf16 in HBM, f32 math

    # Diagonal layer: out[:, g] = sum_m x[:, m*d0p + g] * dw[m, g] + db[g],
    # a k-way VPU multiply-add over lane-dense gene chunks (no group-sum matmul).
    r = rows["dw"]
    s = x[:, 0:d0p] * P[r:r + 1, 0:d0p]
    for m in range(1, k):
        s = s + x[:, m * d0p:(m + 1) * d0p] * P[r + m:r + m + 1, 0:d0p]
    h = jnp.tanh(s + P[rows["db"]:rows["db"] + 1, 0:d0p])

    # TODO(synk): dropout1/dropout2 are identity at inference; gcn branch not exercised.

    head_raw = []                           # (tb, 1) pre-sigmoid head values
    for j in range(n_hidden):
        w = w_refs[j][...]
        z = jnp.dot(h.astype(jnp.bfloat16), w, preferred_element_type=jnp.float32)
        if fold[j]:
            # Head j was packed as column dims[j+1] of W_j (a free padded lane),
            # so its dot product rides the MXU pass for free.
            head_raw.append(z[:, dims[j + 1]:dims[j + 1] + 1])
        else:
            rv = rows["head"][j]
            head_raw.append(
                jnp.sum(h * P[rv:rv + 1, 0:dims_p[j]], axis=1, keepdims=True))
        rb = rows["b"][j]
        h = jnp.tanh(z + P[rb:rb + 1, 0:dims_p[j + 1]])

    # Final head: explicit cross-lane reduce on the last activation.
    rv = rows["head"][n_hidden]
    head_raw.append(
        jnp.sum(h * P[rv:rv + 1, 0:dims_p[n_hidden]], axis=1, keepdims=True))

    # Single lane-dense store of all head outputs into the 128-wide padded block.
    tb, n_pad = out_ref.shape
    lane = jax.lax.broadcasted_iota(jnp.int32, (tb, n_pad), 1)
    o = jnp.zeros((tb, n_pad), jnp.float32)
    for i, col in enumerate(head_raw):
        o = jnp.where(lane == i, col, o)
    out_ref[...] = jax.nn.sigmoid(o + P[rows["hb"]:rows["hb"] + 1, 0:n_pad])


def bnet_forward(x, diag_w, diag_b, hidden_ws, hidden_bs, head_ws, head_bs, *, tb=256):
    """x: (B, in_size) with in_size = n_genes * k. Returns (B, n_hidden + 1)."""
    B, in_size = x.shape
    n_genes = diag_b.shape[1]
    k = in_size // n_genes
    assert k * n_genes == in_size
    n_hidden = len(hidden_ws)
    n_out = n_hidden + 1

    dims = [n_genes] + [w.shape[1] for w in hidden_ws]
    dims_p = [_round_up(d, 128) for d in dims]
    d0p = dims_p[0]
    max_dp = max(dims_p)
    n_pad = _round_up(n_out, 128)

    # Head j (j < n_hidden) folds into W_j's padded columns iff one is free.
    fold = tuple(dims[j + 1] < dims_p[j + 1] for j in range(n_hidden))

    # ---- Pack every tiny (1, d) parameter into one stacked f32 VMEM array. ----
    rows = {}
    row_list = []
    rows["dw"] = 0
    dwp = jnp.pad(diag_w.reshape(n_genes, k).T.astype(jnp.float32),
                  ((0, 0), (0, max_dp - n_genes)))            # (k, max_dp)
    row_list.extend(dwp[m:m + 1] for m in range(k))
    rows["db"] = len(row_list)
    row_list.append(jnp.pad(diag_b.astype(jnp.float32),
                            ((0, 0), (0, max_dp - n_genes))))
    rows["b"] = []
    for i in range(n_hidden):
        rows["b"].append(len(row_list))
        row_list.append(jnp.pad(hidden_bs[i].astype(jnp.float32),
                                ((0, 0), (0, max_dp - dims[i + 1]))))
    rows["head"] = {}
    for j in range(n_out):
        if j < n_hidden and fold[j]:
            continue                        # lives inside W_j instead
        rows["head"][j] = len(row_list)
        row_list.append(jnp.pad(head_ws[j].astype(jnp.float32),
                                ((0, 0), (0, max_dp - dims[j]))))
    rows["hb"] = len(row_list)
    hb_row = jnp.zeros((1, max_dp), jnp.float32)
    hb_row = hb_row.at[:, :n_out].set(
        jnp.concatenate([b.reshape(1, 1) for b in head_bs], axis=1).astype(jnp.float32))
    row_list.append(hb_row)
    R = len(row_list)
    R_pad = _round_up(R, 8)
    if R_pad > R:
        row_list.append(jnp.zeros((R_pad - R, max_dp), jnp.float32))
    P = jnp.concatenate(row_list, axis=0)                      # (R_pad, max_dp)

    # ---- Mask-applied hidden weights: zero-pad, fold heads in, cast bf16. ----
    Ws = []
    for i in range(n_hidden):
        d_in, d_out = dims[i], dims[i + 1]
        w = jnp.pad(hidden_ws[i], ((0, dims_p[i] - d_in), (0, dims_p[i + 1] - d_out)))
        if fold[i]:
            col = jnp.pad(head_ws[i].astype(w.dtype).reshape(d_in, 1),
                          ((0, dims_p[i] - d_in), (0, 0)))
            w = w.at[:, d_out:d_out + 1].set(col)
        Ws.append(w.astype(jnp.bfloat16))

    # ---- Batch tiling: multiple of 8, keep >= 2 grid steps (feeds both v7x TCs). ----
    tb_eff = min(_round_up(tb, 8), _round_up(B, 8))
    if _round_up(B, tb_eff) // tb_eff < 2 and B > 8:
        tb_eff = _round_up((B + 1) // 2, 8)
    B_pad = _round_up(B, tb_eff)

    # x -> [m-major, gene-minor] bf16 layout; under jax.jit the
    # transpose + pad + reshape + cast fuses into one HBM copy.
    xk = x.reshape(B, n_genes, k).transpose(0, 2, 1)           # (B, k, n_genes)
    xk = jnp.pad(xk, ((0, B_pad - B), (0, 0), (0, d0p - n_genes)))
    x_in = xk.reshape(B_pad, k * d0p).astype(jnp.bfloat16)

    def const_spec(shape):
        # Constant-index parameter: fetched once, single-buffered in VMEM.
        return pl.BlockSpec(shape, lambda i: (0, 0), pipeline_mode=pl.Buffered(1))

    in_specs = [pl.BlockSpec((tb_eff, k * d0p), lambda i: (i, 0)),
                const_spec(P.shape)]
    in_specs += [const_spec(w.shape) for w in Ws]
    # TODO(synk): at pathway scale add a K-reduction grid axis (or emit_pipeline
    # inner loop) for the first masked-linear matmul so W1 need not be fully
    # resident in v7x's 64 MiB VMEM.

    kernel = functools.partial(_bnet_kernel, k, d0p, tuple(dims), tuple(dims_p),
                               fold, rows)

    out = pl.pallas_call(
        kernel,
        out_shape=jax.ShapeDtypeStruct((B_pad, n_pad), jnp.float32),
        grid_spec=pltpu.PrefetchScalarGridSpec(
            num_scalar_prefetch=0,
            grid=(B_pad // tb_eff,),
            in_specs=in_specs,
            out_specs=pl.BlockSpec((tb_eff, n_pad), lambda i: (i, 0)),
        ),
        compiler_params=pltpu.CompilerParams(
            dimension_semantics=("parallel",),
            vmem_limit_bytes=48 * 1024 * 1024),
    )(x_in, P, *Ws)
    return out[:B, :n_out]


# ----------------------------------------------------------------------------
# Pure-JAX f32 reference for correctness checking (matches the PyTorch forward).
# ----------------------------------------------------------------------------
def bnet_reference(x, diag_w, diag_b, hidden_ws, hidden_bs, head_ws, head_bs):
    B, in_size = x.shape
    n_genes = diag_b.shape[1]
    k = in_size // n_genes
    h = jnp.tanh(jnp.sum((x * diag_w).reshape(B, n_genes, k), axis=2) + diag_b)
    outs = [jax.nn.sigmoid(h @ head_ws[0].T + head_bs[0])]
    for i in range(len(hidden_ws)):
        h = jnp.tanh(h @ hidden_ws[i] + hidden_bs[i])
        outs.append(jax.nn.sigmoid(h @ head_ws[i + 1].T + head_bs[i + 1]))
    return jnp.concatenate(outs, axis=1)


if __name__ == "__main__":
    # Small synthetic configuration consistent with the module:
    #   in_size = n_genes * k features, n_hidden_layers = 2, use_bias = True,
    #   gcn = False, dense = False (masked hidden layers).
    B = 512               # batch -> 2 parallel grid steps of 256 rows
    n_genes = 256         # maps[0].shape[0]
    k = 2                 # features per gene in the Diagonal layer
    in_size = n_genes * k
    layer_dims = [n_genes, 128, 64]   # maps[i]: layer_dims[i] -> layer_dims[i+1]
    n_hidden = len(layer_dims) - 1

    key = jax.random.PRNGKey(0)
    keys = iter(jax.random.split(key, 64))

    x = jax.random.normal(next(keys), (B, in_size), dtype=jnp.float32)

    # Diagonal layer parameters.
    diag_w = jax.random.normal(next(keys), (1, in_size), dtype=jnp.float32) * 0.1
    diag_b = jax.random.normal(next(keys), (1, n_genes), dtype=jnp.float32) * 0.1

    # CustomizedLinear (masked linear) layers: effective weight = mask * weight.
    hidden_ws, hidden_bs = [], []
    for i in range(n_hidden):
        d_in, d_out = layer_dims[i], layer_dims[i + 1]
        w = jax.random.normal(next(keys), (d_in, d_out), dtype=jnp.float32)
        w = w * (1.0 / np.sqrt(d_in))
        mask = jax.random.bernoulli(next(keys), 0.3, (d_in, d_out)).astype(jnp.float32)
        hidden_ws.append(w * mask)
        hidden_bs.append(
            jax.random.normal(next(keys), (1, d_out), dtype=jnp.float32) * 0.1)

    # Per-layer 1-unit sigmoid heads (nn.Linear(d_i, 1)), stored as row vectors.
    head_ws, head_bs = [], []
    for d in layer_dims:
        head_ws.append(
            jax.random.normal(next(keys), (1, d), dtype=jnp.float32)
            * (1.0 / np.sqrt(d)))
        head_bs.append(
            jax.random.normal(next(keys), (1, 1), dtype=jnp.float32) * 0.1)

    fwd = jax.jit(functools.partial(bnet_forward, tb=256))
    out = fwd(x, diag_w, diag_b, hidden_ws, hidden_bs, head_ws, head_bs)
    out = jax.block_until_ready(out)

    ref = bnet_reference(x, diag_w, diag_b, hidden_ws, hidden_bs,
                         head_ws, head_bs)
    # bf16 x / bf16 MXU inputs (f32 accumulation) -> looser tolerance than pure f32.
    np.testing.assert_allclose(np.asarray(out), np.asarray(ref),
                               rtol=2e-2, atol=2e-2)
    assert out.shape == (B, n_hidden + 1)
    print("KERNEL_OK")
</pallas_src>

<mosaic_0001>
module attributes {stable_mosaic.version = 11 : i64} {
  func.func @_bnet_kernel(%arg0: i32, %arg1: memref<256x512xbf16, #tpu.memory_space<vmem>>, %arg2: memref<8x256xf32, #tpu.memory_space<vmem>>, %arg3: memref<256x128xbf16, #tpu.memory_space<vmem>>, %arg4: memref<128x128xbf16, #tpu.memory_space<vmem>>, %arg5: memref<256x128xf32, #tpu.memory_space<vmem>>) attributes {dimension_semantics = [#tpu.dimension_semantics<parallel>], iteration_bounds = array<i64: 2>, scalar_prefetch = 0 : i64, scratch_operands = 0 : i64, tpu.core_type = #tpu.core_type<tc>, window_params = [{transform_indices = @transform_0, window_bounds = array<i64: 256, 512>}, {pipeline_mode = #tpu.pipeline_mode<synchronous>, transform_indices = @transform_1, window_bounds = array<i64: 8, 256>}, {pipeline_mode = #tpu.pipeline_mode<synchronous>, transform_indices = @transform_2, window_bounds = array<i64: 256, 128>}, {pipeline_mode = #tpu.pipeline_mode<synchronous>, transform_indices = @transform_3, window_bounds = array<i64: 128, 128>}, {transform_indices = @transform_4, window_bounds = array<i64: 256, 128>}]} {
    %c0 = arith.constant 0 : index
    %c0_0 = arith.constant 0 : index
    %0 = vector.load %arg2[%c0, %c0_0] : memref<8x256xf32, #tpu.memory_space<vmem>>, vector<8x256xf32>
    %c0_1 = arith.constant 0 : index
    %c0_2 = arith.constant 0 : index
    %1 = vector.load %arg1[%c0_1, %c0_2] : memref<256x512xbf16, #tpu.memory_space<vmem>>, vector<256x512xbf16>
    %2 = arith.extf %1 : vector<256x512xbf16> to vector<256x512xf32>
    %3 = vector.extract_strided_slice %2 {offsets = [0, 0], sizes = [256, 256], strides = [1, 1]} : vector<256x512xf32> to vector<256x256xf32>
    %4 = vector.extract_strided_slice %0 {offsets = [0, 0], sizes = [1, 256], strides = [1, 1]} : vector<8x256xf32> to vector<1x256xf32>
    %5 = vector.broadcast %4 : vector<1x256xf32> to vector<256x256xf32>
    %6 = arith.mulf %3, %5 : vector<256x256xf32>
    %7 = vector.extract_strided_slice %2 {offsets = [0, 256], sizes = [256, 256], strides = [1, 1]} : vector<256x512xf32> to vector<256x256xf32>
    %8 = vector.extract_strided_slice %0 {offsets = [1, 0], sizes = [1, 256], strides = [1, 1]} : vector<8x256xf32> to vector<1x256xf32>
    %9 = vector.broadcast %8 : vector<1x256xf32> to vector<256x256xf32>
    %10 = arith.mulf %7, %9 : vector<256x256xf32>
    %11 = arith.addf %6, %10 : vector<256x256xf32>
    %12 = vector.extract_strided_slice %0 {offsets = [2, 0], sizes = [1, 256], strides = [1, 1]} : vector<8x256xf32> to vector<1x256xf32>
    %13 = vector.broadcast %12 : vector<1x256xf32> to vector<256x256xf32>
    %14 = arith.addf %11, %13 : vector<256x256xf32>
    %15 = math.tanh %14 : vector<256x256xf32>
    %c0_3 = arith.constant 0 : index
    %c0_4 = arith.constant 0 : index
    %16 = vector.load %arg3[%c0_3, %c0_4] : memref<256x128xbf16, #tpu.memory_space<vmem>>, vector<256x128xbf16>
    %17 = arith.truncf %15 : vector<256x256xf32> to vector<256x256xbf16>
    %cst = arith.constant dense<0.000000e+00> : vector<256x128xf32>
    %18 = tpu.matmul %17, %16, %cst {dimension_numbers = #tpu.dot_dimension_numbers<[1], [0], [0], [1], [0, 0, 1, 1], [], []>} : vector<256x256xbf16>, vector<256x128xbf16>, vector<256x128xf32> -> vector<256x128xf32>
    %19 = vector.extract_strided_slice %0 {offsets = [5, 0], sizes = [1, 256], strides = [1, 1]} : vector<8x256xf32> to vector<1x256xf32>
    %20 = vector.broadcast %19 : vector<1x256xf32> to vector<256x256xf32>
    %21 = arith.mulf %15, %20 : vector<256x256xf32>
    %cst_5 = arith.constant dense<0.000000e+00> : vector<256xf32>
    %22 = vector.multi_reduction <add>, %21, %cst_5 [1] : vector<256x256xf32> to vector<256xf32>
    %23 = vector.shape_cast %22 : vector<256xf32> to vector<256x1xf32>
    %24 = vector.extract_strided_slice %0 {offsets = [3, 0], sizes = [1, 128], strides = [1, 1]} : vector<8x256xf32> to vector<1x128xf32>
    %25 = vector.broadcast %24 : vector<1x128xf32> to vector<256x128xf32>
    %26 = arith.addf %18, %25 : vector<256x128xf32>
    %27 = math.tanh %26 : vector<256x128xf32>
    %c0_6 = arith.constant 0 : index
    %c0_7 = arith.constant 0 : index
    %28 = vector.load %arg4[%c0_6, %c0_7] : memref<128x128xbf16, #tpu.memory_space<vmem>>, vector<128x128xbf16>
    %29 = arith.truncf %27 : vector<256x128xf32> to vector<256x128xbf16>
    %cst_8 = arith.constant dense<0.000000e+00> : vector<256x128xf32>
    %30 = tpu.matmul %29, %28, %cst_8 {dimension_numbers = #tpu.dot_dimension_numbers<[1], [0], [0], [1], [0, 0, 1, 1], [], []>} : vector<256x128xbf16>, vector<128x128xbf16>, vector<256x128xf32> -> vector<256x128xf32>
    %31 = vector.extract_strided_slice %30 {offsets = [0, 64], sizes = [256, 1], strides = [1, 1]} : vector<256x128xf32> to vector<256x1xf32>
    %32 = vector.extract_strided_slice %0 {offsets = [4, 0], sizes = [1, 128], strides = [1, 1]} : vector<8x256xf32> to vector<1x128xf32>
    %33 = vector.broadcast %32 : vector<1x128xf32> to vector<256x128xf32>
    %34 = arith.addf %30, %33 : vector<256x128xf32>
    %35 = math.tanh %34 : vector<256x128xf32>
    %36 = vector.extract_strided_slice %0 {offsets = [6, 0], sizes = [1, 128], strides = [1, 1]} : vector<8x256xf32> to vector<1x128xf32>
    %37 = vector.broadcast %36 : vector<1x128xf32> to vector<256x128xf32>
    %38 = arith.mulf %35, %37 : vector<256x128xf32>
    %cst_9 = arith.constant dense<0.000000e+00> : vector<256xf32>
    %39 = vector.multi_reduction <add>, %38, %cst_9 [1] : vector<256x128xf32> to vector<256xf32>
    %40 = vector.shape_cast %39 : vector<256xf32> to vector<256x1xf32>
    %41 = tpu.iota {dimensions = array<i32: 1>} : vector<256x128xi32>
    %cst_10 = arith.constant 0.000000e+00 : f32
    %42 = vector.broadcast %cst_10 : f32 to vector<256x128xf32>
    %c0_i32 = arith.constant 0 : i32
    %43 = vector.broadcast %c0_i32 : i32 to vector<256x128xi32>
    %44 = arith.cmpi eq, %41, %43 : vector<256x128xi32>
    %45 = vector.shape_cast %23 : vector<256x1xf32> to vector<256x1xf32>
    %46 = vector.broadcast %45 : vector<256x1xf32> to vector<256x128xf32>
    %47 = arith.select %44, %46, %42 : vector<256x128xi1>, vector<256x128xf32>
    %c1_i32 = arith.constant 1 : i32
    %48 = vector.broadcast %c1_i32 : i32 to vector<256x128xi32>
    %49 = arith.cmpi eq, %41, %48 : vector<256x128xi32>
    %50 = vector.shape_cast %31 : vector<256x1xf32> to vector<256x1xf32>
    %51 = vector.broadcast %50 : vector<256x1xf32> to vector<256x128xf32>
    %52 = arith.select %49, %51, %47 : vector<256x128xi1>, vector<256x128xf32>
    %c2_i32 = arith.constant 2 : i32
    %53 = vector.broadcast %c2_i32 : i32 to vector<256x128xi32>
    %54 = arith.cmpi eq, %41, %53 : vector<256x128xi32>
    %55 = vector.shape_cast %40 : vector<256x1xf32> to vector<256x1xf32>
    %56 = vector.broadcast %55 : vector<256x1xf32> to vector<256x128xf32>
    %57 = arith.select %54, %56, %52 : vector<256x128xi1>, vector<256x128xf32>
    %58 = vector.extract_strided_slice %0 {offsets = [7, 0], sizes = [1, 128], strides = [1, 1]} : vector<8x256xf32> to vector<1x128xf32>
    %59 = vector.broadcast %58 : vector<1x128xf32> to vector<256x128xf32>
    %60 = arith.addf %57, %59 : vector<256x128xf32>
    %61 = arith.negf %60 : vector<256x128xf32>
    %62 = math.exp %61 : vector<256x128xf32>
    %cst_11 = arith.constant 1.000000e+00 : f32
    %63 = vector.broadcast %cst_11 : f32 to vector<256x128xf32>
    %64 = arith.addf %63, %62 : vector<256x128xf32>
    %65 = arith.divf %63, %64 : vector<256x128xf32>
    %c0_12 = arith.constant 0 : index
    %c0_13 = arith.constant 0 : index
    %66 = vector.load %arg5[%c0_12, %c0_13] : memref<256x128xf32, #tpu.memory_space<vmem>>, vector<256x128xf32>
    tpu.vector_store %arg5[%c0_12, %c0_13], %65 {strides = array<i32>} : memref<256x128xf32, #tpu.memory_space<vmem>>, vector<256x128xf32>,
    return
  }
  func.func @transform_0(%arg0: i32) -> (i32, i32) {
    %c0_i32 = arith.constant 0 : i32
    %c0_i32_0 = arith.constant 0 : i32
    return %arg0, %c0_i32 : i32, i32
  }
  func.func @transform_1(%arg0: i32) -> (i32, i32) {
    %c0_i32 = arith.constant 0 : i32
    %c0_i32_0 = arith.constant 0 : i32
    %c0_i32_1 = arith.constant 0 : i32
    return %c0_i32, %c0_i32_0 : i32, i32
  }
  func.func @transform_2(%arg0: i32) -> (i32, i32) {
    %c0_i32 = arith.constant 0 : i32
    %c0_i32_0 = arith.constant 0 : i32
    %c0_i32_1 = arith.constant 0 : i32
    return %c0_i32, %c0_i32_0 : i32, i32
  }
  func.func @transform_3(%arg0: i32) -> (i32, i32) {
    %c0_i32 = arith.constant 0 : i32
    %c0_i32_0 = arith.constant 0 : i32
    %c0_i32_1 = arith.constant 0 : i32
    return %c0_i32, %c0_i32_0 : i32, i32
  }
  func.func @transform_4(%arg0: i32) -> (i32, i32) {
    %c0_i32 = arith.constant 0 : i32
    %c0_i32_0 = arith.constant 0 : i32
    return %arg0, %c0_i32 : i32, i32
  }
}

</mosaic_0001>

<bundles_post_ra>
// kernel: bnet_forward.1
= control target key start
LH: loop header
LB: loop body
LE: loop exit
PB: predicated region body
PF: predicated region fallthrough
CT: control target
= control target key end

     0   :  { %s3198_s15 = smov 0   ;;  %s4644_s0 = inlined_call_operand.vmem [shape: bf16[512,512], index: 0, kind: input, shape index: {}]   ;;  %s4645_s1 = inlined_call_operand.vmem [shape: f32[8,256], index: 1, kind: input, shape index: {}]   ;;  %s4646_s2 = inlined_call_operand.vmem [shape: bf16[256,128], index: 2, kind: input, shape index: {}]   ;;  %s4647_s3 = inlined_call_operand.vmem [shape: bf16[128,128], index: 3, kind: input, shape index: {}]   ;;  %s4648_s4 = inlined_call_operand.vmem [shape: f32[512,128], index: 4, kind: output, shape index: {}]  }
   0x1 LB: > { %s2578_s16 = sadd.s32 4294967295, %s3170_s15   ;;  %p2582_p0 = scmp.ge.s32.totalorder %s3170_s15, 1  ;;  %s3170_s15 = sphi %s3198_s15, %s14_s15  }
   0x2   : > { %p164_p1 = scmp.lt.s32.totalorder %s3170_s15, 3 }
   0x4   : > { %p165_p2 = pnand %p2582_p0, %p164_p1 }
   0x6   : > { %168 = sbr.rel (%p165_p2) target bundleno = 1130 (0x46a), region = 36 }
   0xb   : > { %v2726_v0 = vld [vmem:[%s4646_s2 + $0x38] sm:$0xff]  ;;  %s2583_s21 = sshll.u32 %s2578_s16, 5  ;;  %v2725_v2 = vld [vmem:[%s4646_s2 + $0x30] sm:$0xff]  ;;  %v3229_v4 = vld [vmem:[%s4645_s1] sm:$0xff] }
   0xc   : > { %v3212_v1 = vld [vmem:[%s4646_s2 + $0x78] sm:$0xff]  ;;  %p192_p3 = scmp.lt.s32.totalorder %s2583_s21, 63  ;;  %1047 = vmatpush.bf16.msra.mxu0 %v2726_v0  ;;  %v3221_v3 = vld [vmem:[%s4646_s2 + $0x70] sm:$0xff]  ;;  %2743 = vmatpush.bf16.msra.mxu3 %v2726_v0  ;;  %v3234_v5 = vld [vmem:[%s4645_s1 + $0x8] sm:$0xff]  ;;  %v3251_v8 = vperm.slane %v3229_v4, 0  ;;  %v3254_v9 = vperm.slane %v3229_v4, 1 }
   0xd   : > { %1136 = vmatpush.bf16.msra.mxu1 %v3212_v1  ;;  %v2724_v6 = vld [vmem:[%s4646_s2 + $0x28] sm:$0xff]  ;;  %v3257_v10 = vperm.slane %v3229_v4, 2  ;;  %v3263_v14 = vperm.slane %v3234_v5, 0  ;;  %v3266_v15 = vperm.slane %v3234_v5, 1  ;;  %v3269_v16 = vperm.slane %v3234_v5, 2  ;;  %v2723_v29 = vld [vmem:[%s4646_s2 + $0x20] sm:$0xff] }
   0xe   : > { %s4668_s21 = smov (!%p192_p3, %s2583_s21), 63  ;;  %v3243_v7 = vld [vmem:[%s4646_s2 + $0x68] sm:$0xff]  ;;  %v3282_v30 = vld [vmem:[%s4646_s2 + $0x60] sm:$0xff]  ;;  %v2722_v48 = vld [vmem:[%s4646_s2 + $0x18] sm:$0xff] }
   0xf   : > { %s2718_s26 = sshll.u32 %s4668_s21, 4  ;;  %v3301_v49 = vld [vmem:[%s4646_s2 + $0x58] sm:$0xff]  ;;  %v2721_v0 = vld [vmem:[%s4646_s2 + $0x10] sm:$0xff]  ;;  %s2587_s28 = sshll.u32 %s4668_s21, 3 }
  0x10   : > { %1048 = vmatpush.bf16.msra.mxu0 %v2725_v2  ;;  %s3248_s11 = scalar_lea.vmem %s4644_s0, %s2718_s26  ;;  %2744 = vmatpush.bf16.msra.mxu3 %v2725_v2  ;;  %v3323_v2 = vld [vmem:[%s4646_s2 + $0x50] sm:$0xff]  ;;  %s4220_s5 = scalar_lea.vmem %s4648_s4, %s2587_s28 }
  0x11   : > { %1137 = vmatpush.bf16.msra.mxu1 %v3221_v3  ;;  %v206_v11 = vld [vmem:[%s3248_s11] sm:$0xff]  ;;  %v207_v12 = vld [vmem:[%s3248_s11 + $0x8] sm:$0xff]  ;;  %v208_v13 = vld [vmem:[%s3248_s11 + $0x10] sm:$0xff] }
  0x12   : > { %v209_v17 = vld [vmem:[%s3248_s11 + $0x18] sm:$0xff]  ;;  %v270_v18 = vunpack.c.l.bf16 %v206_v11  ;;  %v272_v19 = vunpack.c.l.bf16 %v207_v12  ;;  %v274_v20 = vunpack.c.l.bf16 %v208_v13  ;;  %v271_v21 = vunpack.c.h.bf16 %v206_v11  ;;  %v210_v22 = vld [vmem:[%s3248_s11 + $0x20] sm:$0xff]  ;;  %v211_v27 = vld [vmem:[%s3248_s11 + $0x28] sm:$0xff] }
  0x13   : > { %v276_v23 = vunpack.c.l.bf16 %v209_v17  ;;  %v273_v24 = vunpack.c.h.bf16 %v207_v12  ;;  %v275_v25 = vunpack.c.h.bf16 %v208_v13  ;;  %v277_v26 = vunpack.c.h.bf16 %v209_v17  ;;  %v212_v28 = vld [vmem:[%s3248_s11 + $0x30] sm:$0xff]  ;;  %v213_v34 = vld [vmem:[%s3248_s11 + $0x38] sm:$0xff]  ;;  %v3311_v62 = vld [vmem:[%s3248_s11 + $0x180] sm:$0xff] }
  0x14   : > { %1049 = vmatpush.bf16.msra.mxu0 %v2724_v6  ;;  %v400_v31 = vmul.f32 %v3251_v8, %v270_v18  ;;  %v402_v32 = vmul.f32 %v3251_v8, %v274_v20  ;;  %v466_v33 = vmul.f32 %v3254_v9, %v272_v19  ;;  %v278_v35 = vunpack.c.l.bf16 %v210_v22  ;;  %2745 = vmatpush.bf16.msra.mxu3 %v2724_v6  ;;  %v3314_v63 = vld [vmem:[%s3248_s11 + $0x188] sm:$0xff]  ;;  %v3326_v6 = vld [vmem:[%s3248_s11 + $0x190] sm:$0xff]  ;;  %v3330_v17 = vld [vmem:[%s3248_s11 + $0x198] sm:$0xff] }
  0x15   : > { %1138 = vmatpush.bf16.msra.mxu1 %v3243_v7  ;;  %v468_v36 = vmul.f32 %v3254_v9, %v276_v23  ;;  %v401_v37 = vmul.f32 %v3263_v14, %v271_v21  ;;  %v403_v38 = vmul.f32 %v3263_v14, %v275_v25  ;;  %v467_v39 = vmul.f32 %v3266_v15, %v273_v24  ;;  %v2720_v24 = vld [vmem:[%s4646_s2 + $0x8] sm:$0xff] }
  0x16   : > { %v530_v40 = vadd.f32 %v466_v33, %v400_v31  ;;  %v469_v41 = vmul.f32 %v3266_v15, %v277_v26  ;;  %v280_v42 = vunpack.c.l.bf16 %v211_v27  ;;  %v282_v43 = vunpack.c.l.bf16 %v212_v28  ;;  %v3345_v25 = vld [vmem:[%s4646_s2 + $0x48] sm:$0xff] }
  0x17   : > { %v532_v44 = vadd.f32 %v468_v36, %v402_v32  ;;  %v531_v45 = vadd.f32 %v467_v39, %v401_v37  ;;  %v284_v46 = vunpack.c.l.bf16 %v213_v34  ;;  %v404_v47 = vmul.f32 %v3251_v8, %v278_v35 }
  0x18   : > { %1050 = vmatpush.bf16.msra.mxu0 %v2723_v29  ;;  %v596_v50 = vadd.f32 %v3257_v10, %v530_v40  ;;  %v533_v51 = vadd.f32 %v469_v41, %v403_v38  ;;  %v406_v52 = vmul.f32 %v3251_v8, %v282_v43  ;;  %v279_v53 = vunpack.c.h.bf16 %v210_v22  ;;  %2746 = vmatpush.bf16.msra.mxu3 %v2723_v29  ;;  %v2719_v40 = vld [vmem:[%s4646_s2] sm:$0xff] }
  0x19   : > { %1139 = vmatpush.bf16.msra.mxu1 %v3282_v30  ;;  %v598_v54 = vadd.f32 %v3257_v10, %v532_v44  ;;  %v597_v55 = vadd.f32 %v3269_v16, %v531_v45  ;;  %v470_v56 = vmul.f32 %v3254_v9, %v280_v42  ;;  %v472_v57 = vmul.f32 %v3254_v9, %v284_v46  ;;  %v3369_v41 = vld [vmem:[%s4646_s2 + $0x40] sm:$0xff]  ;;  %v215_v45 = vld [vmem:[%s3248_s11 + $0x48] sm:$0xff]  ;;  %v216_v46 = vld [vmem:[%s3248_s11 + $0x50] sm:$0xff] }
  0x1a   : > { %v599_v58 = vadd.f32 %v3269_v16, %v533_v51  ;;  %v281_v59 = vunpack.c.h.bf16 %v211_v27  ;;  %2779 = vtanh.f32 %v596_v50  ;;  %v283_v60 = vunpack.c.h.bf16 %v212_v28  ;;  %v214_v44 = vld [vmem:[%s3248_s11 + $0x40] sm:$0xff] }
  0x1b   : > { %v285_v61 = vunpack.c.h.bf16 %v213_v34  ;;  %2781 = vtanh.f32 %v598_v54  ;;  %v534_v11 = vadd.f32 %v470_v56, %v404_v47  ;;  %v536_v12 = vadd.f32 %v472_v57, %v406_v52  ;;  %v217_v54 = vld [vmem:[%s3248_s11 + $0x58] sm:$0xff]  ;;  %v3384_v56 = vld [vmem:[%s3248_s11 + $0x1a0] sm:$0xff] }
  0x1c   : > { %1051 = vmatpush.bf16.msra.mxu0 %v2722_v48  ;;  %2783 = vtanh.f32 %v597_v55  ;;  %2747 = vmatpush.bf16.msra.mxu3 %v2722_v48  ;;  %v405_v13 = vmul.f32 %v3263_v14, %v279_v53  ;;  %v471_v18 = vmul.f32 %v3266_v15, %v281_v59  ;;  %v366_v19 = vunpack.c.l.bf16 %v3311_v62  ;;  %v3388_v59 = vld [vmem:[%s3248_s11 + $0x1a8] sm:$0xff] }
  0x1d   : > { %1140 = vmatpush.bf16.msra.mxu1 %v3301_v49  ;;  %2785 = vtanh.f32 %v599_v58  ;;  %v368_v20 = vunpack.c.l.bf16 %v3314_v63  ;;  %v407_v21 = vmul.f32 %v3263_v14, %v283_v60  ;;  %v473_v22 = vmul.f32 %v3266_v15, %v285_v61  ;;  %v3391_v60 = vld [vmem:[%s3248_s11 + $0x1b0] sm:$0xff]  ;;  %v3394_v61 = vld [vmem:[%s3248_s11 + $0x1b8] sm:$0xff] }
  0x1e   : > { %v370_v23 = vunpack.c.l.bf16 %v3326_v6  ;;  %v372_v26 = vunpack.c.l.bf16 %v3330_v17  ;;  %v600_v28 = vadd.f32 %v3257_v10, %v534_v11  ;;  %v448_v29 = vmul.f32 %v3251_v8, %v366_v19 }
  0x1f   : > { %v602_v33 = vadd.f32 %v3257_v10, %v536_v12  ;;  %v535_v34 = vadd.f32 %v471_v18, %v405_v13  ;;  %v514_v35 = vmul.f32 %v3254_v9, %v368_v20  ;;  %v537_v38 = vadd.f32 %v473_v22, %v407_v21 }
  0x20   : > { %1052 = vmatpush.bf16.msra.mxu0 %v2721_v0  ;;  %v3348_v27 = vpop.eup %2779  ;;  %2748 = vmatpush.bf16.msra.mxu3 %v2721_v0  ;;  %v450_v31 = vmul.f32 %v3251_v8, %v370_v23  ;;  %v516_v36 = vmul.f32 %v3254_v9, %v372_v26  ;;  %2787 = vtanh.f32 %v600_v28  ;;  %v286_v55 = vunpack.c.l.bf16 %v214_v44 }
  0x21   : > { %1141 = vmatpush.bf16.msra.mxu1 %v3323_v2  ;;  %v3353_v32 = vpop.eup %2781  ;;  %v578_v42 = vadd.f32 %v514_v35, %v448_v29  ;;  %2789 = vtanh.f32 %v602_v33  ;;  %v601_v47 = vadd.f32 %v3269_v16, %v535_v34  ;;  %v603_v53 = vadd.f32 %v3269_v16, %v537_v38 }
  0x22   : > { %v3358_v37 = vpop.eup %2783  ;;  %v580_v43 = vadd.f32 %v516_v36, %v450_v31  ;;  %v756_v51 = vpack.c.bf16 %v3353_v32, %v3348_v27  ;;  %v288_v57 = vunpack.c.l.bf16 %v215_v45  ;;  %v290_v58 = vunpack.c.l.bf16 %v216_v46 }
  0x23   : > { %v3360_v39 = vpop.eup %2785  ;;  %v644_v48 = vadd.f32 %v3257_v10, %v578_v42  ;;  %v292_v0 = vunpack.c.l.bf16 %v217_v54  ;;  %v374_v11 = vunpack.c.l.bf16 %v3384_v56  ;;  %v408_v13 = vmul.f32 %v3251_v8, %v286_v55  ;;  %v3435_v55 = vld [vmem:[%s3248_s11 + $0x1c8] sm:$0xff] }
  0x24   : > { %1053 = vmatpush.bf16.msra.mxu0 %v2720_v24  ;;  %2749 = vmatpush.bf16.msra.mxu3 %v2720_v24  ;;  %v646_v50 = vadd.f32 %v3257_v10, %v580_v43  ;;  %v757_v52 = vpack.c.bf16 %v3360_v39, %v3358_v37  ;;  %v376_v18 = vunpack.c.l.bf16 %v3388_v59  ;;  %v378_v19 = vunpack.c.l.bf16 %v3391_v60 }
  0x25   : > { %1142 = vmatpush.bf16.msra.mxu1 %v3345_v25  ;;  %2791 = vtanh.f32 %v644_v48  ;;  %v410_v21 = vmul.f32 %v3251_v8, %v290_v58  ;;  %v474_v22 = vmul.f32 %v3254_v9, %v288_v57  ;;  %v380_v23 = vunpack.c.l.bf16 %v3394_v61  ;;  %v3438_v57 = vld [vmem:[%s3248_s11 + $0x1d0] sm:$0xff] }
  0x26   : > { %2793 = vtanh.f32 %v646_v50  ;;  %v3398_v12 = vpop.eup %2787  ;;  %v287_v24 = vunpack.c.h.bf16 %v214_v44  ;;  %v289_v26 = vunpack.c.h.bf16 %v215_v45  ;;  %v454_v28 = vmul.f32 %v3251_v8, %v378_v19 }
  0x27   : > { %2795 = vtanh.f32 %v601_v47  ;;  %v3403_v20 = vpop.eup %2789  ;;  %v518_v29 = vmul.f32 %v3254_v9, %v376_v18  ;;  %v476_v33 = vmul.f32 %v3254_v9, %v292_v0  ;;  %v291_v34 = vunpack.c.h.bf16 %v216_v46 }
  0x28   : > { %1054 = vmatpush.bf16.msra.mxu0 %v2719_v40  ;;  %2750 = vmatpush.bf16.msra.mxu3 %v2719_v40  ;;  %2797 = vtanh.f32 %v603_v53  ;;  %v293_v35 = vunpack.c.h.bf16 %v217_v54  ;;  %v520_v36 = vmul.f32 %v3254_v9, %v380_v23  ;;  %v538_v46 = vadd.f32 %v474_v22, %v408_v13  ;;  %v3431_v54 = vld [vmem:[%s3248_s11 + $0x1c0] sm:$0xff] }
  0x29   : > { %1143 = vmatpush.bf16.msra.mxu1 %v3369_v41  ;;  %v409_v47 = vmul.f32 %v3263_v14, %v287_v24  ;;  %v540_v50 = vadd.f32 %v476_v33, %v410_v21  ;;  %v382_v13 = vunpack.c.l.bf16 %v3431_v54  ;;  %v218_v22 = vld [vmem:[%s3248_s11 + $0x60] sm:$0xff]  ;;  %v384_v23 = vunpack.c.l.bf16 %v3435_v55 }
  0x2a   : > { %v584_v44 = vadd.f32 %v520_v36, %v454_v28  ;;  %v604_v58 = vadd.f32 %v3257_v10, %v538_v46  ;;  %v367_v24 = vunpack.c.h.bf16 %v3311_v62  ;;  %v220_v28 = vld [vmem:[%s3248_s11 + $0x70] sm:$0xff]  ;;  %v294_v62 = vunpack.c.l.bf16 %v218_v22 }
  0x2b   : > { %1055 = vmatmul.bf16.vlgmr.msra.gmra.mxu0 %v756_v51  ;;  %v3411_v31 = vpop.eup %2791  ;;  %v411_v51 = vmul.f32 %v3263_v14, %v291_v34  ;;  %v606_v18 = vadd.f32 %v3257_v10, %v540_v50  ;;  %v456_v34 = vmul.f32 %v3251_v8, %v382_v13  ;;  %v295_v50 = vunpack.c.h.bf16 %v218_v22  ;;  %v3477_v22 = vld [vmem:[%s3248_s11 + $0x1e0] sm:$0xff] }
  0x2c   : > { %2751 = vmatpush.bf16.msrb.mxu3 %v3212_v1  ;;  %1144 = vmatmul.bf16.vlgmr.msra.gmra.mxu1 %v757_v52  ;;  %v452_v1 = vmul.f32 %v3251_v8, %v374_v11  ;;  %4655 = vst [vmem:[#allocation2_spill] sm:$0xff] %v3411_v31  ;;  %v3416_v38 = vpop.eup %2793  ;;  %v477_v52 = vmul.f32 %v3266_v15, %v293_v35  ;;  %v3442_v11 = vld [vmem:[%s3248_s11 + $0x1d8] sm:$0xff]  ;;  %v371_v13 = vunpack.c.h.bf16 %v3326_v6 }
  0x2d   : > { %v3418_v42 = vpop.eup %2795  ;;  %v780_v43 = vpack.c.bf16 %v3416_v38, %v3411_v31  ;;  %v650_v53 = vadd.f32 %v3257_v10, %v584_v44  ;;  %v388_v33 = vunpack.c.l.bf16 %v3442_v11 }
  0x2e   : > { %v582_v40 = vadd.f32 %v518_v29, %v452_v1  ;;  %v3422_v45 = vpop.eup %2797  ;;  %v541_v19 = vadd.f32 %v477_v52, %v411_v51  ;;  %v386_v1 = vunpack.c.l.bf16 %v3438_v57  ;;  %v221_v29 = vld [vmem:[%s3248_s11 + $0x78] sm:$0xff]  ;;  %v299_v52 = vunpack.c.h.bf16 %v220_v28 }
  0x2f   : > { %1115 = vmatmul.bf16.vlgmr.msra.gmra.mxu3 %v780_v43  ;;  %v759_v21 = vpack.c.bf16 %v3422_v45, %v3418_v42  ;;  %v524_v44 = vmul.f32 %v3254_v9, %v388_v33 }
  0x30   : > { %2752 = vmatpush.bf16.msrb.mxu3 %v3221_v3  ;;  %v475_v3 = vmul.f32 %v3266_v15, %v289_v26  ;;  %v648_v48 = vadd.f32 %v3257_v10, %v582_v40  ;;  %v219_v26 = vld [vmem:[%s3248_s11 + $0x68] sm:$0xff]  ;;  %v458_v36 = vmul.f32 %v3251_v8, %v386_v1  ;;  %v522_v40 = vmul.f32 %v3254_v9, %v384_v23 }
  0x31   : > { %v297_v51 = vunpack.c.h.bf16 %v219_v26  ;;  %v3480_v23 = vld [vmem:[%s3248_s11 + $0x1e8] sm:$0xff]  ;;  %v415_v33 = vmul.f32 %v3263_v14, %v299_v52 }
  0x32   : > { %2799 = vtanh.f32 %v648_v48  ;;  %v539_v0 = vadd.f32 %v475_v3, %v409_v47  ;;  %v296_v47 = vunpack.c.l.bf16 %v219_v26  ;;  %v298_v3 = vunpack.c.l.bf16 %v220_v28  ;;  %v3492_v28 = vld [vmem:[%s3248_s11 + $0x1f8] sm:$0xff] }
  0x33   : > { %2801 = vtanh.f32 %v650_v53  ;;  %v300_v48 = vunpack.c.l.bf16 %v221_v29  ;;  %v301_v53 = vunpack.c.h.bf16 %v221_v29  ;;  %v413_v26 = vmul.f32 %v3263_v14, %v295_v50 }
  0x34   : > { %2753 = vmatpush.bf16.msrb.mxu3 %v3243_v7  ;;  %v758_v7 = vpack.c.bf16 %v3403_v20, %v3398_v12  ;;  %2803 = vtanh.f32 %v604_v58  ;;  %v605_v35 = vadd.f32 %v3269_v16, %v539_v0  ;;  %v586_v58 = vadd.f32 %v522_v40, %v456_v34 }
  0x35   : > { %2805 = vtanh.f32 %v606_v18  ;;  %v369_v0 = vunpack.c.h.bf16 %v3314_v63  ;;  %v588_v18 = vadd.f32 %v524_v44, %v458_v36  ;;  %v414_v6 = vmul.f32 %v3251_v8, %v298_v3 }
  0x36   : > { %2807 = vtanh.f32 %v605_v35  ;;  %v478_v1 = vmul.f32 %v3254_v9, %v296_v47  ;;  %v479_v34 = vmul.f32 %v3266_v15, %v297_v51  ;;  %v481_v35 = vmul.f32 %v3266_v15, %v301_v53 }
  0x37   : > { %v652_v36 = vadd.f32 %v3257_v10, %v586_v58  ;;  %v654_v40 = vadd.f32 %v3257_v10, %v588_v18  ;;  %v396_v47 = vunpack.c.l.bf16 %v3492_v28  ;;  %v449_v3 = vmul.f32 %v3263_v14, %v367_v24 }
  0x38   : > { %2754 = vmatpush.bf16.msrb.mxu3 %v3282_v30  ;;  %v3463_v43 = vpop.eup %2799  ;;  %v607_v30 = vadd.f32 %v3269_v16, %v541_v19  ;;  %v373_v19 = vunpack.c.h.bf16 %v3330_v17  ;;  %v480_v17 = vmul.f32 %v3254_v9, %v300_v48  ;;  %v451_v48 = vmul.f32 %v3263_v14, %v371_v13 }
  0x39   : > { %v3467_v46 = vpop.eup %2801  ;;  %v515_v50 = vmul.f32 %v3266_v15, %v369_v0  ;;  %v543_v18 = vadd.f32 %v479_v34, %v413_v26 }
  0x3a   : > { %4656 = vst [vmem:[#allocation3_spill] sm:$0xff] %v3467_v46  ;;  %2809 = vtanh.f32 %v607_v30  ;;  %v3485_v63 = vpop.eup %2803  ;;  %v390_v30 = vunpack.c.l.bf16 %v3477_v22  ;;  %v517_v52 = vmul.f32 %v3266_v15, %v373_v19  ;;  %v544_v58 = vadd.f32 %v480_v17, %v414_v6 }
  0x3b   : > { %1060 = vmatmul.bf16.gmra.mxu0 %v758_v7  ;;  %v782_v7 = vpack.c.bf16 %v3467_v46, %v3463_v43  ;;  %v3494_v29 = vpop.eup %2805  ;;  %2811 = vtanh.f32 %v652_v36  ;;  %v545_v46 = vadd.f32 %v481_v35, %v415_v33  ;;  %v528_v19 = vmul.f32 %v3254_v9, %v396_v47  ;;  %v222_v47 = vld [vmem:[%s3248_s11 + $0x80] sm:$0xff] }
  0x3c   : > { %1149 = vmatmul.bf16.gmra.mxu1 %v759_v21  ;;  %2755 = vmatpush.bf16.msrb.mxu3 %v3301_v49  ;;  %v412_v21 = vmul.f32 %v3251_v8, %v294_v62  ;;  %v3483_v49 = vld [vmem:[%s3248_s11 + $0x1f0] sm:$0xff]  ;;  %v392_v62 = vunpack.c.l.bf16 %v3480_v23  ;;  %v3509_v51 = vpop.eup %2807  ;;  %2813 = vtanh.f32 %v654_v40  ;;  %v460_v24 = vmul.f32 %v3251_v8, %v390_v30 }
  0x3d   : > { %v394_v44 = vunpack.c.l.bf16 %v3483_v49  ;;  %v3519_v0 = vadd.f32 %v517_v52, %v451_v48  ;;  %v760_v6 = vpack.c.bf16 %v3494_v29, %v3485_v63  ;;  %v610_v17 = vadd.f32 %v3257_v10, %v544_v58  ;;  %v224_v48 = vld [vmem:[%s3248_s11 + $0x90] sm:$0xff] }
  0x3e   : > { %v526_v13 = vmul.f32 %v3254_v9, %v392_v62  ;;  %v609_v26 = vadd.f32 %v3269_v16, %v543_v18  ;;  %v611_v35 = vadd.f32 %v3269_v16, %v545_v46  ;;  %v302_v52 = vunpack.c.l.bf16 %v222_v47 }
  0x3f   : > { %1120 = vmatmul.bf16.gmra.mxu3 %v782_v7  ;;  %v3515_v7 = vadd.f32 %v515_v50, %v449_v3  ;;  %v223_v3 = vld [vmem:[%s3248_s11 + $0x88] sm:$0xff]  ;;  %v306_v18 = vunpack.c.l.bf16 %v224_v48 }
  0x40   : > { %2756 = vmatpush.bf16.msrb.mxu3 %v3323_v2  ;;  %v542_v2 = vadd.f32 %v478_v1, %v412_v21  ;;  %v3512_v53 = vpop.eup %2809  ;;  %v462_v21 = vmul.f32 %v3251_v8, %v394_v44  ;;  %v590_v34 = vadd.f32 %v526_v13, %v460_v24  ;;  %v304_v58 = vunpack.c.l.bf16 %v223_v3  ;;  %v2742_v13 = vld [vmem:[%s4647_s3 + $0x38] sm:$0xff] }
  0x41   : > { %v3531_v33 = vpop.eup %2811  ;;  %v303_v24 = vunpack.c.h.bf16 %v222_v47  ;;  %1337 = vmatpush.bf16.msra.mxu2 %v2742_v13 }
  0x42   : > { %v608_v1 = vadd.f32 %v3257_v10, %v542_v2  ;;  %v592_v36 = vadd.f32 %v528_v19, %v462_v21  ;;  %v3534_v40 = vpop.eup %2813  ;;  %v225_v2 = vld [vmem:[%s3248_s11 + $0x98] sm:$0xff] }
  0x43   : > { %v784_v30 = vpack.c.bf16 %v3534_v40, %v3531_v33  ;;  %v308_v19 = vunpack.c.l.bf16 %v225_v2 }
  0x44   : > { %2757 = vmatpush.bf16.msrb.mxu3 %v3345_v25  ;;  %v761_v25 = vpack.c.bf16 %v3512_v53, %v3509_v51  ;;  %2815 = vtanh.f32 %v608_v1  ;;  %v658_v46 = vadd.f32 %v3257_v10, %v592_v36  ;;  %v309_v1 = vunpack.c.h.bf16 %v225_v2  ;;  %v2741_v36 = vld [vmem:[%s4647_s3 + $0x30] sm:$0xff] }
  0x45   : > { %2817 = vtanh.f32 %v610_v17  ;;  %v416_v17 = vmul.f32 %v3251_v8, %v302_v52  ;;  %1338 = vmatpush.bf16.msra.mxu2 %v2741_v36 }
  0x46   : > { %2819 = vtanh.f32 %v609_v26  ;;  %v418_v26 = vmul.f32 %v3251_v8, %v306_v18  ;;  %v485_v47 = vmul.f32 %v3266_v15, %v309_v1 }
  0x47   : > { %2821 = vtanh.f32 %v611_v35  ;;  %v417_v35 = vmul.f32 %v3263_v14, %v303_v24 }
  0x48   : > { %2758 = vmatpush.bf16.msrb.mxu3 %v3369_v41  ;;  %v656_v41 = vadd.f32 %v3257_v10, %v590_v34  ;;  %v482_v34 = vmul.f32 %v3254_v9, %v304_v58 }
  0x4a   : > { %v3540_v62 = vpop.eup %2815  ;;  %2823 = vtanh.f32 %v656_v41  ;;  %v484_v41 = vmul.f32 %v3254_v9, %v308_v19  ;;  %v546_v52 = vadd.f32 %v482_v34, %v416_v17 }
  0x4b   : > { %1065 = vmatmul.bf16.gmra.mxu0 %v760_v6  ;;  %v3542_v44 = vpop.eup %2817  ;;  %2825 = vtanh.f32 %v658_v46  ;;  %v305_v6 = vunpack.c.h.bf16 %v223_v3 }
  0x4c   : > { %1154 = vmatmul.bf16.gmra.mxu1 %v761_v25  ;;  %v3547_v50 = vpop.eup %2819  ;;  %v307_v25 = vunpack.c.h.bf16 %v224_v48  ;;  %2759 = vmatpush.bf16.msra.mxu3 %v2742_v13  ;;  %v762_v48 = vpack.c.bf16 %v3542_v44, %v3540_v62  ;;  %v548_v18 = vadd.f32 %v484_v41, %v418_v26  ;;  %v2740_v13 = vld [vmem:[%s4647_s3 + $0x28] sm:$0xff]  ;;  %v645_v26 = vadd.f32 %v3269_v16, %v3515_v7 }
  0x4d   : > { %v3553_v21 = vpop.eup %2821  ;;  %v483_v46 = vmul.f32 %v3266_v15, %v305_v6  ;;  %1339 = vmatpush.bf16.msra.mxu2 %v2740_v13 }
  0x4e   : > { %v763_v2 = vpack.c.bf16 %v3553_v21, %v3547_v50  ;;  %v614_v6 = vadd.f32 %v3257_v10, %v548_v18  ;;  %v381_v18 = vunpack.c.h.bf16 %v3394_v61  ;;  %v2739_v61 = vld [vmem:[%s4647_s3 + $0x20] sm:$0xff] }
  0x4f   : > { %1125 = vmatmul.bf16.gmra.mxu3 %v784_v30  ;;  %v419_v30 = vmul.f32 %v3263_v14, %v307_v25  ;;  %v547_v24 = vadd.f32 %v483_v46, %v417_v35  ;;  %v612_v25 = vadd.f32 %v3257_v10, %v546_v52  ;;  %v647_v35 = vadd.f32 %v3269_v16, %v3519_v0 }
  0x50   : > { %v3566_v3 = vpop.eup %2823  ;;  %2760 = vmatpush.bf16.msra.mxu3 %v2741_v36  ;;  %v379_v52 = vunpack.c.h.bf16 %v3391_v60 }
  0x51   : > { %4657 = vst [vmem:[#allocation4_spill] sm:$0xff] %v3566_v3  ;;  %v3572_v58 = vpop.eup %2825  ;;  %v549_v19 = vadd.f32 %v485_v47, %v419_v30  ;;  %v613_v1 = vadd.f32 %v3269_v16, %v547_v24  ;;  %2827 = vtanh.f32 %v612_v25  ;;  %1340 = vmatpush.bf16.msra.mxu2 %v2739_v61 }
  0x52   : > { %2829 = vtanh.f32 %v614_v6  ;;  %v786_v17 = vpack.c.bf16 %v3572_v58, %v3566_v3  ;;  %v226_v6 = vld [vmem:[%s3248_s11 + $0xa0] sm:$0xff] }
  0x53   : > { %v615_v31 = vadd.f32 %v3269_v16, %v549_v19  ;;  %2831 = vtanh.f32 %v613_v1  ;;  %v455_v19 = vmul.f32 %v3263_v14, %v379_v52  ;;  %v227_v1 = vld [vmem:[%s3248_s11 + $0xa8] sm:$0xff] }
  0x54   : > { %2761 = vmatpush.bf16.msra.mxu3 %v2740_v13  ;;  %v521_v13 = vmul.f32 %v3266_v15, %v381_v18 }
  0x55   : > { %2833 = vtanh.f32 %v615_v31 }
  0x56   : > { %2835 = vtanh.f32 %v645_v26 }
  0x57   : > { %v3585_v34 = vpop.eup %2827  ;;  %2837 = vtanh.f32 %v647_v35  ;;  %v585_v35 = vadd.f32 %v521_v13, %v455_v19  ;;  %v311_v19 = vunpack.c.h.bf16 %v226_v6 }
  0x58   : > { %v3589_v36 = vpop.eup %2829  ;;  %2762 = vmatpush.bf16.msra.mxu3 %v2739_v61 }
  0x59   : > { %v3591_v41 = vpop.eup %2831  ;;  %v764_v31 = vpack.c.bf16 %v3589_v36, %v3585_v34 }
  0x5b   : > { %1070 = vmatmul.bf16.gmra.mxu0 %v762_v48  ;;  %v3593_v30 = vpop.eup %2833  ;;  %v375_v48 = vunpack.c.h.bf16 %v3384_v56  ;;  %v229_v56 = vld [vmem:[%s3248_s11 + $0xb8] sm:$0xff] }
  0x5c   : > { %1159 = vmatmul.bf16.gmra.mxu1 %v763_v2  ;;  %v765_v7 = vpack.c.bf16 %v3593_v30, %v3591_v41  ;;  %v3599_v46 = vpop.eup %2835  ;;  %v377_v2 = vunpack.c.h.bf16 %v3388_v59  ;;  %v312_v59 = vunpack.c.l.bf16 %v227_v1  ;;  %v316_v60 = vunpack.c.l.bf16 %v229_v56 }
  0x5d   : > { %4658 = vst [vmem:[#allocation5_spill] sm:$0xff] %v3599_v46  ;;  %v3601_v0 = vpop.eup %2837  ;;  %v453_v24 = vmul.f32 %v3263_v14, %v375_v48  ;;  %v651_v48 = vadd.f32 %v3269_v16, %v585_v35  ;;  %v421_v35 = vmul.f32 %v3263_v14, %v311_v19  ;;  %v389_v19 = vunpack.c.h.bf16 %v3442_v11 }
  0x5e   : > { %v781_v47 = vpack.c.bf16 %v3601_v0, %v3599_v46  ;;  %v519_v25 = vmul.f32 %v3266_v15, %v377_v2  ;;  %v486_v52 = vmul.f32 %v3254_v9, %v312_v59  ;;  %v317_v46 = vunpack.c.h.bf16 %v229_v56  ;;  %v2738_v59 = vld [vmem:[%s4647_s3 + $0x18] sm:$0xff] }
  0x5f   : > { %1130 = vmatmul.bf16.gmra.mxu3 %v786_v17  ;;  %v228_v17 = vld [vmem:[%s3248_s11 + $0xb0] sm:$0xff]  ;;  %1341 = vmatpush.bf16.msra.mxu2 %v2738_v59 }
  0x60   : > { %v583_v26 = vadd.f32 %v519_v25, %v453_v24  ;;  %v488_v24 = vmul.f32 %v3254_v9, %v316_v60  ;;  %v313_v25 = vunpack.c.h.bf16 %v227_v1  ;;  %v315_v3 = vunpack.c.h.bf16 %v228_v17  ;;  %2763 = vmatpush.bf16.msra.mxu3 %v2738_v59 }
  0x61   : > { %v489_v1 = vmul.f32 %v3266_v15, %v317_v46 }
  0x6b   : > { %1075 = vmatmul.bf16.gmra.mxu0 %v764_v31  ;;  %v310_v31 = vunpack.c.l.bf16 %v226_v6  ;;  %v423_v6 = vmul.f32 %v3263_v14, %v315_v3 }
  0x6c   : > { %1164 = vmatmul.bf16.gmra.mxu1 %v765_v7  ;;  %v314_v7 = vunpack.c.l.bf16 %v228_v17 }
  0x6d   : > { %v420_v2 = vmul.f32 %v3251_v8, %v310_v31  ;;  %v487_v31 = vmul.f32 %v3266_v15, %v313_v25  ;;  %v553_v60 = vadd.f32 %v489_v1, %v423_v6  ;;  %v2735_v1 = vld [vmem:[%s4647_s3] sm:$0xff] }
  0x6e   : > { %v422_v18 = vmul.f32 %v3251_v8, %v314_v7 }
  0x6f   : > { %1204 = vmatmul.bf16.vlgmr.msrb.gmra.mxu3 %v781_v47  ;;  %v649_v47 = vadd.f32 %v3269_v16, %v583_v26  ;;  %v550_v13 = vadd.f32 %v486_v52, %v420_v2  ;;  %v551_v56 = vadd.f32 %v487_v31, %v421_v35  ;;  %v619_v3 = vadd.f32 %v3269_v16, %v553_v60 }
  0x70   : > { %v552_v26 = vadd.f32 %v488_v24, %v422_v18  ;;  %v383_v52 = vunpack.c.h.bf16 %v3431_v54  ;;  %v385_v18 = vunpack.c.h.bf16 %v3435_v55  ;;  %v387_v24 = vunpack.c.h.bf16 %v3438_v57 }
  0x71   : > { %2839 = vtanh.f32 %v649_v47  ;;  %v616_v7 = vadd.f32 %v3257_v10, %v550_v13  ;;  %v617_v61 = vadd.f32 %v3269_v16, %v551_v56  ;;  %v2736_v13 = vld [vmem:[%s4647_s3 + $0x8] sm:$0xff]  ;;  %v525_v55 = vmul.f32 %v3266_v15, %v389_v19 }
  0x72   : > { %2841 = vtanh.f32 %v651_v48  ;;  %v618_v17 = vadd.f32 %v3257_v10, %v552_v26  ;;  %v2737_v48 = vld [vmem:[%s4647_s3 + $0x10] sm:$0xff]  ;;  %v457_v26 = vmul.f32 %v3263_v14, %v383_v52  ;;  %v523_v35 = vmul.f32 %v3266_v15, %v385_v18 }
  0x73   : > { %2843 = vtanh.f32 %v616_v7  ;;  %1342 = vmatpush.bf16.msra.mxu2 %v2737_v48  ;;  %2764 = vmatpush.bf16.msra.mxu3 %v2737_v48  ;;  %v459_v54 = vmul.f32 %v3263_v14, %v387_v24  ;;  %v393_v52 = vunpack.c.h.bf16 %v3480_v23  ;;  %v395_v18 = vunpack.c.h.bf16 %v3483_v49 }
  0x74   : > { %2845 = vtanh.f32 %v618_v17  ;;  %v587_v11 = vadd.f32 %v523_v35, %v457_v26  ;;  %v397_v24 = vunpack.c.h.bf16 %v3492_v28  ;;  %v3685_v19 = vperm.slane %v3229_v4, 3 }
  0x75   : > { %2847 = vtanh.f32 %v617_v61  ;;  %v589_v7 = vadd.f32 %v525_v55, %v459_v54  ;;  %v463_v26 = vmul.f32 %v3263_v14, %v395_v18 }
  0x76   : > { %2849 = vtanh.f32 %v619_v3  ;;  %v653_v17 = vadd.f32 %v3269_v16, %v587_v11  ;;  %v529_v23 = vmul.f32 %v3266_v15, %v397_v24 }
  0x77   : > { %v3636_v47 = vpop.eup %2839  ;;  %1343 = vmatpush.bf16.msra.mxu2 %v2736_v13  ;;  %2765 = vmatpush.bf16.msra.mxu3 %v2736_v13  ;;  %v655_v60 = vadd.f32 %v3269_v16, %v589_v7 }
  0x78   : > { %v3642_v2 = vpop.eup %2841  ;;  %2851 = vtanh.f32 %v653_v17  ;;  %v593_v28 = vadd.f32 %v529_v23, %v463_v26  ;;  %v231_v17 = vld [vmem:[%s3248_s11 + $0xc8] sm:$0xff] }
  0x79   : > { %4659 = vst [vmem:[#allocation6_spill] sm:$0xff] %v3642_v2  ;;  %v783_v46 = vpack.c.bf16 %v3642_v2, %v3636_v47  ;;  %v3650_v25 = vpop.eup %2843  ;;  %2853 = vtanh.f32 %v655_v60  ;;  %v233_v60 = vld [vmem:[%s3248_s11 + $0xd8] sm:$0xff] }
  0x7a   : > { %v3657_v31 = vpop.eup %2845  ;;  %v659_v11 = vadd.f32 %v3269_v16, %v593_v28  ;;  %v324_v18 = vunpack.c.l.bf16 %v233_v60  ;;  %v3705_v28 = vperm.slane %v3229_v4, 5  ;;  %v325_v2 = vunpack.c.h.bf16 %v233_v60 }
  0x7b   : > { %v766_v57 = vpack.c.bf16 %v3657_v31, %v3650_v25  ;;  %v3663_v59 = vpop.eup %2847  ;;  %1344 = vmatpush.bf16.msra.mxu2 %v2735_v1  ;;  %2766 = vmatpush.bf16.msra.mxu3 %v2735_v1  ;;  %v230_v1 = vld [vmem:[%s3248_s11 + $0xc0] sm:$0xff] }
  0x7c   : > { %v3665_v6 = vpop.eup %2849 }
  0x7d   : > { %1080 = vmatmul.bf16.gmra.mxu0 %v766_v57  ;;  %v767_v56 = vpack.c.bf16 %v3665_v6, %v3663_v59 }
  0x7e   : > { %v3674_v61 = vpop.eup %2851 }
  0x7f   : > { %1209 = vmatmul.bf16.gmra.mxu3 %v783_v46  ;;  %1169 = vmatmul.bf16.gmra.mxu1 %v767_v56  ;;  %v3676_v48 = vpop.eup %2853  ;;  %v391_v46 = vunpack.c.h.bf16 %v3477_v22  ;;  %v527_v22 = vmul.f32 %v3266_v15, %v393_v52  ;;  %v232_v56 = vld [vmem:[%s3248_s11 + $0xd0] sm:$0xff] }
  0x80   : > { %4660 = vst [vmem:[#allocation7_spill] sm:$0xff] %v3676_v48  ;;  %v785_v3 = vpack.c.bf16 %v3676_v48, %v3674_v61  ;;  %v322_v52 = vunpack.c.l.bf16 %v232_v56 }
  0x81   : > { %v461_v13 = vmul.f32 %v3263_v14, %v391_v46  ;;  %v320_v46 = vunpack.c.l.bf16 %v231_v17 }
  0x83   : > { %v591_v35 = vadd.f32 %v527_v22, %v461_v13  ;;  %v426_v22 = vmul.f32 %v3251_v8, %v322_v52  ;;  %v490_v23 = vmul.f32 %v3254_v9, %v320_v46  ;;  %v323_v52 = vunpack.c.h.bf16 %v232_v56 }
  0x85   : > { %v657_v57 = vadd.f32 %v3269_v16, %v591_v35  ;;  %v319_v35 = vunpack.c.h.bf16 %v230_v1 }
  0x87   : > { %2855 = vtanh.f32 %v657_v57  ;;  %v492_v57 = vmul.f32 %v3254_v9, %v324_v18  ;;  %v425_v18 = vmul.f32 %v3263_v14, %v319_v35 }
  0x88   : > { %2857 = vtanh.f32 %v659_v11 }
  0x8f   : > { %1214 = vmatmul.bf16.gmra.mxu3 %v785_v3  ;;  %v318_v3 = vunpack.c.l.bf16 %v230_v1 }
  0x91   : > { %v424_v26 = vmul.f32 %v3251_v8, %v318_v3  ;;  %v321_v3 = vunpack.c.h.bf16 %v231_v17 }
  0xa8   : > { %v1056_v49 = vpop.f32.mrf.mxu0 }
  0xa9   : > { %v1145_v54 = vpop.f32.mrf.mxu1  ;;  %v1057_v55 = vadd.f32 %v1056_v49, %v3685_v19  ;;  %v3701_v49 = vpop.eup %2855 }
  0xaa   : > { %v3711_v11 = vpop.eup %2857 }
  0xab   : > { %v1146_v7 = vadd.f32 %v1145_v54, %v1057_v55  ;;  %v3708_v55 = vperm.slane %v3234_v5, 5  ;;  %v787_v1 = vpack.c.bf16 %v3711_v11, %v3701_v49  ;;  %v556_v5 = vadd.f32 %v492_v57, %v426_v22 }
  0xac   : > { %v798_v57 = vmul.f32 %v3485_v63, %v3705_v28 }
  0xad   : > { %2859 = vtanh.f32 %v1146_v7  ;;  %v554_v7 = vadd.f32 %v490_v23, %v424_v26  ;;  %v795_v4 = vmul.f32 %v3418_v42, %v3708_v55  ;;  %v427_v26 = vmul.f32 %v3263_v14, %v323_v52  ;;  %1219 = vmatmul.bf16.gmra.mxu3 %v787_v1 }
  0xae   : > { %v622_v23 = vadd.f32 %v3257_v10, %v556_v5 }
  0xaf   : > { %v620_v48 = vadd.f32 %v3257_v10, %v554_v7  ;;  %v799_v7 = vmul.f32 %v3509_v51, %v3708_v55 }
  0xb0   : > { %v1058_v24 = vpop.f32.mrf.mxu0 }
  0xb1   : > { %v1147_v13 = vpop.f32.mrf.mxu1  ;;  %v1059_v54 = vadd.f32 %v1058_v24, %v3685_v19  ;;  %v794_v24 = vmul.f32 %v3398_v12, %v3705_v28  ;;  %v493_v12 = vmul.f32 %v3266_v15, %v325_v2  ;;  %v797_v2 = vmul.f32 %v3422_v45, %v3708_v55 }
  0xb2   : > { %v3722_v56 = vpop.f32.mrf.mxu3 }
  0xb3   : > { %v1148_v46 = vadd.f32 %v1147_v13, %v1059_v54  ;;  %v2860_v17 = vpop.eup %2859  ;;  %v860_v60 = vadd.f32 %v795_v4, %v794_v24  ;;  %v491_v13 = vmul.f32 %v3266_v15, %v321_v3  ;;  %v557_v22 = vadd.f32 %v493_v12, %v427_v26 }
  0xb4   : > { %v796_v3 = vmul.f32 %v3403_v20, %v3705_v28  ;;  %v866_v24 = vadd.f32 %v799_v7, %v798_v57  ;;  %v801_v12 = vmul.f32 %v3512_v53, %v3708_v55  ;;  %v790_v53 = vmul.f32 %v3348_v27, %v3705_v28 }
  0xb5   : > { %2861 = vtanh.f32 %v1148_v46  ;;  %861 = vadd.xlane.f32.xlu1 %v860_v60  ;;  %v555_v42 = vadd.f32 %v491_v13, %v425_v18  ;;  %v623_v52 = vadd.f32 %v3269_v16, %v557_v22  ;;  %v805_v22 = vmul.f32 %v3553_v21, %v3708_v55 }
  0xb6   : > { %2863 = vtanh.f32 %v620_v48  ;;  %v863_v5 = vadd.f32 %v797_v2, %v796_v3  ;;  %867 = vadd.xlane.f32.xlu2 %v866_v24  ;;  %v806_v21 = vmul.f32 %v3585_v34, %v3705_v28  ;;  %v807_v2 = vmul.f32 %v3591_v41, %v3708_v55 }
  0xb7   : > { %2865 = vtanh.f32 %v622_v23  ;;  %v621_v48 = vadd.f32 %v3269_v16, %v555_v42  ;;  %v804_v23 = vmul.f32 %v3542_v44, %v3705_v28  ;;  %v791_v44 = vmul.f32 %v3358_v37, %v3708_v55 }
  0xb8   : > { %v1061_v54 = vpop.f32.mrf.mxu0  ;;  %v878_v34 = vadd.f32 %v807_v2, %v806_v21  ;;  %v239_v21 = vld [vmem:[%s3248_s11 + $0x108] sm:$0xff] }
  0xb9   : > { %v1150_v35 = vpop.f32.mrf.mxu1  ;;  %v1062_v1 = vadd.f32 %v1061_v54, %v3685_v19  ;;  %2867 = vtanh.f32 %v621_v48  ;;  %v875_v7 = vadd.f32 %v805_v22, %v804_v23  ;;  %v854_v48 = vadd.f32 %v791_v44, %v790_v53 }
  0xba   : > { %v3740_v51 = vpop.f32.mrf.mxu3  ;;  %2869 = vtanh.f32 %v623_v52  ;;  %v810_v52 = vmul.f32 %v3650_v25, %v3705_v28  ;;  %v792_v25 = vmul.f32 %v3353_v32, %v3705_v28  ;;  %v803_v44 = vmul.f32 %v3547_v50, %v3708_v55 }
  0xbb   : > { %v2862_v46 = vpop.eup %2861  ;;  %v1151_v45 = vadd.f32 %v1150_v35, %v1062_v1  ;;  %855 = vadd.xlane.f32.xlu0 %v854_v48  ;;  %v337_v50 = vunpack.c.h.bf16 %v239_v21 }
  0xbc   : > { %v3738_v4 = vpop.eup %2863  ;;  %v1273_v63 = vpack.c.bf16 %v2862_v46, %v2860_v17  ;;  %v800_v17 = vmul.f32 %v3494_v29, %v3705_v28  ;;  %v811_v46 = vmul.f32 %v3663_v59, %v3708_v55  ;;  %v793_v59 = vmul.f32 %v3360_v39, %v3708_v55 }
  0xbd   : > { %v2866_v20 = vpop.eup %2865  ;;  %864 = vadd.xlane.f32.xlu1 %v863_v5  ;;  %2871 = vtanh.f32 %v1151_v45  ;;  %v802_v39 = vmul.f32 %v3540_v62, %v3705_v28 }
  0xbe   : > { %1345 = vmatmul.bf16.vlgmr.msra.gmra.mxu2 %v1273_v63  ;;  %v768_v18 = vpack.c.bf16 %v2866_v20, %v3738_v4  ;;  %v869_v35 = vadd.f32 %v801_v12, %v800_v17  ;;  %v884_v5 = vadd.f32 %v811_v46, %v810_v52  ;;  %v813_v17 = vmul.f32 %v3665_v6, %v3708_v55 }
  0xbf   : > { %v3750_v42 = vpop.eup %2867  ;;  %v816_v12 = vmul.f32 %v2866_v20, %v3705_v28  ;;  %v857_v32 = vadd.f32 %v793_v59, %v792_v25  ;;  %v872_v25 = vadd.f32 %v803_v44, %v802_v39 }
  0xc0   : > { %v1063_v26 = vpop.f32.mrf.mxu0  ;;  %1085 = vmatmul.bf16.gmra.mxu0 %v768_v18  ;;  %v2870_v57 = vpop.eup %2869  ;;  %870 = vadd.xlane.f32.xlu2 %v869_v35 }
  0xc1   : > { %v1152_v60 = vpop.f32.mrf.mxu1  ;;  %v1064_v13 = vadd.f32 %v1063_v26, %v3685_v19  ;;  %v769_v29 = vpack.c.bf16 %v2870_v57, %v3750_v42  ;;  %v234_v26 = vld [vmem:[%s3248_s11 + $0xe0] sm:$0xff]  ;;  %v817_v23 = vmul.f32 %v2870_v57, %v3708_v55 }
  0xc2   : > { %v3754_v3 = vpop.f32.mrf.mxu3  ;;  %v326_v35 = vunpack.c.l.bf16 %v234_v26 }
  0xc3   : > { %v1153_v54 = vadd.f32 %v1152_v60, %v1064_v13  ;;  %1174 = vmatmul.bf16.gmra.mxu1 %v769_v29  ;;  %v2872_v37 = vpop.eup %2871  ;;  %v812_v60 = vmul.f32 %v3657_v31, %v3705_v28  ;;  %v235_v13 = vld [vmem:[%s3248_s11 + $0xe8] sm:$0xff]  ;;  %v238_v31 = vld [vmem:[%s3248_s11 + $0x100] sm:$0xff]  ;;  %858 = vadd.xlane.f32.xlu0 %v857_v32  ;;  %v893_v20 = vadd.f32 %v817_v23, %v816_v12 }
  0xc4   : > { %v328_v6 = vunpack.c.l.bf16 %v235_v13  ;;  %v329_v57 = vunpack.c.h.bf16 %v235_v13  ;;  %v428_v2 = vmul.f32 %v3251_v8, %v326_v35  ;;  %v334_v46 = vunpack.c.l.bf16 %v238_v31 }
  0xc5   : > { %2873 = vtanh.f32 %v1153_v54  ;;  %876 = vadd.xlane.f32.xlu1 %v875_v7  ;;  %v327_v7 = vunpack.c.h.bf16 %v234_v26  ;;  %v887_v53 = vadd.f32 %v813_v17, %v812_v60  ;;  %v241_v26 = vld [vmem:[%s3248_s11 + $0x118] sm:$0xff]  ;;  %v499_v13 = vmul.f32 %v3266_v15, %v337_v50 }
  0xc6   : > { %v494_v52 = vmul.f32 %v3254_v9, %v328_v6  ;;  %v808_v12 = vmul.f32 %v3589_v36, %v3705_v28  ;;  %v341_v44 = vunpack.c.h.bf16 %v241_v26  ;;  %v244_v6 = vld [vmem:[%s3248_s11 + $0x130] sm:$0xff] }
  0xc7   : > { %v429_v48 = vmul.f32 %v3263_v14, %v327_v7 }
  0xc8   : > { %v1066_v27 = vpop.f32.mrf.mxu0  ;;  %879 = vadd.xlane.f32.xlu2 %v878_v34 }
  0xc9   : > { %v1155_v1 = vpop.f32.mrf.mxu1  ;;  %v1067_v24 = vadd.f32 %v1066_v27, %v3685_v19  ;;  %v335_v27 = vunpack.c.h.bf16 %v238_v31  ;;  %v340_v31 = vunpack.c.l.bf16 %v241_v26 }
  0xca   : > { %v3770_v18 = vpop.f32.mrf.mxu3 }
  0xcb   : > { %v2874_v63 = vpop.eup %2873  ;;  %v1156_v41 = vadd.f32 %v1155_v1, %v1067_v24  ;;  %v495_v1 = vmul.f32 %v3266_v15, %v329_v57  ;;  %873 = vadd.xlane.f32.xlu0 %v872_v25  ;;  %v245_v57 = vld [vmem:[%s3248_s11 + $0x138] sm:$0xff] }
  0xcc   : > { %v1274_v45 = vpack.c.bf16 %v2874_v63, %v2872_v37  ;;  %v336_v37 = vunpack.c.l.bf16 %v239_v21  ;;  %v558_v63 = vadd.f32 %v494_v52, %v428_v2  ;;  %v500_v52 = vmul.f32 %v3254_v9, %v340_v31 }
  0xcd   : > { %2875 = vtanh.f32 %v1156_v41  ;;  %885 = vadd.xlane.f32.xlu1 %v884_v5  ;;  %v432_v41 = vmul.f32 %v3251_v8, %v334_v46  ;;  %v433_v5 = vmul.f32 %v3263_v14, %v335_v27  ;;  %v559_v59 = vadd.f32 %v495_v1, %v429_v48 }
  0xce   : > { %1350 = vmatmul.bf16.gmra.mxu2 %v1274_v45  ;;  %v240_v45 = vld [vmem:[%s3248_s11 + $0x110] sm:$0xff]  ;;  %v498_v60 = vmul.f32 %v3254_v9, %v336_v37  ;;  %v624_v17 = vadd.f32 %v3257_v10, %v558_v63  ;;  %v501_v46 = vmul.f32 %v3266_v15, %v341_v44  ;;  %v346_v27 = vunpack.c.l.bf16 %v244_v6 }
  0xcf   : > { %v338_v23 = vunpack.c.l.bf16 %v240_v45  ;;  %v625_v35 = vadd.f32 %v3269_v16, %v559_v59  ;;  %v563_v7 = vadd.f32 %v499_v13, %v433_v5  ;;  %v347_v1 = vunpack.c.h.bf16 %v244_v6 }
  0xd0   : > { %v1068_v22 = vpop.f32.mrf.mxu0  ;;  %888 = vadd.xlane.f32.xlu2 %v887_v53  ;;  %v562_v39 = vadd.f32 %v498_v60, %v432_v41  ;;  %v809_v53 = vmul.f32 %v3593_v30, %v3708_v55  ;;  %v348_v41 = vunpack.c.l.bf16 %v245_v57  ;;  %v438_v26 = vmul.f32 %v3251_v8, %v346_v27 }
  0xd1   : > { %v1157_v54 = vpop.f32.mrf.mxu1  ;;  %v1069_v29 = vadd.f32 %v1068_v22, %v3685_v19  ;;  %v339_v22 = vunpack.c.h.bf16 %v240_v45  ;;  %v629_v21 = vadd.f32 %v3269_v16, %v563_v7  ;;  %v349_v45 = vunpack.c.h.bf16 %v245_v57 }
  0xd2   : > { %v3795_v34 = vpop.f32.mrf.mxu3  ;;  %v628_v36 = vadd.f32 %v3257_v10, %v562_v39  ;;  %v881_v5 = vadd.f32 %v809_v53, %v808_v12  ;;  %v439_v60 = vmul.f32 %v3263_v14, %v347_v1  ;;  %v504_v13 = vmul.f32 %v3254_v9, %v348_v41 }
  0xd3   : > { %v1158_v62 = vadd.f32 %v1157_v54, %v1069_v29  ;;  %v2876_v24 = vpop.eup %2875  ;;  %v815_v6 = vmul.f32 %v3750_v42, %v3708_v55 }
  0xd4   : > { %v568_v31 = vadd.f32 %v504_v13, %v438_v26  ;;  %882 = vadd.xlane.f32.xlu0 %v881_v5 }
  0xd5   : > { %2877 = vtanh.f32 %v1158_v62  ;;  %894 = vadd.xlane.f32.xlu1 %v893_v20  ;;  %v434_v20 = vmul.f32 %v3251_v8, %v338_v23  ;;  %v435_v62 = vmul.f32 %v3263_v14, %v339_v22 }
  0xd6   : > { %2879 = vtanh.f32 %v624_v17  ;;  %v246_v17 = vld [vmem:[%s3248_s11 + $0x140] sm:$0xff] }
  0xd7   : > { %2881 = vtanh.f32 %v625_v35  ;;  %v564_v50 = vadd.f32 %v500_v52, %v434_v20  ;;  %v565_v63 = vadd.f32 %v501_v46, %v435_v62  ;;  %v814_v35 = vmul.f32 %v3738_v4, %v3705_v28 }
  0xd8   : > { %v1071_v54 = vpop.f32.mrf.mxu0  ;;  %2883 = vtanh.f32 %v628_v36  ;;  %v350_v36 = vunpack.c.l.bf16 %v246_v17  ;;  %v351_v52 = vunpack.c.h.bf16 %v246_v17 }
  0xd9   : > { %v1160_v32 = vpop.f32.mrf.mxu1  ;;  %v1072_v29 = vadd.f32 %v1071_v54, %v3685_v19  ;;  %2885 = vtanh.f32 %v629_v21  ;;  %v630_v59 = vadd.f32 %v3257_v10, %v564_v50  ;;  %v250_v21 = vld [vmem:[%s3248_s11 + $0x160] sm:$0xff]  ;;  %v251_v50 = vld [vmem:[%s3248_s11 + $0x168] sm:$0xff]  ;;  %v890_v5 = vadd.f32 %v815_v6, %v814_v35 }
  0xda   : > { %v3818_v37 = vpop.f32.mrf.mxu3  ;;  %v440_v1 = vmul.f32 %v3251_v8, %v350_v36  ;;  %v359_v13 = vunpack.c.h.bf16 %v250_v21  ;;  %v360_v35 = vunpack.c.l.bf16 %v251_v50 }
  0xdb   : > { %v2878_v2 = vpop.eup %2877  ;;  %v1161_v48 = vadd.f32 %v1160_v32, %v1072_v29  ;;  %v505_v32 = vmul.f32 %v3266_v15, %v349_v45  ;;  %v247_v29 = vld [vmem:[%s3248_s11 + $0x148] sm:$0xff]  ;;  %v441_v45 = vmul.f32 %v3263_v14, %v351_v52 }
  0xdc   : > { %v1275_v30 = vpack.c.bf16 %v2878_v2, %v2876_v24  ;;  %v3821_v25 = vpop.eup %2879  ;;  %v631_v24 = vadd.f32 %v3269_v16, %v565_v63  ;;  %v634_v2 = vadd.f32 %v3257_v10, %v568_v31  ;;  %v352_v46 = vunpack.c.l.bf16 %v247_v29  ;;  %891 = vadd.xlane.f32.xlu0 %v890_v5 }
  0xdd   : > { %v3828_v23 = vpop.eup %2881  ;;  %2887 = vtanh.f32 %v1161_v48  ;;  %v818_v54 = vmul.f32 %v3821_v25, %v3705_v28  ;;  %v569_v44 = vadd.f32 %v505_v32, %v439_v60  ;;  %v358_v63 = vunpack.c.l.bf16 %v250_v21 }
  0xde   : > { %1355 = vmatmul.bf16.gmra.mxu2 %v1275_v30  ;;  %v819_v7 = vmul.f32 %v3828_v23, %v3708_v55  ;;  %2889 = vtanh.f32 %v630_v59  ;;  %v3839_v53 = vpop.eup %2883  ;;  %v353_v30 = vunpack.c.h.bf16 %v247_v29  ;;  %v506_v26 = vmul.f32 %v3254_v9, %v352_v46 }
  0xdf   : > { %2891 = vtanh.f32 %v631_v24  ;;  %v822_v57 = vmul.f32 %v3839_v53, %v3705_v28  ;;  %v3847_v48 = vpop.eup %2885  ;;  %v635_v62 = vadd.f32 %v3269_v16, %v569_v44  ;;  %v444_v6 = vmul.f32 %v3251_v8, %v358_v63 }
  0xe0   : > { %v1073_v22 = vpop.f32.mrf.mxu0  ;;  %v896_v20 = vadd.f32 %v819_v7, %v818_v54  ;;  %v823_v42 = vmul.f32 %v3847_v48, %v3708_v55  ;;  %v507_v60 = vmul.f32 %v3266_v15, %v353_v30  ;;  %v570_v32 = vadd.f32 %v506_v26, %v440_v1  ;;  %v236_v7 = vld [vmem:[%s3248_s11 + $0xf0] sm:$0xff] }
  0xe1   : > { %v1162_v12 = vpop.f32.mrf.mxu1  ;;  %v1074_v39 = vadd.f32 %v1073_v22, %v3685_v19  ;;  %v445_v21 = vmul.f32 %v3263_v14, %v359_v13  ;;  %v330_v30 = vunpack.c.l.bf16 %v236_v7  ;;  %v252_v13 = vld [vmem:[%s3248_s11 + $0x170] sm:$0xff] }
  0xe2   : > { %v3850_v27 = vpop.f32.mrf.mxu3  ;;  %897 = vadd.xlane.f32.xlu2 %v896_v20  ;;  %v902_v24 = vadd.f32 %v823_v42, %v822_v57  ;;  %v571_v44 = vadd.f32 %v507_v60, %v441_v45  ;;  %v636_v36 = vadd.f32 %v3257_v10, %v570_v32  ;;  %v237_v57 = vld [vmem:[%s3248_s11 + $0xf8] sm:$0xff] }
  0xe3   : > { %v1163_v4 = vadd.f32 %v1162_v12, %v1074_v39  ;;  %v2888_v41 = vpop.eup %2887  ;;  %v361_v39 = vunpack.c.h.bf16 %v251_v50  ;;  %v332_v60 = vunpack.c.l.bf16 %v237_v57  ;;  %v430_v32 = vmul.f32 %v3251_v8, %v330_v30 }
  0xe4   : > { %v3858_v59 = vpop.eup %2889  ;;  %903 = vadd.xlane.f32.xlu1 %v902_v24  ;;  %v637_v46 = vadd.f32 %v3269_v16, %v571_v44  ;;  %v331_v24 = vunpack.c.h.bf16 %v236_v7 }
  0xe5   : > { %2893 = vtanh.f32 %v1163_v4  ;;  %v3861_v17 = vpop.eup %2891  ;;  %v824_v54 = vmul.f32 %v3858_v59, %v3705_v28  ;;  %v510_v4 = vmul.f32 %v3254_v9, %v360_v35  ;;  %v511_v20 = vmul.f32 %v3266_v15, %v361_v39  ;;  %v253_v39 = vld [vmem:[%s3248_s11 + $0x178] sm:$0xff] }
  0xe6   : > { %2895 = vtanh.f32 %v634_v2  ;;  %v825_v29 = vmul.f32 %v3861_v17, %v3708_v55  ;;  %v431_v35 = vmul.f32 %v3263_v14, %v331_v24  ;;  %v496_v44 = vmul.f32 %v3254_v9, %v332_v60 }
  0xe7   : > { %2897 = vtanh.f32 %v635_v62  ;;  %v574_v50 = vadd.f32 %v510_v4, %v444_v6  ;;  %v575_v63 = vadd.f32 %v511_v20, %v445_v21  ;;  %v362_v6 = vunpack.c.l.bf16 %v252_v13 }
  0xe8   : > { %v1076_v22 = vpop.f32.mrf.mxu0  ;;  %v905_v52 = vadd.f32 %v825_v29, %v824_v54  ;;  %2899 = vtanh.f32 %v636_v36  ;;  %v333_v54 = vunpack.c.h.bf16 %v237_v57  ;;  %v363_v4 = vunpack.c.h.bf16 %v252_v13 }
  0xe9   : > { %v1165_v12 = vpop.f32.mrf.mxu1  ;;  %v1077_v31 = vadd.f32 %v1076_v22, %v3685_v19  ;;  %v640_v22 = vadd.f32 %v3257_v10, %v574_v50  ;;  %v560_v57 = vadd.f32 %v496_v44, %v430_v32  ;;  %v1117_v24 = vadd.f32 %v3722_v56, %v3685_v19  ;;  %v243_v56 = vld [vmem:[%s3248_s11 + $0x128] sm:$0xff] }
  0xea   : > { %v3880_v45 = vpop.f32.mrf.mxu3  ;;  %906 = vadd.xlane.f32.xlu2 %v905_v52  ;;  %v497_v21 = vmul.f32 %v3266_v15, %v333_v54  ;;  %v446_v52 = vmul.f32 %v3251_v8, %v362_v6 }
  0xeb   : > { %v2894_v2 = vpop.eup %2893  ;;  %v1166_v62 = vadd.f32 %v1165_v12, %v1077_v31  ;;  %v641_v12 = vadd.f32 %v3269_v16, %v575_v63  ;;  %v447_v63 = vmul.f32 %v3263_v14, %v363_v4  ;;  %v626_v60 = vadd.f32 %v3257_v10, %v560_v57 }
  0xec   : > { %v3876_v42 = vpop.eup %2895  ;;  %v1276_v1 = vpack.c.bf16 %v2894_v2, %v2888_v41  ;;  %v364_v2 = vunpack.c.l.bf16 %v253_v39  ;;  %v561_v50 = vadd.f32 %v497_v21, %v431_v35 }
  0xed   : > { %v3878_v5 = vpop.eup %2897  ;;  %2901 = vtanh.f32 %v1166_v62  ;;  %v828_v26 = vmul.f32 %v3876_v42, %v3705_v28  ;;  %v365_v62 = vunpack.c.h.bf16 %v253_v39 }
  0xee   : > { %1360 = vmatmul.bf16.gmra.mxu2 %v1276_v1  ;;  %v829_v41 = vmul.f32 %v3878_v5, %v3708_v55  ;;  %2903 = vtanh.f32 %v637_v46  ;;  %v3895_v20 = vpop.eup %2899  ;;  %v512_v13 = vmul.f32 %v3254_v9, %v364_v2  ;;  %v627_v54 = vadd.f32 %v3269_v16, %v561_v50 }
  0xef   : > { %2905 = vtanh.f32 %v640_v22  ;;  %v830_v1 = vmul.f32 %v3895_v20, %v3705_v28  ;;  %v841_v50 = vmul.f32 %v3601_v0, %v3708_v55 }
  0xf0   : > { %v911_v31 = vadd.f32 %v829_v41, %v828_v26  ;;  %v1078_v29 = vpop.f32.mrf.mxu0  ;;  %2907 = vtanh.f32 %v641_v12  ;;  %v513_v41 = vmul.f32 %v3266_v15, %v365_v62  ;;  %v576_v35 = vadd.f32 %v512_v13, %v446_v52 }
  0xf1   : > { %v1167_v7 = vpop.f32.mrf.mxu1  ;;  %v1079_v36 = vadd.f32 %v1078_v29, %v3685_v19  ;;  %v344_v52 = vunpack.c.l.bf16 %v243_v56 }
  0xf2   : > { %912 = vadd.xlane.f32.xlu1 %v911_v31  ;;  %v1205_v22 = vpop.f32.mrf.mxu3  ;;  %v577_v39 = vadd.f32 %v513_v41, %v447_v63  ;;  %v242_v31 = vld [vmem:[%s3248_s11 + $0x120] sm:$0xff]  ;;  %v642_v4 = vadd.f32 %v3257_v10, %v576_v35 }
  0xf3   : > { %v2902_v46 = vpop.eup %2901  ;;  %v1168_v30 = vadd.f32 %v1167_v7, %v1079_v36  ;;  %v1119_v7 = vadd.f32 %v3740_v51, %v3685_v19  ;;  %v1206_v36 = vadd.f32 %v1205_v22, %v1117_v24  ;;  %v342_v2 = vunpack.c.l.bf16 %v242_v31 }
  0xf4   : > { %v3901_v26 = vpop.eup %2903  ;;  %v643_v57 = vadd.f32 %v3269_v16, %v577_v39  ;;  %v343_v62 = vunpack.c.h.bf16 %v242_v31  ;;  %v502_v13 = vmul.f32 %v3254_v9, %v344_v52 }
  0xf5   : > { %2909 = vtanh.f32 %v1168_v30  ;;  %v831_v12 = vmul.f32 %v3901_v26, %v3708_v55  ;;  %v3911_v32 = vpop.eup %2905  ;;  %v345_v30 = vunpack.c.h.bf16 %v243_v56  ;;  %v436_v24 = vmul.f32 %v3251_v8, %v342_v2  ;;  %v249_v56 = vld [vmem:[%s3248_s11 + $0x158] sm:$0xff] }
  0xf6   : > { %2911 = vtanh.f32 %v626_v60  ;;  %v3915_v29 = vpop.eup %2907  ;;  %v834_v6 = vmul.f32 %v3911_v32, %v3705_v28  ;;  %v437_v60 = vmul.f32 %v3263_v14, %v343_v62 }
  0xf7   : > { %v914_v44 = vadd.f32 %v831_v12, %v830_v1  ;;  %2913 = vtanh.f32 %v627_v54  ;;  %v835_v21 = vmul.f32 %v3915_v29, %v3708_v55  ;;  %v840_v1 = vmul.f32 %v3416_v38, %v3705_v28  ;;  %v248_v54 = vld [vmem:[%s3248_s11 + $0x150] sm:$0xff] }
  0xf8   : > { %2915 = vtanh.f32 %v642_v4  ;;  %v503_v12 = vmul.f32 %v3266_v15, %v345_v30  ;;  %v566_v31 = vadd.f32 %v502_v13, %v436_v24  ;;  %v354_v2 = vunpack.c.l.bf16 %v248_v54 }
  0xf9   : > { %915 = vadd.xlane.f32.xlu2 %v914_v44  ;;  %v920_v51 = vadd.f32 %v835_v21, %v834_v6  ;;  %2917 = vtanh.f32 %v643_v57 }
  0xfa   : > { %2919 = vtanh.f32 %v1206_v36  ;;  %v1207_v38 = vpop.f32.mrf.mxu3  ;;  %v567_v21 = vadd.f32 %v503_v12, %v437_v60  ;;  %v632_v57 = vadd.f32 %v3257_v10, %v566_v31  ;;  %v355_v36 = vunpack.c.h.bf16 %v248_v54 }
  0xfb   : > { %v2910_v63 = vpop.eup %2909  ;;  %921 = vadd.xlane.f32.xlu1 %v920_v51  ;;  %v1208_v44 = vadd.f32 %v1207_v38, %v1119_v7  ;;  %v356_v7 = vunpack.c.l.bf16 %v249_v56 }
  0xfc   : > { %v2912_v41 = vpop.eup %2911  ;;  %v1277_v22 = vpack.c.bf16 %v2910_v63, %v2902_v46  ;;  %v929_v46 = vadd.f32 %v841_v50, %v840_v1  ;;  %v442_v1 = vmul.f32 %v3251_v8, %v354_v2  ;;  %v443_v63 = vmul.f32 %v3263_v14, %v355_v36 }
  0xfd   : > { %v2914_v35 = vpop.eup %2913  ;;  %v820_v0 = vmul.f32 %v2912_v41, %v3705_v28  ;;  %v770_v39 = vpack.c.bf16 %v2912_v41, %v3821_v25  ;;  %2921 = vtanh.f32 %v1208_v44  ;;  %v633_v25 = vadd.f32 %v3269_v16, %v567_v21  ;;  %v4661_v21 = vld [vmem:[#allocation7_spill] sm:$0xff] }
  0xfe   : > { %v821_v6 = vmul.f32 %v2914_v35, %v3708_v55  ;;  %1365 = vmatmul.bf16.gmra.mxu2 %v1277_v22  ;;  %v771_v4 = vpack.c.bf16 %v2914_v35, %v3828_v23  ;;  %v3940_v62 = vpop.eup %2915  ;;  %2923 = vtanh.f32 %v632_v57  ;;  %v357_v23 = vunpack.c.h.bf16 %v249_v56 }
  0xff   : > { %1090 = vmatmul.bf16.gmra.mxu0 %v770_v39  ;;  %v3943_v30 = vpop.eup %2917  ;;  %v836_v51 = vmul.f32 %v3940_v62, %v3705_v28  ;;  %2925 = vtanh.f32 %v633_v25  ;;  %v508_v24 = vmul.f32 %v3254_v9, %v356_v7  ;;  %v846_v22 = vmul.f32 %v3531_v33, %v3705_v28  ;;  %v4663_v7 = vld [vmem:[#allocation5_spill] sm:$0xff] }
 0x100   : > { %v899_v52 = vadd.f32 %v821_v6, %v820_v0  ;;  %1179 = vmatmul.bf16.gmra.mxu1 %v771_v4  ;;  %v837_v50 = vmul.f32 %v3943_v30, %v3708_v55  ;;  %v2920_v60 = vpop.eup %2919  ;;  %v509_v13 = vmul.f32 %v3266_v15, %v357_v23  ;;  %v847_v8 = vmul.f32 %v3674_v61, %v3708_v55  ;;  %v1081_v23 = vpop.f32.mrf.mxu0 }
 0x101   : > { %v572_v12 = vadd.f32 %v508_v24, %v442_v1  ;;  %v842_v14 = vmul.f32 %v3463_v43, %v3705_v28  ;;  %v843_v9 = vmul.f32 %v3636_v47, %v3708_v55  ;;  %v848_v6 = vmul.f32 %v3534_v40, %v3705_v28  ;;  %v4662_v40 = vld [vmem:[#allocation2_spill] sm:$0xff]  ;;  %v1170_v24 = vpop.f32.mrf.mxu1 }
 0x102   : > { %900 = vadd.xlane.f32.xlu0 %v899_v52  ;;  %v923_v41 = vadd.f32 %v837_v50, %v836_v51  ;;  %v573_v54 = vadd.f32 %v509_v13, %v443_v63  ;;  %v938_v31 = vadd.f32 %v847_v8, %v846_v22  ;;  %v849_v4 = vmul.f32 %v4661_v21, %v3708_v55  ;;  %v1210_v1 = vpop.f32.mrf.mxu3  ;;  %v4665_v8 = vld [vmem:[#allocation6_spill] sm:$0xff] }
 0x103   : > { %930 = vadd.xlane.f32.xlu1 %v929_v46  ;;  %v2922_v35 = vpop.eup %2921  ;;  %v638_v15 = vadd.f32 %v3257_v10, %v572_v12  ;;  %v932_v47 = vadd.f32 %v843_v9, %v842_v14  ;;  %v852_v10 = vmul.f32 %v3572_v58, %v3705_v28  ;;  %v3172_v46 = vmov 64  }
 0x104   : > { %924 = vadd.xlane.f32.xlu2 %v923_v41  ;;  %v3962_v38 = vpop.eup %2923  ;;  %v1285_v0 = vpack.c.bf16 %v2922_v35, %v2920_v60  ;;  %v639_v33 = vadd.f32 %v3269_v16, %v573_v54  ;;  %v853_v16 = vmul.f32 %v3711_v11, %v3708_v55  ;;  %2776 = vset.pattern.permute.xlu1 %v3172_v46  ;;  %v4664_v41 = vld [vmem:[#allocation3_spill] sm:$0xff] }
 0x105   : > { %v3965_v39 = vpop.eup %2925  ;;  %v826_v61 = vmul.f32 %v3962_v38, %v3705_v28  ;;  %2927 = vtanh.f32 %v638_v15  ;;  %2777 = vset.pattern.permute.xlu2 %v3172_v46  ;;  %2778 = vset.pattern.permute.xlu0 %v3172_v46  ;;  %v941_v52 = vadd.f32 %v849_v4, %v848_v6  ;;  %v838_v25 = vmul.f32 %v4662_v40, %v3705_v28 }
 0x106   : > { %1405 = vmatmul.bf16.vlgmr.msra.gmra.mxu3 %v1285_v0  ;;  %v827_v43 = vmul.f32 %v3965_v39, %v3708_v55  ;;  %2929 = vtanh.f32 %v639_v33  ;;  %v947_v2 = vadd.f32 %v853_v16, %v852_v10  ;;  %v839_v51 = vmul.f32 %v4663_v7, %v3708_v55 }
 0x107   : > { %v1122_v50 = vadd.f32 %v3754_v3, %v3685_v19  ;;  %v1082_v60 = vadd.f32 %v1081_v23, %v3685_v19  ;;  %v1124_v13 = vadd.f32 %v3770_v18, %v3685_v19  ;;  %v844_v22 = vmul.f32 %v4664_v41, %v3705_v28  ;;  %v4666_v18 = vld [vmem:[#allocation4_spill] sm:$0xff] }
 0x108   : > { %v908_v56 = vadd.f32 %v827_v43, %v826_v61  ;;  %v926_v63 = vadd.f32 %v839_v51, %v838_v25  ;;  %v845_v12 = vmul.f32 %v4665_v8, %v3708_v55  ;;  %v1083_v14 = vpop.f32.mrf.mxu0  ;;  %v851_v43 = vmul.f32 %v3701_v49, %v3708_v55 }
 0x109   : > { %v1211_v54 = vadd.f32 %v1210_v1, %v1122_v50  ;;  %v1171_v35 = vadd.f32 %v1170_v24, %v1082_v60  ;;  %v1084_v9 = vadd.f32 %v1083_v14, %v3685_v19  ;;  %v1172_v0 = vpop.f32.mrf.mxu1  ;;  %v1127_v6 = vadd.f32 %v3795_v34, %v3685_v19  ;;  %v4026_v14 = vld [vmem:[%s4645_s1] sm:$0xff] }
 0x10a   : > { %909 = vadd.xlane.f32.xlu0 %v908_v56  ;;  %v1212_v3 = vpop.f32.mrf.mxu3  ;;  %v935_v15 = vadd.f32 %v845_v12, %v844_v22  ;;  %v1129_v49 = vadd.f32 %v3818_v37, %v3685_v19  ;;  %v774_v1 = vpack.c.bf16 %v3876_v42, %v3962_v38  ;;  %v775_v22 = vpack.c.bf16 %v3878_v5, %v3965_v39 }
 0x10b   : > { %939 = vadd.xlane.f32.xlu1 %v938_v31  ;;  %v3975_v44 = vpop.eup %2927  ;;  %2931 = vtanh.f32 %v1211_v54  ;;  %v1213_v33 = vadd.f32 %v1212_v3, %v1124_v13  ;;  %v1173_v61 = vadd.f32 %v1172_v0, %v1084_v9  ;;  %v850_v31 = vmul.f32 %v4666_v18, %v3705_v28 }
 0x10c   : > { %933 = vadd.xlane.f32.xlu2 %v932_v47  ;;  %v3981_v57 = vpop.eup %2929  ;;  %v832_v58 = vmul.f32 %v3975_v44, %v3705_v28  ;;  %2933 = vtanh.f32 %v1171_v35  ;;  %v773_v28 = vpack.c.bf16 %v3861_v17, %v3847_v48  ;;  %v1134_v48 = vadd.f32 %v3880_v45, %v3685_v19 }
 0x10d   : > { %v833_v11 = vmul.f32 %v3981_v57, %v3708_v55  ;;  %2935 = vtanh.f32 %v1213_v33  ;;  %v944_v21 = vadd.f32 %v851_v43, %v850_v31  ;;  %v4029_v9 = vperm.slane %v4026_v14, 4 }
 0x10e   : > { %2937 = vtanh.f32 %v1173_v61  ;;  %v4036_v33 = vperm.slane %v4026_v14, 6 }
 0x10f   : > { %v917_v36 = vadd.f32 %v833_v11, %v832_v58  ;;  %v772_v58 = vpack.c.bf16 %v3858_v59, %v3839_v53  ;;  %v1132_v59 = vadd.f32 %v3850_v27, %v3685_v19 }
 0x110   : > { %1184 = vmatmul.bf16.gmra.mxu1 %v773_v28 }
 0x111   : > { %v2932_v47 = vpop.eup %2931  ;;  %1095 = vmatmul.bf16.gmra.mxu0 %v772_v58 }
 0x112   : > { %918 = vadd.xlane.f32.xlu0 %v917_v36  ;;  %v2934_v56 = vpop.eup %2933  ;;  %v1215_v10 = vpop.f32.mrf.mxu3 }
 0x113   : > { %948 = vadd.xlane.f32.xlu1 %v947_v2  ;;  %v2936_v16 = vpop.eup %2935  ;;  %v1216_v55 = vadd.f32 %v1215_v10, %v1127_v6 }
 0x114   : > { %942 = vadd.xlane.f32.xlu2 %v941_v52  ;;  %v2938_v4 = vpop.eup %2937  ;;  %v1286_v46 = vpack.c.bf16 %v2936_v16, %v2932_v47 }
 0x115   : > { %v1278_v11 = vpack.c.bf16 %v2938_v4, %v2934_v56  ;;  %2939 = vtanh.f32 %v1216_v55 }
 0x116   : > { %1410 = vmatmul.bf16.gmra.mxu3 %v1286_v46 }
 0x117   : > { %1370 = vmatmul.bf16.gmra.mxu2 %v1278_v11 }
 0x11a   : > { %927 = vadd.xlane.f32.xlu0 %v926_v63  ;;  %v1217_v34 = vpop.f32.mrf.mxu3 }
 0x11b   : > { %v1218_v2 = vadd.f32 %v1217_v34, %v1129_v49  ;;  %v2940_v36 = vpop.eup %2939 }
 0x11d   : > { %2941 = vtanh.f32 %v1218_v2 }
 0x120   : > { %1189 = vmatmul.bf16.gmra.mxu1 %v775_v22 }
 0x121   : > { %1100 = vmatmul.bf16.gmra.mxu0 %v774_v1 }
 0x122   : > { %936 = vadd.xlane.f32.xlu0 %v935_v15 }
 0x123   : > { %v2942_v53 = vpop.eup %2941 }
 0x124   : > { %v1287_v40 = vpack.c.bf16 %v2942_v53, %v2940_v36  ;;  %v776_v53 = vpack.c.bf16 %v3975_v44, %v3895_v20 }
 0x126   : > { %1415 = vmatmul.bf16.gmra.mxu3 %v1287_v40  ;;  %v777_v40 = vpack.c.bf16 %v3981_v57, %v3901_v26 }
 0x128   : > { %v4039_v18 = vpop.xlane.xlu1 %861 }
 0x129   : > { %v4056_v11 = vpop.xlane.xlu2 %867 }
 0x12a   : > { %945 = vadd.xlane.f32.xlu0 %v944_v21 }
 0x12e   : > { %v4044_v56 = vpop.xlane.xlu0 %855 }
 0x130   : > { %v1220_v52 = vpop.f32.mrf.mxu3  ;;  %v4049_v6 = vpop.xlane.xlu1 %864  ;;  %1194 = vmatmul.bf16.gmra.mxu1 %v777_v40 }
 0x131   : > { %v1221_v37 = vadd.f32 %v1220_v52, %v1132_v59  ;;  %1105 = vmatmul.bf16.gmra.mxu0 %v776_v53 }
 0x133   : > { %2943 = vtanh.f32 %v1221_v37 }
 0x136   : > { %v4052_v46 = vpop.xlane.xlu0 %858 }
 0x138   : > { %v1222_v25 = vpop.f32.mrf.mxu3  ;;  %v4061_v2 = vpop.xlane.xlu1 %876 }
 0x139   : > { %v1223_v51 = vadd.f32 %v1222_v25, %v1134_v48  ;;  %v2944_v63 = vpop.eup %2943 }
 0x13b   : > { %2945 = vtanh.f32 %v1223_v51 }
 0x13d   : > { %v1086_v17 = vpop.f32.mrf.mxu0 }
 0x13e   : > { %v1087_v50 = vadd.f32 %v1086_v17, %v3685_v19  ;;  %v4069_v48 = vpop.xlane.xlu0 %873  ;;  %v4071_v17 = vpop.xlane.xlu2 %870 }
 0x140   : > { %v1175_v23 = vpop.f32.mrf.mxu1  ;;  %v4074_v20 = vpop.xlane.xlu1 %885 }
 0x141   : > { %v1346_v7 = vpop.f32.mrf.mxu2  ;;  %v2946_v24 = vpop.eup %2945  ;;  %v1176_v45 = vadd.f32 %v1175_v23, %v1087_v50 }
 0x142   : > { %1626 = vperm.xlu1 %2776, %v1346_v7   ;;  %v1288_v41 = vpack.c.bf16 %v2946_v24, %v2944_v63  ;;  %v1427_v15 = vadd.f32 %v4029_v9, %v1346_v7 }
 0x143   : > { %2947 = vtanh.f32 %v1176_v45 }
 0x144   : > { %1420 = vmatmul.bf16.gmra.mxu3 %v1288_v41 }
 0x145   : > { %v1088_v27 = vpop.f32.mrf.mxu0 }
 0x146   : > { %v1089_v13 = vadd.f32 %v1088_v27, %v3685_v19  ;;  %v4081_v50 = vpop.xlane.xlu2 %879 }
 0x147   : > { %v4078_v57 = vpop.xlane.xlu0 %882 }
 0x148   : > { %v1177_v8 = vpop.f32.mrf.mxu1  ;;  %v4083_v24 = vpop.xlane.xlu1 %894 }
 0x149   : > { %v1348_v60 = vpop.f32.mrf.mxu2  ;;  %v1178_v12 = vadd.f32 %v1177_v8, %v1089_v13  ;;  %v2948_v38 = vpop.eup %2947 }
 0x14a   : > { %1631 = vperm.xlu2 %2777, %v1348_v60   ;;  %v1428_v43 = vadd.f32 %v4029_v9, %v1348_v60 }
 0x14b   : > { %2949 = vtanh.f32 %v1178_v12 }
 0x14e   : > { %v4087_v45 = vpop.xlane.xlu2 %888 }
 0x14f   : > { %v4085_v60 = vpop.xlane.xlu0 %891 }
 0x151   : > { %v1351_v42 = vpop.f32.mrf.mxu2  ;;  %v2950_v54 = vpop.eup %2949 }
 0x152   : > { %1636 = vperm.xlu0 %2778, %v1351_v42   ;;  %v1279_v35 = vpack.c.bf16 %v2950_v54, %v2948_v38  ;;  %v1429_v39 = vadd.f32 %v4029_v9, %v1351_v42 }
 0x154   : > { %1375 = vmatmul.bf16.gmra.mxu2 %v1279_v35  ;;  %2951 = vtanh.f32 %v1429_v39  ;;  %v778_v35 = vpack.c.bf16 %v3940_v62, %v3911_v32  ;;  %v779_v39 = vpack.c.bf16 %v3943_v30, %v3915_v29 }
 0x155   : > { %2953 = vtanh.f32 %v1427_v15 }
 0x156   : > { %2955 = vtanh.f32 %v1428_v43  ;;  %v4098_v12 = vpop.xlane.xlu2 %897  ;;  %1110 = vmatmul.bf16.gmra.mxu0 %v778_v35  ;;  %1199 = vmatmul.bf16.gmra.mxu1 %v779_v39 }
 0x157   : > { %v4089_v13 = vpop.xlane.xlu1 %903 }
 0x159   : > { %v4031_v5 = vpop.f32.mrf.mxu2 }
 0x15a   : > { %v2952_v0 = vpop.eup %2951  ;;  %v1430_v42 = vadd.f32 %v4029_v9, %v4031_v5 }
 0x15b   : > { %v1494_v61 = vmul.f32 %v2952_v0, %v4036_v33  ;;  %v2954_v47 = vpop.eup %2953 }
 0x15c   : > { %v1492_v10 = vmul.f32 %v2954_v47, %v4036_v33  ;;  %v2956_v4 = vpop.eup %2955 }
 0x15d   : > { %v1493_v28 = vmul.f32 %v2956_v4, %v4036_v33 }
 0x161   : > { %v1356_v3 = vpop.f32.mrf.mxu2 }
 0x162   : > { %v1431_v21 = vadd.f32 %v4029_v9, %v1356_v3 }
 0x164   : > { %2957 = vtanh.f32 %v1431_v21 }
 0x165   : > { %v4102_v38 = vpop.xlane.xlu1 %912 }
 0x169   : > { %v4041_v31 = vpop.f32.mrf.mxu2 }
 0x16a   : > { %v2958_v34 = vpop.eup %2957 }
 0x16b   : > { %v1496_v59 = vmul.f32 %v2958_v34, %v4036_v33 }
 0x16c   : > { %1528 = vadd.xlane.f32.xlu1 %v1494_v61  ;;  %v4115_v61 = vpop.xlane.xlu2 %906 }
 0x16e   : > { %v4118_v43 = vpop.xlane.xlu1 %921 }
 0x171   : > { %v4047_v16 = vpop.f32.mrf.mxu2 }
 0x173   : > { %1524 = vadd.xlane.f32.xlu2 %v1492_v10 }
 0x174   : > { %v4125_v34 = vpop.xlane.xlu2 %915 }
 0x175   : > { %v4095_v8 = vpop.xlane.xlu0 %900 }
 0x179   : > { %v4054_v58 = vpop.f32.mrf.mxu2 }
 0x17a   : > { %v1434_v49 = vadd.f32 %v4029_v9, %v4054_v58 }
 0x17c   : > { %1526 = vadd.xlane.f32.xlu0 %v1493_v28  ;;  %v1091_v55 = vpop.f32.mrf.mxu0  ;;  %2959 = vtanh.f32 %v1434_v49 }
 0x17d   : > { %v1180_v36 = vpop.f32.mrf.mxu1  ;;  %v1092_v52 = vadd.f32 %v1091_v55, %v3685_v19 }
 0x17f   : > { %v1181_v37 = vadd.f32 %v1180_v36, %v1092_v52  ;;  %v4127_v36 = vpop.xlane.xlu1 %930 }
 0x181   : > { %2961 = vtanh.f32 %v1181_v37  ;;  %v4091_v41 = vpop.f32.mrf.mxu2 }
 0x182   : > { %v2960_v7 = vpop.eup %2959 }
 0x183   : > { %v1499_v26 = vmul.f32 %v2960_v7, %v4036_v33 }
 0x184   : > { %1532 = vadd.xlane.f32.xlu0 %v1496_v59  ;;  %v1093_v25 = vpop.f32.mrf.mxu0 }
 0x185   : > { %1646 = vperm.xlu1 %2776, %v1356_v3   ;;  %v1094_v51 = vadd.f32 %v1093_v25, %v3685_v19  ;;  %v1182_v23 = vpop.f32.mrf.mxu1  ;;  %v1432_v3 = vadd.f32 %v4029_v9, %v4041_v31  ;;  %v4133_v25 = vpop.xlane.xlu2 %924 }
 0x187   : > { %v1183_v44 = vadd.f32 %v1182_v23, %v1094_v51  ;;  %v2962_v1 = vpop.eup %2961  ;;  %v4137_v51 = vpop.xlane.xlu1 %939 }
 0x189   : > { %2963 = vtanh.f32 %v1183_v44  ;;  %v4093_v22 = vpop.f32.mrf.mxu3  ;;  %v4104_v54 = vpop.f32.mrf.mxu2 }
 0x18a   : > { %2965 = vtanh.f32 %v1430_v42 }
 0x18b   : > { %1641 = vperm.xlu2 %2777, %v4031_v5   ;;  %2967 = vtanh.f32 %v1432_v3  ;;  %v4113_v5 = vpop.xlane.xlu0 %909 }
 0x18c   : > { %1538 = vadd.xlane.f32.xlu0 %v1499_v26 }
 0x18d   : > { %1656 = vperm.xlu1 %2776, %v4047_v16   ;;  %v1185_v0 = vpop.f32.mrf.mxu1 }
 0x18e   : > { %v1096_v15 = vpop.f32.mrf.mxu0 }
 0x18f   : > { %v2964_v27 = vpop.eup %2963  ;;  %v1097_v32 = vadd.f32 %v1096_v15, %v3685_v19  ;;  %v4148_v35 = vpop.xlane.xlu1 %948 }
 0x190   : > { %v1280_v63 = vpack.c.bf16 %v2964_v27, %v2962_v1  ;;  %v2966_v62 = vpop.eup %2965  ;;  %v4145_v27 = vpop.xlane.xlu2 %933 }
 0x191   : > { %v2968_v29 = vpop.eup %2967  ;;  %v1186_v30 = vadd.f32 %v1185_v0, %v1097_v32  ;;  %v1495_v10 = vmul.f32 %v2966_v62, %v4036_v33  ;;  %v4131_v37 = vpop.f32.mrf.mxu3 }
 0x192   : > { %1380 = vmatmul.bf16.gmra.mxu2 %v1280_v63  ;;  %v1497_v4 = vmul.f32 %v2968_v29, %v4036_v33  ;;  %v1452_v7 = vadd.f32 %v4029_v9, %v4131_v37 }
 0x193   : > { %v4123_v49 = vpop.xlane.xlu0 %918  ;;  %2969 = vtanh.f32 %v1186_v30 }
 0x195   : > { %v1187_v28 = vpop.f32.mrf.mxu1 }
 0x196   : > { %v1098_v47 = vpop.f32.mrf.mxu0 }
 0x197   : > { %v1099_v21 = vadd.f32 %v1098_v47, %v3685_v19 }
 0x198   : > { %v4156_v30 = vpop.xlane.xlu2 %942 }
 0x199   : > { %v1188_v55 = vadd.f32 %v1187_v28, %v1099_v21  ;;  %v2970_v52 = vpop.eup %2969 }
 0x19a   : > { %v4139_v23 = vpop.f32.mrf.mxu2 }
 0x19b   : > { %2971 = vtanh.f32 %v1188_v55  ;;  %v4129_v40 = vpop.xlane.xlu0 %927  ;;  %v1437_v26 = vadd.f32 %v4029_v9, %v4139_v23 }
 0x19c   : > { %2973 = vtanh.f32 %v1452_v7 }
 0x19d   : > { %v1190_v42 = vpop.f32.mrf.mxu1  ;;  %2975 = vtanh.f32 %v1437_v26 }
 0x19e   : > { %v1101_v1 = vpop.f32.mrf.mxu0 }
 0x19f   : > { %v1102_v0 = vadd.f32 %v1101_v1, %v3685_v19 }
 0x1a0   : > { %1746 = vperm.xlu0 %2778, %v4093_v22  }
 0x1a1   : > { %v2972_v53 = vpop.eup %2971 }
 0x1a2   : > { %v1281_v59 = vpack.c.bf16 %v2972_v53, %v2970_v52  ;;  %v2974_v63 = vpop.eup %2973 }
 0x1a3   : > { %v4141_v44 = vpop.xlane.xlu0 %936  ;;  %v1517_v39 = vmul.f32 %v2974_v63, %v4036_v33  ;;  %v2976_v62 = vpop.eup %2975 }
 0x1a4   : > { %1385 = vmatmul.bf16.gmra.mxu2 %v1281_v59  ;;  %v1502_v21 = vmul.f32 %v2976_v62, %v4036_v33  ;;  %v1632_v7 = vpop.permute.xlu2 %1631 }
 0x1a5   : > { %v1192_v29 = vpop.f32.mrf.mxu1 }
 0x1a6   : > { %v1103_v3 = vpop.f32.mrf.mxu0 }
 0x1a7   : > { %v1104_v32 = vadd.f32 %v1103_v3, %v3685_v19  ;;  %v4179_v3 = vpop.f32.mrf.mxu3 }
 0x1a8   : > { %1671 = vperm.xlu0 %2778, %v4104_v54  }
 0x1a9   : > { %v1193_v47 = vadd.f32 %v1192_v29, %v1104_v32 }
 0x1ab   : > { %v4152_v15 = vpop.xlane.xlu0 %945 }
 0x1b4   : > { %1530 = vadd.xlane.f32.xlu2 %v1495_v10  ;;  %v1588_v10 = vlaneseq }
 0x1b6   : > { %v4160_v28 = vand.u32 127, %v1588_v10 }
 0x1b7   : > { %1534 = vadd.xlane.f32.xlu1 %v1497_v4  ;;  %v1627_v4 = vpop.permute.xlu1 %1626 }
 0x1b8   : > { %vm1590_vm0 = vcmp.eq.s32.totalorder %v4160_v28, 0  ;;  %vm1816_vm1 = vcmp.eq.s32.totalorder %v4160_v28, 2  ;;  %vm1623_vm2 = vcmp.eq.s32.totalorder %v4160_v28, 1 }
 0x1b9   : > { %v1593_v59 = vsel %vm1590_vm0, %v4039_v18, 0.0 }
 0x1c4   : > { %v1637_v52 = vpop.permute.xlu0 %1636 }
 0x1c5   : > { %v1786_v1 = vsel %vm1623_vm2, %v1637_v52, %v1593_v59  ;;  %v1433_v52 = vadd.f32 %v4029_v9, %v4047_v16 }
 0x1cc   : > { %1651 = vperm.xlu2 %2777, %v4041_v31   ;;  %v1191_v31 = vadd.f32 %v1190_v42, %v1102_v0 }
 0x1ce   : > { %2977 = vtanh.f32 %v1191_v31  ;;  %v1435_v31 = vadd.f32 %v4029_v9, %v4091_v41 }
 0x1cf   : > { %2979 = vtanh.f32 %v1193_v47  ;;  %v4188_v47 = vpop.f32.mrf.mxu2 }
 0x1d0   : > { %1666 = vperm.xlu1 %2776, %v4091_v41  }
 0x1d2   : > { %1574 = vadd.xlane.f32.xlu0 %v1517_v39 }
 0x1d4   : > { %1661 = vperm.xlu2 %2777, %v4054_v58   ;;  %v2978_v55 = vpop.eup %2977  ;;  %v4165_v58 = vperm.slane %v4026_v14, 7  ;;  %v1591_v14 = vsel %vm1590_vm0, %v4044_v56, 0.0 }
 0x1d5   : > { %v2980_v53 = vpop.eup %2979  ;;  %v1784_v0 = vsel %vm1623_vm2, %v1627_v4, %v1591_v14  ;;  %v4193_v4 = vpop.f32.mrf.mxu3 }
 0x1d6   : > { %v1282_v26 = vpack.c.bf16 %v2980_v53, %v2978_v55 }
 0x1d8   : > { %1390 = vmatmul.bf16.gmra.mxu2 %v1282_v26 }
 0x1da   : > { %1544 = vadd.xlane.f32.xlu0 %v1502_v21  ;;  %v1592_v21 = vsel %vm1590_vm0, %v4052_v46, 0.0 }
 0x1db   : > { %v1785_v41 = vsel %vm1623_vm2, %v1632_v7, %v1592_v21 }
 0x1df   : > { %v1529_v63 = vpop.xlane.xlu1 %1528 }
 0x1e0   : > { %v1819_v42 = vsel %vm1816_vm1, %v1529_v63, %v1786_v1 }
 0x1e1   : > { %v1852_v39 = vadd.f32 %v4165_v58, %v1819_v42 }
 0x1e3   : > { %v2686_v18 = vmul.f32 -1.442695, %v1852_v39  ;;  %v4203_v39 = vpop.f32.mrf.mxu2 }
 0x1e5   : > { %2981 = vpow2.f32 %v2686_v18  ;;  %v1595_v18 = vsel %vm1590_vm0, %v4056_v11, 0.0 }
 0x1e6   : > { %v1525_v32 = vpop.xlane.xlu2 %1524 }
 0x1e7   : > { %v1817_v62 = vsel %vm1816_vm1, %v1525_v32, %v1784_v0 }
 0x1e8   : > { %v1850_v29 = vadd.f32 %v4165_v58, %v1817_v62 }
 0x1ea   : > { %v2684_v10 = vmul.f32 -1.442695, %v1850_v29 }
 0x1eb   : > { %v2982_v56 = vpop.eup %2981 }
 0x1ec   : > { %v1980_v55 = vadd.f32 1.0, %v2982_v56  ;;  %2983 = vpow2.f32 %v2684_v10 }
 0x1ed   : > { %2985 = vtanh.f32 %v1435_v31 }
 0x1ee   : > { %2987 = vrcp.f32 %v1980_v55  ;;  %1761 = vperm.xlu0 %2778, %v4193_v4   ;;  %v2051_v31 = vand.u32 2147483648, %v1980_v55  ;;  %v2049_v21 = vand.u32 2147483647, %v1980_v55  ;;  %vm2045_vm4 = vweird.f32 %v1980_v55 }
 0x1ef   : > { %v1527_v53 = vpop.xlane.xlu0 %1526  ;;  %2989 = vtanh.f32 %v1433_v52 }
 0x1f0   : > { %v1818_v59 = vsel %vm1816_vm1, %v1527_v53, %v1785_v41  ;;  %vm2050_vm6 = vcmp.eq.f32.partialorder %v2049_v21, 8.507059e+37 }
 0x1f1   : > { %v1851_v46 = vadd.f32 %v4165_v58, %v1818_v59 }
 0x1f2   : > { %v2984_v26 = vpop.eup %2983 }
 0x1f3   : > { %v2986_v1 = vpop.eup %2985  ;;  %v1978_v63 = vadd.f32 1.0, %v2984_v26  ;;  %v2685_v42 = vmul.f32 -1.442695, %v1851_v46  ;;  %v2052_v26 = vor.u32 1.1754944e-38, %v2051_v31 }
 0x1f4   : > { %v2988_v16 = vpop.eup %2987  ;;  %v1500_v7 = vmul.f32 %v2986_v1, %v4036_v33 }
 0x1f5   : > { %v2041_v14 = vmul.f32 %v2988_v16, %v1980_v55  ;;  %2991 = vrcp.f32 %v1978_v63  ;;  %v2990_v29 = vpop.eup %2989  ;;  %vm2046_vm3 = vweird.f32 %v2988_v16  ;;  %vm2015_vm8 = vweird.f32 %v1978_v63 }
 0x1f6   : > { %2993 = vpow2.f32 %v2685_v42  ;;  %1686 = vperm.xlu0 %2778, %v4203_v39   ;;  %v1498_v59 = vmul.f32 %v2990_v29, %v4036_v33  ;;  %vm2047_vm5 = vmor %vm2045_vm4, %vm2046_vm3 }
 0x1f7   : > { %v2042_v0 = vsub.f32 1.0, %v2041_v14  ;;  %v1647_v32 = vpop.permute.xlu1 %1646  ;;  %v1533_v62 = vpop.xlane.xlu0 %1532  ;;  %v1597_v14 = vsel %vm1590_vm0, %v4069_v48, 0.0 }
 0x1f8   : > { %v1788_v10 = vsel %vm1623_vm2, %v1647_v32, %v1595_v18  ;;  %v1106_v32 = vpop.f32.mrf.mxu0 }
 0x1f9   : > { %v2043_v56 = vmul.f32 %v2988_v16, %v2042_v0  ;;  %v1821_v52 = vsel %vm1816_vm1, %v1533_v62, %v1788_v10  ;;  %v2021_v62 = vand.u32 2147483648, %v1978_v63  ;;  %v1195_v10 = vpop.f32.mrf.mxu1  ;;  %v1107_v21 = vadd.f32 %v1106_v32, %v3685_v19 }
 0x1fa   : > { %v1854_v41 = vadd.f32 %v4165_v58, %v1821_v52  ;;  %1540 = vadd.xlane.f32.xlu1 %v1500_v7 }
 0x1fb   : > { %v2992_v53 = vpop.eup %2991  ;;  %v2044_v11 = vadd.f32 %v2988_v16, %v2043_v56  ;;  %v2019_v56 = vand.u32 2147483647, %v1978_v63  ;;  %v2022_v52 = vor.u32 1.1754944e-38, %v2021_v62 }
 0x1fc   : > { %v2994_v46 = vpop.eup %2993  ;;  %v2011_v1 = vmul.f32 %v2992_v53, %v1978_v63  ;;  %v2688_v42 = vmul.f32 -1.442695, %v1854_v41  ;;  %vm2016_vm7 = vweird.f32 %v2992_v53 }
 0x1fd   : > { %v2048_v7 = vsel %vm2047_vm5, %v2988_v16, %v2044_v11  ;;  %v1979_v55 = vadd.f32 1.0, %v2994_v46  ;;  %1536 = vadd.xlane.f32.xlu2 %v1498_v59  ;;  %vm2017_vm9 = vmor %vm2015_vm8, %vm2016_vm7  ;;  %vm2020_vm10 = vcmp.eq.f32.partialorder %v2019_v56, 8.507059e+37 }
 0x1fe   : > { %v2053_v18 = vsel %vm2050_vm6, %v2052_v26, %v2048_v7  ;;  %v2012_v0 = vsub.f32 1.0, %v2011_v1  ;;  %2995 = vpow2.f32 %v2688_v42  ;;  %v1196_v42 = vadd.f32 %v1195_v10, %v1107_v21 }
 0x1ff   : > { %2492 = vst [vmem:[%s4220_s5 + $0x10] sm:$0xff] %v2053_v18  ;;  %2997 = vrcp.f32 %v1979_v55  ;;  %v1657_v29 = vpop.permute.xlu1 %1656  ;;  %v2036_v63 = vand.u32 2147483648, %v1979_v55  ;;  %vm2030_vm12 = vweird.f32 %v1979_v55 }
 0x200   : > { %v2013_v31 = vmul.f32 %v2992_v53, %v2012_v0  ;;  %v4228_v48 = vsel %vm1623_vm2, %v1657_v29, %v1597_v14  ;;  %v1108_v7 = vpop.f32.mrf.mxu0  ;;  %v2034_v0 = vand.u32 2147483647, %v1979_v55 }
 0x201   : > { %v1109_v14 = vadd.f32 %v1108_v7, %v3685_v19  ;;  %v1197_v29 = vpop.f32.mrf.mxu1  ;;  %v2037_v56 = vor.u32 1.1754944e-38, %v2036_v63 }
 0x202   : > { %v2014_v16 = vadd.f32 %v2992_v53, %v2013_v31  ;;  %vm2035_vm14 = vcmp.eq.f32.partialorder %v2034_v0, 8.507059e+37  ;;  %v4241_v0 = vpop.f32.mrf.mxu2 }
 0x204   : > { %v2996_v41 = vpop.eup %2995  ;;  %v2018_v11 = vsel %vm2017_vm9, %v2992_v53, %v2014_v16  ;;  %v1198_v53 = vadd.f32 %v1197_v29, %v1109_v14 }
 0x205   : > { %v2998_v59 = vpop.eup %2997  ;;  %v2023_v46 = vsel %vm2020_vm10, %v2022_v52, %v2018_v11  ;;  %v1982_v26 = vadd.f32 1.0, %v2996_v41  ;;  %v4233_v41 = vpop.f32.mrf.mxu3 }
 0x206   : > { %2490 = vst [vmem:[%s4220_s5] sm:$0xff] %v2023_v46  ;;  %v2026_v1 = vmul.f32 %v2998_v59, %v1979_v55  ;;  %vm2031_vm11 = vweird.f32 %v2998_v59  ;;  %v4236_v46 = vpop.xlane.xlu0 %1538 }
 0x207   : > { %2999 = vrcp.f32 %v1982_v26  ;;  %vm2032_vm13 = vmor %vm2030_vm12, %vm2031_vm11  ;;  %vm2075_vm3 = vweird.f32 %v1982_v26 }
 0x208   : > { %v2027_v18 = vsub.f32 1.0, %v2026_v1  ;;  %3001 = vtanh.f32 %v1196_v42  ;;  %v1455_v1 = vadd.f32 %v4029_v9, %v4233_v41  ;;  %v2081_v42 = vand.u32 2147483648, %v1982_v26 }
 0x209   : > { %3003 = vtanh.f32 %v1198_v53  ;;  %v1440_v53 = vadd.f32 %v4029_v9, %v4241_v0 }
 0x20a   : > { %v2028_v32 = vmul.f32 %v2998_v59, %v2027_v18  ;;  %v2079_v18 = vand.u32 2147483647, %v1982_v26  ;;  %3005 = vtanh.f32 %v1455_v1  ;;  %v2082_v63 = vor.u32 1.1754944e-38, %v2081_v42 }
 0x20b   : > { %3007 = vtanh.f32 %v1440_v53 }
 0x20c   : > { %v2029_v62 = vadd.f32 %v2998_v59, %v2028_v32  ;;  %vm2080_vm5 = vcmp.eq.f32.partialorder %v2079_v18, 8.507059e+37 }
 0x20d   : > { %v3000_v31 = vpop.eup %2999 }
 0x20e   : > { %v2033_v10 = vsel %vm2032_vm13, %v2998_v59, %v2029_v62  ;;  %v2071_v16 = vmul.f32 %v3000_v31, %v1982_v26  ;;  %v3002_v52 = vpop.eup %3001  ;;  %vm2076_vm15 = vweird.f32 %v3000_v31  ;;  %v1615_v62 = vsel %vm1590_vm0, %v4129_v40, 0.0 }
 0x20f   : > { %v2038_v21 = vsel %vm2035_vm14, %v2037_v56, %v2033_v10  ;;  %v3004_v55 = vpop.eup %3003  ;;  %vm2077_vm4 = vmor %vm2075_vm3, %vm2076_vm15  ;;  %v1642_v10 = vpop.permute.xlu2 %1641  ;;  %v1594_v40 = vsel %vm1590_vm0, %v4049_v6, 0.0  ;;  %v1596_v6 = vsel %vm1590_vm0, %v4071_v17, 0.0 }
 0x210   : > { %2491 = vst [vmem:[%s4220_s5 + $0x8] sm:$0xff] %v2038_v21  ;;  %v2072_v11 = vsub.f32 1.0, %v2071_v16  ;;  %v1283_v59 = vpack.c.bf16 %v3004_v55, %v3002_v52  ;;  %v3006_v56 = vpop.eup %3005  ;;  %v1111_v52 = vpop.f32.mrf.mxu0 }
 0x211   : > { %v3008_v16 = vpop.eup %3007  ;;  %v1200_v55 = vpop.f32.mrf.mxu1  ;;  %v1112_v53 = vadd.f32 %v1111_v52, %v3685_v19 }
 0x212   : > { %v2073_v7 = vmul.f32 %v3000_v31, %v2072_v11  ;;  %1395 = vmatmul.bf16.gmra.mxu2 %v1283_v59  ;;  %v1747_v26 = vpop.permute.xlu0 %1746  ;;  %v1505_v21 = vmul.f32 %v3008_v16, %v4036_v33  ;;  %v1787_v11 = vsel %vm1623_vm2, %v1642_v10, %v1594_v40 }
 0x213   : > { %1756 = vperm.xlu1 %2776, %v4179_v3   ;;  %v1201_v10 = vadd.f32 %v1200_v55, %v1112_v53 }
 0x214   : > { %v2074_v14 = vadd.f32 %v3000_v31, %v2073_v7 }
 0x215   : > { %1751 = vperm.xlu2 %2777, %v4131_v37   ;;  %v4253_v37 = vsel %vm1623_vm2, %v1747_v26, %v1615_v62  ;;  %v1600_v26 = vsel %vm1590_vm0, %v4078_v57, 0.0 }
 0x216   : > { %v2078_v29 = vsel %vm2077_vm4, %v3000_v31, %v2074_v14  ;;  %v1520_v31 = vmul.f32 %v3006_v56, %v4036_v33 }
 0x217   : > { %v2083_v32 = vsel %vm2080_vm5, %v2082_v63, %v2078_v29  ;;  %v1451_v63 = vadd.f32 %v4029_v9, %v4093_v22 }
 0x218   : > { %2494 = vst [vmem:[%s4220_s5 + $0x20] sm:$0xff] %v2083_v32  ;;  %v1113_v14 = vpop.f32.mrf.mxu0  ;;  %v4270_v32 = vpop.f32.mrf.mxu2 }
 0x219   : > { %v1114_v62 = vadd.f32 %v1113_v14, %v3685_v19 }
 0x21b   : > { %1681 = vperm.xlu1 %2776, %v4188_v47  }
 0x220   : > { %1580 = vadd.xlane.f32.xlu0 %v1520_v31  ;;  %v1202_v31 = vpop.f32.mrf.mxu1 }
 0x221   : > { %v1203_v22 = vadd.f32 %v1202_v31, %v1114_v62 }
 0x227   : > { %v1531_v1 = vpop.xlane.xlu2 %1530 }
 0x228   : > { %v1820_v42 = vsel %vm1816_vm1, %v1531_v1, %v1787_v11  ;;  %1550 = vadd.xlane.f32.xlu0 %v1505_v21  ;;  %v1672_v21 = vpop.permute.xlu0 %1671  ;;  %v1453_v11 = vadd.f32 %v4029_v9, %v4179_v3  ;;  %v1598_v1 = vsel %vm1590_vm0, %v4061_v2, 0.0  ;;  %v1438_v2 = vadd.f32 %v4029_v9, %v4188_v47 }
 0x229   : > { %v1853_v7 = vadd.f32 %v4165_v58, %v1820_v42  ;;  %v4284_v19 = vsel %vm1623_vm2, %v1672_v21, %v1600_v26 }
 0x22a   : > { %v1535_v59 = vpop.xlane.xlu1 %1534 }
 0x22b   : > { %v2687_v18 = vmul.f32 -1.442695, %v1853_v7 }
 0x22d   : > { %3009 = vpow2.f32 %v2687_v18 }
 0x22e   : > { %3011 = vtanh.f32 %v1451_v63 }
 0x22f   : > { %v1652_v29 = vpop.permute.xlu2 %1651  ;;  %3013 = vtanh.f32 %v1201_v10  ;;  %v4303_v10 = vpop.f32.mrf.mxu3 }
 0x230   : > { %v1789_v56 = vsel %vm1623_vm2, %v1652_v29, %v1596_v6  ;;  %3015 = vtanh.f32 %v1203_v22 }
 0x231   : > { %v1822_v17 = vsel %vm1816_vm1, %v1535_v59, %v1789_v56  ;;  %v4296_v59 = vpop.f32.mrf.mxu2 }
 0x232   : > { %v1855_v16 = vadd.f32 %v4165_v58, %v1822_v17 }
 0x233   : > { %v3010_v40 = vpop.eup %3009 }
 0x234   : > { %v1981_v52 = vadd.f32 1.0, %v3010_v40  ;;  %v2689_v57 = vmul.f32 -1.442695, %v1855_v16  ;;  %v3012_v7 = vpop.eup %3011 }
 0x235   : > { %v3014_v14 = vpop.eup %3013  ;;  %v1516_v53 = vmul.f32 %v3012_v7, %v4036_v33 }
 0x236   : > { %3017 = vrcp.f32 %v1981_v52  ;;  %v3016_v6 = vpop.eup %3015  ;;  %v2066_v22 = vand.u32 2147483648, %v1981_v52  ;;  %v2064_v16 = vand.u32 2147483647, %v1981_v52  ;;  %vm2060_vm7 = vweird.f32 %v1981_v52 }
 0x237   : > { %3019 = vpow2.f32 %v2689_v57  ;;  %v1662_v42 = vpop.permute.xlu2 %1661  ;;  %v1284_v62 = vpack.c.bf16 %v3016_v6, %v3014_v14 }
 0x238   : > { %v1791_v55 = vsel %vm1623_vm2, %v1662_v42, %v1598_v1  ;;  %3021 = vtanh.f32 %v1453_v11  ;;  %v2067_v11 = vor.u32 1.1754944e-38, %v2066_v22  ;;  %vm2065_vm9 = vcmp.eq.f32.partialorder %v2064_v16, 8.507059e+37 }
 0x239   : > { %v1824_v18 = vsel %vm1816_vm1, %v4236_v46, %v1791_v55  ;;  %1400 = vmatmul.bf16.gmra.mxu2 %v1284_v62 }
 0x23a   : > { %v1857_v3 = vadd.f32 %v4165_v58, %v1824_v18 }
 0x23c   : > { %v3018_v63 = vpop.eup %3017  ;;  %v2691_v29 = vmul.f32 -1.442695, %v1857_v3  ;;  %1701 = vperm.xlu0 %2778, %v4296_v59  }
 0x23d   : > { %v3020_v26 = vpop.eup %3019  ;;  %v2056_v56 = vmul.f32 %v3018_v63, %v1981_v52  ;;  %vm2061_vm6 = vweird.f32 %v3018_v63 }
 0x23e   : > { %v1983_v46 = vadd.f32 1.0, %v3020_v26  ;;  %3023 = vpow2.f32 %v2691_v29  ;;  %1572 = vadd.xlane.f32.xlu2 %v1516_v53  ;;  %v3022_v17 = vpop.eup %3021  ;;  %vm2062_vm8 = vmor %vm2060_vm7, %vm2061_vm6 }
 0x23f   : > { %3025 = vtanh.f32 %v1438_v2  ;;  %v2057_v31 = vsub.f32 1.0, %v2056_v56  ;;  %v1518_v40 = vmul.f32 %v3022_v17, %v4036_v33  ;;  %v4308_v2 = vpop.f32.mrf.mxu3 }
 0x240   : > { %3027 = vrcp.f32 %v1983_v46  ;;  %v2096_v52 = vand.u32 2147483648, %v1983_v46  ;;  %v2094_v53 = vand.u32 2147483647, %v1983_v46  ;;  %vm2090_vm11 = vweird.f32 %v1983_v46 }
 0x241   : > { %v2058_v47 = vmul.f32 %v3018_v63, %v2057_v31 }
 0x242   : > { %v2097_v26 = vor.u32 1.1754944e-38, %v2096_v52  ;;  %vm2095_vm13 = vcmp.eq.f32.partialorder %v2094_v53, 8.507059e+37  ;;  %v1667_v53 = vpop.permute.xlu1 %1666 }
 0x243   : > { %v2059_v21 = vadd.f32 %v3018_v63, %v2058_v47 }
 0x244   : > { %v3024_v57 = vpop.eup %3023 }
 0x245   : > { %v3026_v1 = vpop.eup %3025  ;;  %v2063_v42 = vsel %vm2062_vm8, %v3018_v63, %v2059_v21  ;;  %v1985_v55 = vadd.f32 1.0, %v3024_v57  ;;  %1576 = vadd.xlane.f32.xlu1 %v1518_v40  ;;  %v1575_v31 = vpop.xlane.xlu0 %1574 }
 0x246   : > { %v3028_v7 = vpop.eup %3027  ;;  %v2068_v18 = vsel %vm2065_vm9, %v2067_v11, %v2063_v42  ;;  %v1503_v6 = vmul.f32 %v3026_v1, %v4036_v33 }
 0x247   : > { %2493 = vst [vmem:[%s4220_s5 + $0x18] sm:$0xff] %v2068_v18  ;;  %v2086_v14 = vmul.f32 %v3028_v7, %v1983_v46  ;;  %3029 = vrcp.f32 %v1985_v55  ;;  %vm2091_vm10 = vweird.f32 %v3028_v7  ;;  %v2126_v16 = vand.u32 2147483648, %v1985_v55  ;;  %v4311_v57 = vpop.f32.mrf.mxu3 }
 0x248   : > { %vm2092_vm12 = vmor %vm2090_vm11, %vm2091_vm10  ;;  %v2124_v40 = vand.u32 2147483647, %v1985_v55  ;;  %vm2120_vm15 = vweird.f32 %v1985_v55 }
 0x249   : > { %v2087_v3 = vsub.f32 1.0, %v2086_v14  ;;  %v2127_v46 = vor.u32 1.1754944e-38, %v2126_v16  ;;  %v4319_v14 = vpop.f32.mrf.mxu2 }
 0x24a   : > { %vm2125_vm4 = vcmp.eq.f32.partialorder %v2124_v40, 8.507059e+37 }
 0x24b   : > { %v2088_v29 = vmul.f32 %v3028_v7, %v2087_v3  ;;  %v1443_v3 = vadd.f32 %v4029_v9, %v4319_v14 }
 0x24d   : > { %v3030_v62 = vpop.eup %3029  ;;  %v2089_v63 = vadd.f32 %v3028_v7, %v2088_v29  ;;  %1546 = vadd.xlane.f32.xlu1 %v1503_v6  ;;  %v4314_v42 = vpop.xlane.xlu0 %1544 }
 0x24e   : > { %v2116_v56 = vmul.f32 %v3030_v62, %v1985_v55  ;;  %vm2121_vm14 = vweird.f32 %v3030_v62  ;;  %v1618_v55 = vsel %vm1590_vm0, %v4141_v44, 0.0 }
 0x24f   : > { %v2093_v17 = vsel %vm2092_vm12, %v3028_v7, %v2089_v63  ;;  %vm2122_vm3 = vmor %vm2120_vm15, %vm2121_vm14  ;;  %v1458_v7 = vadd.f32 %v4029_v9, %v4311_v57  ;;  %v1603_v63 = vsel %vm1590_vm0, %v4085_v60, 0.0 }
 0x250   : > { %v2098_v22 = vsel %vm2095_vm13, %v2097_v26, %v2093_v17  ;;  %v2117_v47 = vsub.f32 1.0, %v2116_v56  ;;  %v1599_v17 = vsel %vm1590_vm0, %v4081_v50, 0.0 }
 0x251   : > { %2495 = vst [vmem:[%s4220_s5 + $0x28] sm:$0xff] %v2098_v22  ;;  %3031 = vtanh.f32 %v1458_v7  ;;  %v1792_v22 = vsel %vm1623_vm2, %v1667_v53, %v1599_v17  ;;  %v4354_v7 = vpop.f32.mrf.mxu2 }
 0x252   : > { %v2118_v21 = vmul.f32 %v3030_v62, %v2117_v47  ;;  %3033 = vtanh.f32 %v1443_v3 }
 0x254   : > { %v2119_v11 = vadd.f32 %v3030_v62, %v2118_v21  ;;  %v1436_v21 = vadd.f32 %v4029_v9, %v4104_v54 }
 0x256   : > { %v2123_v1 = vsel %vm2122_vm3, %v3030_v62, %v2119_v11  ;;  %1676 = vperm.xlu2 %2777, %v4139_v23  }
 0x257   : > { %v2128_v18 = vsel %vm2125_vm4, %v2127_v46, %v2123_v1  ;;  %v3032_v52 = vpop.eup %3031 }
 0x258   : > { %2497 = vst [vmem:[%s4220_s5 + $0x38] sm:$0xff] %v2128_v18  ;;  %v1523_v29 = vmul.f32 %v3032_v52, %v4036_v33  ;;  %v3034_v62 = vpop.eup %3033  ;;  %v1616_v18 = vsel %vm1590_vm0, %v4127_v36, 0.0 }
 0x259   : > { %v1508_v56 = vmul.f32 %v3034_v62, %v4036_v33 }
 0x25b   : > { %v4365_v36 = vpop.f32.mrf.mxu2 }
 0x260   : > { %v1762_v6 = vpop.permute.xlu0 %1761 }
 0x261   : > { %v4328_v23 = vsel %vm1623_vm2, %v1762_v6, %v1618_v55 }
 0x266   : > { %1696 = vperm.xlu1 %2776, %v4270_v32   ;;  %1586 = vadd.xlane.f32.xlu0 %v1523_v29 }
 0x268   : > { %v1687_v26 = vpop.permute.xlu0 %1686 }
 0x269   : > { %v4337_v44 = vsel %vm1623_vm2, %v1687_v26, %v1603_v63 }
 0x26d   : > { %v1541_v47 = vpop.xlane.xlu1 %1540 }
 0x26e   : > { %v1825_v16 = vsel %vm1816_vm1, %v1541_v47, %v1792_v22  ;;  %1556 = vadd.xlane.f32.xlu0 %v1508_v56  ;;  %v1456_v56 = vadd.f32 %v4029_v9, %v4303_v10 }
 0x26f   : > { %v1858_v60 = vadd.f32 %v4165_v58, %v1825_v16 }
 0x270   : > { %v1537_v40 = vpop.xlane.xlu2 %1536 }
 0x271   : > { %v2692_v11 = vmul.f32 -1.442695, %v1858_v60  ;;  %v1823_v46 = vsel %vm1816_vm1, %v1537_v40, %v4228_v48  ;;  %v1441_v60 = vadd.f32 %v4029_v9, %v4270_v32 }
 0x272   : > { %v1856_v50 = vadd.f32 %v4165_v58, %v1823_v46 }
 0x273   : > { %3035 = vpow2.f32 %v2692_v11 }
 0x274   : > { %3037 = vtanh.f32 %v1436_v21  ;;  %v2690_v1 = vmul.f32 -1.442695, %v1856_v50 }
 0x276   : > { %3039 = vpow2.f32 %v2690_v1 }
 0x278   : > { %v1752_v3 = vpop.permute.xlu2 %1751 }
 0x279   : > { %v3036_v54 = vpop.eup %3035  ;;  %v1809_v55 = vsel %vm1623_vm2, %v1752_v3, %v1616_v18 }
 0x27a   : > { %v3038_v6 = vpop.eup %3037  ;;  %v1986_v52 = vadd.f32 1.0, %v3036_v54  ;;  %v1842_v48 = vsel %vm1816_vm1, %v1575_v31, %v1809_v55 }
 0x27b   : > { %v1875_v29 = vadd.f32 %v4165_v58, %v1842_v48  ;;  %v1501_v26 = vmul.f32 %v3038_v6, %v4036_v33 }
 0x27c   : > { %v3040_v53 = vpop.eup %3039  ;;  %3041 = vrcp.f32 %v1986_v52  ;;  %v2141_v21 = vand.u32 2147483648, %v1986_v52  ;;  %v2139_v46 = vand.u32 2147483647, %v1986_v52  ;;  %vm2135_vm6 = vweird.f32 %v1986_v52 }
 0x27d   : > { %v1984_v62 = vadd.f32 1.0, %v3040_v53  ;;  %v2709_v63 = vmul.f32 -1.442695, %v1875_v29 }
 0x27e   : > { %v2142_v54 = vor.u32 1.1754944e-38, %v2141_v21  ;;  %vm2140_vm9 = vcmp.eq.f32.partialorder %v2139_v46, 8.507059e+37 }
 0x27f   : > { %3043 = vrcp.f32 %v1984_v62  ;;  %1542 = vadd.xlane.f32.xlu2 %v1501_v26  ;;  %v2111_v3 = vand.u32 2147483648, %v1984_v62  ;;  %v2109_v6 = vand.u32 2147483647, %v1984_v62  ;;  %vm2105_vm10 = vweird.f32 %v1984_v62 }
 0x280   : > { %3045 = vpow2.f32 %v2709_v63 }
 0x281   : > { %3047 = vtanh.f32 %v1456_v56  ;;  %v2112_v63 = vor.u32 1.1754944e-38, %v2111_v3  ;;  %vm2110_vm12 = vcmp.eq.f32.partialorder %v2109_v6, 8.507059e+37 }
 0x282   : > { %v3042_v17 = vpop.eup %3041  ;;  %1716 = vperm.xlu0 %2778, %v4365_v36  }
 0x283   : > { %v2131_v31 = vmul.f32 %v3042_v17, %v1986_v52  ;;  %vm2136_vm5 = vweird.f32 %v3042_v17 }
 0x284   : > { %vm2137_vm7 = vmor %vm2135_vm6, %vm2136_vm5 }
 0x285   : > { %v3044_v22 = vpop.eup %3043  ;;  %v2132_v47 = vsub.f32 1.0, %v2131_v31  ;;  %v1757_v6 = vpop.permute.xlu1 %1756 }
 0x286   : > { %v3046_v16 = vpop.eup %3045  ;;  %v2101_v40 = vmul.f32 %v3044_v22, %v1984_v62  ;;  %vm2106_vm8 = vweird.f32 %v3044_v22 }
 0x287   : > { %v2133_v11 = vmul.f32 %v3042_v17, %v2132_v47  ;;  %v2003_v50 = vadd.f32 1.0, %v3046_v16  ;;  %v3048_v48 = vpop.eup %3047  ;;  %vm2107_vm11 = vmor %vm2105_vm10, %vm2106_vm8 }
 0x288   : > { %v2102_v1 = vsub.f32 1.0, %v2101_v40  ;;  %v1521_v52 = vmul.f32 %v3048_v48, %v4036_v33 }
 0x289   : > { %v2134_v18 = vadd.f32 %v3042_v17, %v2133_v11  ;;  %3049 = vrcp.f32 %v2003_v50  ;;  %v2394_v40 = vand.u32 2147483647, %v2003_v50  ;;  %vm2390_vm14 = vweird.f32 %v2003_v50 }
 0x28a   : > { %v2103_v55 = vmul.f32 %v3044_v22, %v2102_v1  ;;  %3051 = vtanh.f32 %v1441_v60  ;;  %v4377_v1 = vpop.f32.mrf.mxu2 }
 0x28b   : > { %v2138_v32 = vsel %vm2137_vm7, %v3042_v17, %v2134_v18  ;;  %v2396_v17 = vand.u32 2147483648, %v2003_v50  ;;  %vm2395_vm3 = vcmp.eq.f32.partialorder %v2394_v40, 8.507059e+37  ;;  %v1446_v3 = vadd.f32 %v4029_v9, %v4377_v1 }
 0x28c   : > { %v2143_v29 = vsel %vm2140_vm9, %v2142_v54, %v2138_v32  ;;  %v2104_v53 = vadd.f32 %v3044_v22, %v2103_v55 }
 0x28d   : > { %2498 = vst [vmem:[%s4220_s5 + $0x40] sm:$0xff] %v2143_v29  ;;  %3053 = vtanh.f32 %v1446_v3 }
 0x28e   : > { %v2108_v26 = vsel %vm2107_vm11, %v3044_v22, %v2104_v53  ;;  %v2397_v22 = vor.u32 1.1754944e-38, %v2396_v17  ;;  %v1682_v53 = vpop.permute.xlu1 %1681 }
 0x28f   : > { %v3050_v56 = vpop.eup %3049  ;;  %v2113_v31 = vsel %vm2110_vm12, %v2112_v63, %v2108_v26  ;;  %v1454_v63 = vadd.f32 %v4029_v9, %v4193_v4 }
 0x290   : > { %2496 = vst [vmem:[%s4220_s5 + $0x30] sm:$0xff] %v2113_v31  ;;  %v2386_v47 = vmul.f32 %v3050_v56, %v2003_v50  ;;  %1582 = vadd.xlane.f32.xlu1 %v1521_v52  ;;  %v3052_v16 = vpop.eup %3051  ;;  %vm2391_vm13 = vweird.f32 %v3050_v56 }
 0x291   : > { %v1506_v62 = vmul.f32 %v3052_v16, %v4036_v33  ;;  %vm2392_vm15 = vmor %vm2390_vm14, %vm2391_vm13  ;;  %3055 = vtanh.f32 %v1454_v63 }
 0x292   : > { %v2387_v21 = vsub.f32 1.0, %v2386_v47  ;;  %v1617_v47 = vsel %vm1590_vm0, %v4145_v27, 0.0 }
 0x293   : > { %v4382_v54 = vpop.xlane.xlu0 %1580  ;;  %v3054_v50 = vpop.eup %3053  ;;  %v1810_v4 = vsel %vm1623_vm2, %v1757_v6, %v1617_v47  ;;  %v1602_v6 = vsel %vm1590_vm0, %v4087_v45, 0.0 }
 0x294   : > { %v2388_v60 = vmul.f32 %v3050_v56, %v2387_v21  ;;  %v1511_v48 = vmul.f32 %v3054_v50, %v4036_v33  ;;  %v1601_v21 = vsel %vm1590_vm0, %v4074_v20, 0.0 }
 0x295   : > { %v4401_v31 = vpop.f32.mrf.mxu2 }
 0x296   : > { %v2389_v11 = vadd.f32 %v3050_v56, %v2388_v60 }
 0x297   : > { %1766 = vperm.xlu2 %2777, %v4233_v41   ;;  %v1606_v41 = vsel %vm1590_vm0, %v4095_v8, 0.0 }
 0x298   : > { %v2393_v46 = vsel %vm2392_vm15, %v3050_v56, %v2389_v11  ;;  %1552 = vadd.xlane.f32.xlu1 %v1506_v62  ;;  %v3056_v62 = vpop.eup %3055 }
 0x299   : > { %v2398_v18 = vsel %vm2395_vm3, %v2397_v22, %v2393_v46  ;;  %v1519_v50 = vmul.f32 %v3056_v62, %v4036_v33 }
 0x29a   : > { %2515 = vst [vmem:[%s4220_s5 + $0xc8] sm:$0xff] %v2398_v18 }
 0x29b   : > { %v4384_v55 = vpop.xlane.xlu0 %1550 }
 0x29d   : > { %v4420_v18 = vpop.f32.mrf.mxu2 }
 0x2ac   : > { %1562 = vadd.xlane.f32.xlu0 %v1511_v48  ;;  %v1795_v48 = vsel %vm1623_vm2, %v1682_v53, %v1602_v6 }
 0x2ae   : > { %v1702_v32 = vpop.permute.xlu0 %1701 }
 0x2af   : > { %v4392_v29 = vsel %vm1623_vm2, %v1702_v32, %v1606_v41 }
 0x2b1   : > { %v1573_v26 = vpop.xlane.xlu2 %1572  ;;  %1711 = vperm.xlu1 %2776, %v4354_v7  }
 0x2b2   : > { %v1841_v52 = vsel %vm1816_vm1, %v1573_v26, %v4253_v37 }
 0x2b3   : > { %v1874_v56 = vadd.f32 %v4165_v58, %v1841_v52 }
 0x2b5   : > { %v2708_v8 = vmul.f32 -1.442695, %v1874_v56 }
 0x2b7   : > { %3057 = vpow2.f32 %v2708_v8 }
 0x2b8   : > { %v1577_v16 = vpop.xlane.xlu1 %1576 }
 0x2b9   : > { %v1843_v37 = vsel %vm1816_vm1, %v1577_v16, %v1810_v4  ;;  %v1677_v17 = vpop.permute.xlu2 %1676  ;;  %v1444_v4 = vadd.f32 %v4029_v9, %v4354_v7 }
 0x2ba   : > { %v1876_v60 = vadd.f32 %v4165_v58, %v1843_v37  ;;  %v1794_v40 = vsel %vm1623_vm2, %v1677_v17, %v1601_v21 }
 0x2bb   : > { %v1827_v27 = vsel %vm1816_vm1, %v4314_v42, %v1794_v40 }
 0x2bc   : > { %v2710_v11 = vmul.f32 -1.442695, %v1876_v60  ;;  %v1860_v22 = vadd.f32 %v4165_v58, %v1827_v27 }
 0x2bd   : > { %v3058_v46 = vpop.eup %3057 }
 0x2be   : > { %v2002_v20 = vadd.f32 1.0, %v3058_v46  ;;  %3059 = vpow2.f32 %v2710_v11  ;;  %v2694_v3 = vmul.f32 -1.442695, %v1860_v22 }
 0x2c0   : > { %3061 = vrcp.f32 %v2002_v20  ;;  %1578 = vadd.xlane.f32.xlu2 %v1519_v50  ;;  %v1547_v42 = vpop.xlane.xlu1 %1546  ;;  %1731 = vperm.xlu0 %2778, %v4420_v18   ;;  %v2381_v16 = vand.u32 2147483648, %v2002_v20  ;;  %v2379_v37 = vand.u32 2147483647, %v2002_v20  ;;  %vm2375_vm5 = vweird.f32 %v2002_v20 }
 0x2c1   : > { %3063 = vpow2.f32 %v2694_v3  ;;  %v1828_v41 = vsel %vm1816_vm1, %v1547_v42, %v1795_v48 }
 0x2c2   : > { %v1861_v32 = vadd.f32 %v4165_v58, %v1828_v41  ;;  %v2382_v27 = vor.u32 1.1754944e-38, %v2381_v16  ;;  %vm2380_vm7 = vcmp.eq.f32.partialorder %v2379_v37, 8.507059e+37  ;;  %v4435_v16 = vpop.f32.mrf.mxu2 }
 0x2c4   : > { %v3060_v63 = vpop.eup %3059  ;;  %v2695_v26 = vmul.f32 -1.442695, %v1861_v32 }
 0x2c5   : > { %v2004_v52 = vadd.f32 1.0, %v3060_v63 }
 0x2c6   : > { %v3062_v56 = vpop.eup %3061  ;;  %3065 = vpow2.f32 %v2695_v26 }
 0x2c7   : > { %v3064_v45 = vpop.eup %3063  ;;  %v2371_v8 = vmul.f32 %v3062_v56, %v2002_v20  ;;  %3067 = vrcp.f32 %v2004_v52  ;;  %vm2376_vm4 = vweird.f32 %v3062_v56  ;;  %v2411_v50 = vand.u32 2147483648, %v2004_v52 }
 0x2c8   : > { %v1988_v53 = vadd.f32 1.0, %v3064_v45  ;;  %vm2377_vm6 = vmor %vm2375_vm5, %vm2376_vm4  ;;  %v2409_v42 = vand.u32 2147483647, %v2004_v52  ;;  %vm2405_vm9 = vweird.f32 %v2004_v52 }
 0x2c9   : > { %v2372_v47 = vsub.f32 1.0, %v2371_v8 }
 0x2ca   : > { %3069 = vrcp.f32 %v1988_v53  ;;  %v2171_v63 = vand.u32 2147483648, %v1988_v53  ;;  %v2169_v8 = vand.u32 2147483647, %v1988_v53  ;;  %vm2410_vm12 = vcmp.eq.f32.partialorder %v2409_v42, 8.507059e+37 }
 0x2cb   : > { %v2373_v21 = vmul.f32 %v3062_v56, %v2372_v47  ;;  %3071 = vtanh.f32 %v1444_v4  ;;  %vm2165_vm13 = vweird.f32 %v1988_v53 }
 0x2cc   : > { %v3066_v17 = vpop.eup %3065  ;;  %vm2170_vm15 = vcmp.eq.f32.partialorder %v2169_v8, 8.507059e+37  ;;  %v1457_v8 = vadd.f32 %v4029_v9, %v4308_v2 }
 0x2cd   : > { %v3068_v60 = vpop.eup %3067  ;;  %v2374_v40 = vadd.f32 %v3062_v56, %v2373_v21  ;;  %v1989_v62 = vadd.f32 1.0, %v3066_v17 }
 0x2ce   : > { %v2401_v11 = vmul.f32 %v3068_v60, %v2004_v52  ;;  %vm2406_vm8 = vweird.f32 %v3068_v60  ;;  %v2172_v52 = vor.u32 1.1754944e-38, %v2171_v63  ;;  %v1609_v63 = vsel %vm1590_vm0, %v4113_v5, 0.0 }
 0x2cf   : > { %v2378_v22 = vsel %vm2377_vm6, %v3062_v56, %v2374_v40  ;;  %3073 = vrcp.f32 %v1989_v62  ;;  %vm2407_vm10 = vmor %vm2405_vm9, %vm2406_vm8  ;;  %v2412_v56 = vor.u32 1.1754944e-38, %v2411_v50  ;;  %vm2180_vm4 = vweird.f32 %v1989_v62 }
 0x2d0   : > { %v3070_v46 = vpop.eup %3069  ;;  %v2383_v7 = vsel %vm2380_vm7, %v2382_v27, %v2378_v22  ;;  %v2402_v3 = vsub.f32 1.0, %v2401_v11  ;;  %v2186_v11 = vand.u32 2147483648, %v1989_v62 }
 0x2d1   : > { %2514 = vst [vmem:[%s4220_s5 + $0xc0] sm:$0xff] %v2383_v7  ;;  %v2161_v6 = vmul.f32 %v3070_v46, %v1988_v53  ;;  %v3072_v32 = vpop.eup %3071  ;;  %vm2166_vm11 = vweird.f32 %v3070_v46 }
 0x2d2   : > { %v2403_v48 = vmul.f32 %v3068_v60, %v2402_v3  ;;  %v1509_v17 = vmul.f32 %v3072_v32, %v4036_v33  ;;  %vm2167_vm14 = vmor %vm2165_vm13, %vm2166_vm11  ;;  %v2184_v3 = vand.u32 2147483647, %v1989_v62  ;;  %v2187_v50 = vor.u32 1.1754944e-38, %v2186_v11 }
 0x2d3   : > { %v2162_v41 = vsub.f32 1.0, %v2161_v6  ;;  %v1439_v32 = vadd.f32 %v4029_v9, %v4203_v39 }
 0x2d4   : > { %v2404_v20 = vadd.f32 %v3068_v60, %v2403_v48  ;;  %vm2185_vm6 = vcmp.eq.f32.partialorder %v2184_v3, 8.507059e+37 }
 0x2d5   : > { %v3074_v26 = vpop.eup %3073  ;;  %v2163_v45 = vmul.f32 %v3070_v46, %v2162_v41 }
 0x2d6   : > { %v2408_v47 = vsel %vm2407_vm10, %v3068_v60, %v2404_v20  ;;  %v2176_v4 = vmul.f32 %v3074_v26, %v1989_v62  ;;  %v1449_v60 = vadd.f32 %v4029_v9, %v4435_v16  ;;  %vm2181_vm3 = vweird.f32 %v3074_v26 }
 0x2d7   : > { %v2413_v21 = vsel %vm2410_vm12, %v2412_v56, %v2408_v47  ;;  %v2164_v37 = vadd.f32 %v3070_v46, %v2163_v45  ;;  %vm2182_vm5 = vmor %vm2180_vm4, %vm2181_vm3 }
 0x2d8   : > { %2516 = vst [vmem:[%s4220_s5 + $0xd0] sm:$0xff] %v2413_v21  ;;  %v2177_v40 = vsub.f32 1.0, %v2176_v4  ;;  %1691 = vperm.xlu2 %2777, %v4241_v0   ;;  %3075 = vtanh.f32 %v1449_v60  ;;  %v1697_v47 = vpop.permute.xlu1 %1696 }
 0x2d9   : > { %v2168_v27 = vsel %vm2167_vm14, %v3070_v46, %v2164_v37  ;;  %v4444_v46 = vpop.xlane.xlu0 %1586  ;;  %3077 = vtanh.f32 %v1439_v32 }
 0x2da   : > { %v2173_v22 = vsel %vm2170_vm15, %v2172_v52, %v2168_v27  ;;  %v2178_v7 = vmul.f32 %v3074_v26, %v2177_v40 }
 0x2db   : > { %2500 = vst [vmem:[%s4220_s5 + $0x50] sm:$0xff] %v2173_v22  ;;  %1558 = vadd.xlane.f32.xlu1 %v1509_v17 }
 0x2dc   : > { %v2179_v53 = vadd.f32 %v3074_v26, %v2178_v7 }
 0x2de   : > { %v2183_v6 = vsel %vm2182_vm5, %v3074_v26, %v2179_v53  ;;  %v3076_v48 = vpop.eup %3075 }
 0x2df   : > { %v2188_v0 = vsel %vm2185_vm6, %v2187_v50, %v2183_v6  ;;  %v1514_v42 = vmul.f32 %v3076_v48, %v4036_v33  ;;  %v3078_v21 = vpop.eup %3077  ;;  %v1447_v6 = vadd.f32 %v4029_v9, %v4401_v31 }
 0x2e0   : > { %2501 = vst [vmem:[%s4220_s5 + $0x58] sm:$0xff] %v2188_v0  ;;  %v1504_v27 = vmul.f32 %v3078_v21, %v4036_v33 }
 0x2e1   : > { %v4447_v41 = vpop.xlane.xlu0 %1556 }
 0x2ea   : > { %1568 = vadd.xlane.f32.xlu0 %v1514_v42 }
 0x2f2   : > { %v1543_v20 = vpop.xlane.xlu2 %1542 }
 0x2f3   : > { %v1826_v62 = vsel %vm1816_vm1, %v1543_v20, %v4284_v19  ;;  %v1619_v19 = vsel %vm1590_vm0, %v4137_v51, 0.0 }
 0x2f4   : > { %v1859_v26 = vadd.f32 %v4165_v58, %v1826_v62  ;;  %v1717_v56 = vpop.permute.xlu0 %1716  ;;  %1726 = vperm.xlu1 %2776, %v4401_v31  }
 0x2f5   : > { %v4461_v45 = vsel %vm1623_vm2, %v1717_v56, %v1609_v63 }
 0x2f6   : > { %v2693_v39 = vmul.f32 -1.442695, %v1859_v26 }
 0x2f8   : > { %3079 = vpow2.f32 %v2693_v39 }
 0x2f9   : > { %3081 = vtanh.f32 %v1457_v8 }
 0x2fa   : > { %v1767_v5 = vpop.permute.xlu2 %1766 }
 0x2fb   : > { %v1812_v4 = vsel %vm1623_vm2, %v1767_v5, %v1619_v19 }
 0x2fc   : > { %v1845_v37 = vsel %vm1816_vm1, %v4382_v54, %v1812_v4 }
 0x2fd   : > { %v1878_v17 = vadd.f32 %v4165_v58, %v1845_v37 }
 0x2fe   : > { %v3080_v52 = vpop.eup %3079  ;;  %1776 = vperm.xlu0 %2778, %v4308_v2   ;;  %v1605_v2 = vsel %vm1590_vm0, %v4098_v12, 0.0 }
 0x2ff   : > { %v1987_v51 = vadd.f32 1.0, %v3080_v52  ;;  %v2712_v40 = vmul.f32 -1.442695, %v1878_v17  ;;  %v3082_v60 = vpop.eup %3081  ;;  %v1798_v0 = vsel %vm1623_vm2, %v1697_v47, %v1605_v2 }
 0x300   : > { %v1522_v7 = vmul.f32 %v3082_v60, %v4036_v33 }
 0x301   : > { %3083 = vrcp.f32 %v1987_v51  ;;  %1548 = vadd.xlane.f32.xlu2 %v1504_v27  ;;  %v2156_v48 = vand.u32 2147483648, %v1987_v51  ;;  %v2154_v20 = vand.u32 2147483647, %v1987_v51  ;;  %vm2150_vm8 = vweird.f32 %v1987_v51 }
 0x302   : > { %3085 = vpow2.f32 %v2712_v40 }
 0x303   : > { %v4476_v11 = vpop.xlane.xlu1 %1582  ;;  %v2157_v26 = vor.u32 1.1754944e-38, %v2156_v48  ;;  %vm2155_vm10 = vcmp.eq.f32.partialorder %v2154_v20, 8.507059e+37  ;;  %v1612_v20 = vsel %vm1590_vm0, %v4123_v49, 0.0  ;;  %v1604_v49 = vsel %vm1590_vm0, %v4083_v24, 0.0 }
 0x307   : > { %v3084_v22 = vpop.eup %3083 }
 0x308   : > { %v3086_v54 = vpop.eup %3085  ;;  %v2146_v3 = vmul.f32 %v3084_v22, %v1987_v51  ;;  %vm2151_vm7 = vweird.f32 %v3084_v22 }
 0x309   : > { %v2006_v53 = vadd.f32 1.0, %v3086_v54  ;;  %1584 = vadd.xlane.f32.xlu2 %v1522_v7  ;;  %vm2152_vm9 = vmor %vm2150_vm8, %vm2151_vm7 }
 0x30a   : > { %v2147_v50 = vsub.f32 1.0, %v2146_v3 }
 0x30b   : > { %3087 = vrcp.f32 %v2006_v53  ;;  %v1553_v42 = vpop.xlane.xlu1 %1552  ;;  %v2441_v47 = vand.u32 2147483648, %v2006_v53  ;;  %v2439_v37 = vand.u32 2147483647, %v2006_v53  ;;  %vm2435_vm12 = vweird.f32 %v2006_v53 }
 0x30c   : > { %v2148_v32 = vmul.f32 %v3084_v22, %v2147_v50  ;;  %v1831_v62 = vsel %vm1816_vm1, %v1553_v42, %v1798_v0  ;;  %3089 = vtanh.f32 %v1447_v6 }
 0x30d   : > { %v1864_v63 = vadd.f32 %v4165_v58, %v1831_v62  ;;  %v2442_v40 = vor.u32 1.1754944e-38, %v2441_v47  ;;  %vm2440_vm14 = vcmp.eq.f32.partialorder %v2439_v37, 8.507059e+37 }
 0x30e   : > { %v2149_v12 = vadd.f32 %v3084_v22, %v2148_v32 }
 0x30f   : > { %v2698_v31 = vmul.f32 -1.442695, %v1864_v63 }
 0x310   : > { %v2153_v56 = vsel %vm2152_vm9, %v3084_v22, %v2149_v12 }
 0x311   : > { %v3088_v39 = vpop.eup %3087  ;;  %v2158_v19 = vsel %vm2155_vm10, %v2157_v26, %v2153_v56  ;;  %3091 = vpow2.f32 %v2698_v31  ;;  %v1403_v26 = vpop.f32.mrf.mxu2 }
 0x312   : > { %2499 = vst [vmem:[%s4220_s5 + $0x48] sm:$0xff] %v2158_v19  ;;  %v2431_v8 = vmul.f32 %v3088_v39, %v2006_v53  ;;  %v3090_v4 = vpop.eup %3089  ;;  %vm2436_vm11 = vweird.f32 %v3088_v39 }
 0x313   : > { %vm2437_vm13 = vmor %vm2435_vm12, %vm2436_vm11  ;;  %v1512_v60 = vmul.f32 %v3090_v4, %v4036_v33 }
 0x314   : > { %v2432_v5 = vsub.f32 1.0, %v2431_v8 }
 0x316   : > { %v2433_v21 = vmul.f32 %v3088_v39, %v2432_v5 }
 0x317   : > { %v3092_v17 = vpop.eup %3091 }
 0x318   : > { %v2434_v52 = vadd.f32 %v3088_v39, %v2433_v21  ;;  %v1992_v51 = vadd.f32 1.0, %v3092_v17 }
 0x31a   : > { %v2438_v27 = vsel %vm2437_vm13, %v3088_v39, %v2434_v52  ;;  %3093 = vrcp.f32 %v1992_v51  ;;  %v2231_v2 = vand.u32 2147483648, %v1992_v51  ;;  %v2229_v53 = vand.u32 2147483647, %v1992_v51 }
 0x31b   : > { %v2443_v22 = vsel %vm2440_vm14, %v2442_v40, %v2438_v27  ;;  %vm2225_vm3 = vweird.f32 %v1992_v51  ;;  %v1442_v39 = vadd.f32 %v4029_v9, %v4296_v59 }
 0x31c   : > { %2518 = vst [vmem:[%s4220_s5 + $0xe0] sm:$0xff] %v2443_v22  ;;  %v2232_v0 = vor.u32 1.1754944e-38, %v2231_v2  ;;  %vm2230_vm5 = vcmp.eq.f32.partialorder %v2229_v53, 8.507059e+37 }
 0x31e   : > { %1564 = vadd.xlane.f32.xlu1 %v1512_v60 }
 0x31f   : > { %v4493_v48 = vpop.xlane.xlu0 %1562 }
 0x320   : > { %v3094_v7 = vpop.eup %3093 }
 0x321   : > { %v2221_v54 = vmul.f32 %v3094_v7, %v1992_v51  ;;  %1706 = vperm.xlu2 %2777, %v4319_v14   ;;  %vm2226_vm15 = vweird.f32 %v3094_v7 }
 0x322   : > { %vm2227_vm4 = vmor %vm2225_vm3, %vm2226_vm15 }
 0x323   : > { %v2222_v3 = vsub.f32 1.0, %v2221_v54  ;;  %v1712_v37 = vpop.permute.xlu1 %1711 }
 0x325   : > { %v2223_v50 = vmul.f32 %v3094_v7, %v2222_v3 }
 0x327   : > { %v2224_v6 = vadd.f32 %v3094_v7, %v2223_v50  ;;  %v1450_v50 = vadd.f32 %v4029_v9, %v1403_v26 }
 0x329   : > { %v2228_v42 = vsel %vm2227_vm4, %v3094_v7, %v2224_v6 }
 0x32a   : > { %v2233_v32 = vsel %vm2230_vm5, %v2232_v0, %v2228_v42 }
 0x32b   : > { %2504 = vst [vmem:[%s4220_s5 + $0x70] sm:$0xff] %v2233_v32 }
 0x332   : > { %v1732_v14 = vpop.permute.xlu0 %1731 }
 0x333   : > { %v4501_v62 = vsel %vm1623_vm2, %v1732_v14, %v1612_v20  ;;  %v1579_v63 = vpop.xlane.xlu2 %1578 }
 0x334   : > { %v1844_v12 = vsel %vm1816_vm1, %v1579_v63, %v4328_v23 }
 0x335   : > { %v1877_v31 = vadd.f32 %v4165_v58, %v1844_v12 }
 0x337   : > { %v2711_v56 = vmul.f32 -1.442695, %v1877_v31  ;;  %1741 = vperm.xlu1 %2776, %v1403_v26  }
 0x339   : > { %3095 = vpow2.f32 %v2711_v56 }
 0x33a   : > { %3097 = vtanh.f32 %v1442_v39 }
 0x33b   : > { %v1692_v19 = vpop.permute.xlu2 %1691 }
 0x33c   : > { %v1797_v8 = vsel %vm1623_vm2, %v1692_v19, %v1604_v49 }
 0x33d   : > { %v1830_v23 = vsel %vm1816_vm1, %v4384_v55, %v1797_v8  ;;  %v1608_v55 = vsel %vm1590_vm0, %v4115_v61, 0.0 }
 0x33e   : > { %v1863_v5 = vadd.f32 %v4165_v58, %v1830_v23  ;;  %v1801_v54 = vsel %vm1623_vm2, %v1712_v37, %v1608_v55 }
 0x33f   : > { %v3096_v47 = vpop.eup %3095 }
 0x340   : > { %v2005_v4 = vadd.f32 1.0, %v3096_v47  ;;  %v2697_v21 = vmul.f32 -1.442695, %v1863_v5  ;;  %v3098_v24 = vpop.eup %3097 }
 0x341   : > { %v1507_v59 = vmul.f32 %v3098_v24, %v4036_v33 }
 0x342   : > { %3099 = vrcp.f32 %v2005_v4  ;;  %v2426_v60 = vand.u32 2147483648, %v2005_v4  ;;  %v2424_v7 = vand.u32 2147483647, %v2005_v4  ;;  %vm2420_vm7 = vweird.f32 %v2005_v4 }
 0x343   : > { %3101 = vpow2.f32 %v2697_v21 }
 0x344   : > { %v2427_v6 = vor.u32 1.1754944e-38, %v2426_v60  ;;  %vm2425_vm9 = vcmp.eq.f32.partialorder %v2424_v7, 8.507059e+37 }
 0x348   : > { %v3100_v17 = vpop.eup %3099 }
 0x349   : > { %v3102_v52 = vpop.eup %3101  ;;  %v2416_v51 = vmul.f32 %v3100_v17, %v2005_v4  ;;  %vm2421_vm6 = vweird.f32 %v3100_v17 }
 0x34a   : > { %v1991_v40 = vadd.f32 1.0, %v3102_v52  ;;  %1554 = vadd.xlane.f32.xlu2 %v1507_v59  ;;  %vm2422_vm8 = vmor %vm2420_vm7, %vm2421_vm6 }
 0x34b   : > { %v2417_v27 = vsub.f32 1.0, %v2416_v51 }
 0x34c   : > { %3103 = vrcp.f32 %v1991_v40  ;;  %v2216_v12 = vand.u32 2147483648, %v1991_v40  ;;  %v2214_v31 = vand.u32 2147483647, %v1991_v40  ;;  %vm2210_vm11 = vweird.f32 %v1991_v40 }
 0x34d   : > { %v2418_v22 = vmul.f32 %v3100_v17, %v2417_v27  ;;  %3105 = vtanh.f32 %v1450_v50 }
 0x34e   : > { %v1559_v3 = vpop.xlane.xlu1 %1558  ;;  %v2217_v19 = vor.u32 1.1754944e-38, %v2216_v12  ;;  %vm2215_vm13 = vcmp.eq.f32.partialorder %v2214_v31, 8.507059e+37 }
 0x34f   : > { %v2419_v2 = vadd.f32 %v3100_v17, %v2418_v22  ;;  %v1834_v53 = vsel %vm1816_vm1, %v1559_v3, %v1801_v54  ;;  %v1621_v3 = vsel %vm1590_vm0, %v4152_v15, 0.0  ;;  %v1607_v15 = vsel %vm1590_vm0, %v4089_v13, 0.0 }
 0x350   : > { %v1867_v0 = vadd.f32 %v4165_v58, %v1834_v53 }
 0x351   : > { %v2423_v61 = vsel %vm2422_vm8, %v3100_v17, %v2419_v2  ;;  %v1445_v2 = vadd.f32 %v4029_v9, %v4365_v36 }
 0x352   : > { %v3104_v42 = vpop.eup %3103  ;;  %v2428_v32 = vsel %vm2425_vm9, %v2427_v6, %v2423_v61  ;;  %v2701_v20 = vmul.f32 -1.442695, %v1867_v0 }
 0x353   : > { %2517 = vst [vmem:[%s4220_s5 + $0xd8] sm:$0xff] %v2428_v32  ;;  %v2206_v14 = vmul.f32 %v3104_v42, %v1991_v40  ;;  %vm2211_vm10 = vweird.f32 %v3104_v42  ;;  %v3106_v56 = vpop.eup %3105 }
 0x354   : > { %3107 = vpow2.f32 %v2701_v20  ;;  %vm2212_vm12 = vmor %vm2210_vm11, %vm2211_vm10  ;;  %v1515_v47 = vmul.f32 %v3106_v56, %v4036_v33 }
 0x355   : > { %v2207_v63 = vsub.f32 1.0, %v2206_v14 }
 0x357   : > { %v2208_v26 = vmul.f32 %v3104_v42, %v2207_v63 }
 0x359   : > { %v2209_v49 = vadd.f32 %v3104_v42, %v2208_v26 }
 0x35a   : > { %v3108_v39 = vpop.eup %3107 }
 0x35b   : > { %v2213_v8 = vsel %vm2212_vm12, %v3104_v42, %v2209_v49  ;;  %v1995_v23 = vadd.f32 1.0, %v3108_v39 }
 0x35c   : > { %v2218_v5 = vsel %vm2215_vm13, %v2217_v19, %v2213_v8 }
 0x35d   : > { %2503 = vst [vmem:[%s4220_s5 + $0x68] sm:$0xff] %v2218_v5  ;;  %3109 = vrcp.f32 %v1995_v23  ;;  %v2276_v37 = vand.u32 2147483648, %v1995_v23  ;;  %v2274_v59 = vand.u32 2147483647, %v1995_v23  ;;  %vm2270_vm15 = vweird.f32 %v1995_v23  ;;  %v4533_v60 = vpop.xlane.xlu0 %1568 }
 0x35f   : > { %v2277_v51 = vor.u32 1.1754944e-38, %v2276_v37  ;;  %vm2275_vm4 = vcmp.eq.f32.partialorder %v2274_v59, 8.507059e+37 }
 0x361   : > { %1570 = vadd.xlane.f32.xlu1 %v1515_v47 }
 0x362   : > { %1721 = vperm.xlu2 %2777, %v4377_v1  }
 0x363   : > { %v3110_v4 = vpop.eup %3109 }
 0x364   : > { %v2266_v21 = vmul.f32 %v3110_v4, %v1995_v23  ;;  %vm2271_vm14 = vweird.f32 %v3110_v4 }
 0x365   : > { %vm2272_vm3 = vmor %vm2270_vm15, %vm2271_vm14 }
 0x366   : > { %v2267_v24 = vsub.f32 1.0, %v2266_v21  ;;  %v1727_v26 = vpop.permute.xlu1 %1726 }
 0x368   : > { %v2268_v17 = vmul.f32 %v3110_v4, %v2267_v24 }
 0x36a   : > { %v2269_v52 = vadd.f32 %v3110_v4, %v2268_v17 }
 0x36c   : > { %v2273_v40 = vsel %vm2272_vm3, %v3110_v4, %v2269_v52 }
 0x36d   : > { %v2278_v27 = vsel %vm2275_vm4, %v2277_v51, %v2273_v40 }
 0x36e   : > { %2507 = vst [vmem:[%s4220_s5 + $0x88] sm:$0xff] %v2278_v27 }
 0x370   : > { %v1777_v54 = vpop.permute.xlu0 %1776 }
 0x371   : > { %v1814_v50 = vsel %vm1623_vm2, %v1777_v54, %v1621_v3 }
 0x374   : > { %v1549_v55 = vpop.xlane.xlu2 %1548 }
 0x375   : > { %v1829_v1 = vsel %vm1816_vm1, %v1549_v55, %v4337_v44 }
 0x376   : > { %v1862_v22 = vadd.f32 %v4165_v58, %v1829_v1 }
 0x378   : > { %v2696_v7 = vmul.f32 -1.442695, %v1862_v22 }
 0x37a   : > { %3111 = vpow2.f32 %v2696_v7  ;;  %1771 = vperm.xlu1 %2776, %v4303_v10  }
 0x37b   : > { %3113 = vtanh.f32 %v1445_v2 }
 0x37c   : > { %v1585_v53 = vpop.xlane.xlu2 %1584 }
 0x37d   : > { %v1847_v44 = vsel %vm1816_vm1, %v1585_v53, %v1814_v50 }
 0x37e   : > { %v1880_v6 = vadd.f32 %v4165_v58, %v1847_v44 }
 0x380   : > { %v3112_v0 = vpop.eup %3111  ;;  %v2714_v61 = vmul.f32 -1.442695, %v1880_v6 }
 0x381   : > { %v1990_v10 = vadd.f32 1.0, %v3112_v0  ;;  %v3114_v32 = vpop.eup %3113 }
 0x382   : > { %3115 = vpow2.f32 %v2714_v61  ;;  %v1510_v49 = vmul.f32 %v3114_v32, %v4036_v33 }
 0x383   : > { %3117 = vrcp.f32 %v1990_v10  ;;  %v2201_v19 = vand.u32 2147483648, %v1990_v10  ;;  %v2199_v23 = vand.u32 2147483647, %v1990_v10  ;;  %vm2195_vm6 = vweird.f32 %v1990_v10 }
 0x384   : > { %v1707_v36 = vpop.permute.xlu2 %1706 }
 0x385   : > { %v1800_v42 = vsel %vm1623_vm2, %v1707_v36, %v1607_v15  ;;  %v2202_v21 = vor.u32 1.1754944e-38, %v2201_v19  ;;  %vm2200_vm8 = vcmp.eq.f32.partialorder %v2199_v23, 8.507059e+37 }
 0x386   : > { %v1833_v20 = vsel %vm1816_vm1, %v4447_v41, %v1800_v42  ;;  %v1611_v41 = vsel %vm1590_vm0, %v4125_v34, 0.0 }
 0x387   : > { %v1866_v14 = vadd.f32 %v4165_v58, %v1833_v20  ;;  %v1804_v4 = vsel %vm1623_vm2, %v1727_v26, %v1611_v41 }
 0x388   : > { %v3116_v63 = vpop.eup %3115 }
 0x389   : > { %v3118_v12 = vpop.eup %3117  ;;  %v2008_v31 = vadd.f32 1.0, %v3116_v63  ;;  %v2700_v56 = vmul.f32 -1.442695, %v1866_v14 }
 0x38a   : > { %v2191_v39 = vmul.f32 %v3118_v12, %v1990_v10  ;;  %vm2196_vm5 = vweird.f32 %v3118_v12 }
 0x38b   : > { %3119 = vrcp.f32 %v2008_v31  ;;  %1560 = vadd.xlane.f32.xlu2 %v1510_v49  ;;  %vm2197_vm7 = vmor %vm2195_vm6, %vm2196_vm5  ;;  %v2471_v55 = vand.u32 2147483648, %v2008_v31  ;;  %v2469_v22 = vand.u32 2147483647, %v2008_v31  ;;  %vm2465_vm10 = vweird.f32 %v2008_v31 }
 0x38c   : > { %v2192_v13 = vsub.f32 1.0, %v2191_v39  ;;  %3121 = vpow2.f32 %v2700_v56 }
 0x38d   : > { %v2472_v3 = vor.u32 1.1754944e-38, %v2471_v55  ;;  %vm2470_vm12 = vcmp.eq.f32.partialorder %v2469_v22, 8.507059e+37 }
 0x38e   : > { %v2193_v8 = vmul.f32 %v3118_v12, %v2192_v13 }
 0x390   : > { %v2194_v5 = vadd.f32 %v3118_v12, %v2193_v8 }
 0x391   : > { %v3120_v47 = vpop.eup %3119  ;;  %v1565_v24 = vpop.xlane.xlu1 %1564 }
 0x392   : > { %v3122_v37 = vpop.eup %3121  ;;  %v2198_v17 = vsel %vm2197_vm7, %v3118_v12, %v2194_v5  ;;  %v2461_v59 = vmul.f32 %v3120_v47, %v2008_v31  ;;  %v1837_v52 = vsel %vm1816_vm1, %v1565_v24, %v1804_v4  ;;  %vm2466_vm9 = vweird.f32 %v3120_v47 }
 0x393   : > { %v2203_v51 = vsel %vm2200_vm8, %v2202_v21, %v2198_v17  ;;  %v1994_v40 = vadd.f32 1.0, %v3122_v37  ;;  %v1870_v34 = vadd.f32 %v4165_v58, %v1837_v52  ;;  %vm2467_vm11 = vmor %vm2465_vm10, %vm2466_vm9  ;;  %v1610_v4 = vsel %vm1590_vm0, %v4102_v38, 0.0 }
 0x394   : > { %2502 = vst [vmem:[%s4220_s5 + $0x60] sm:$0xff] %v2203_v51  ;;  %v2462_v27 = vsub.f32 1.0, %v2461_v59 }
 0x395   : > { %3123 = vrcp.f32 %v1994_v40  ;;  %v2704_v7 = vmul.f32 -1.442695, %v1870_v34  ;;  %v2261_v61 = vand.u32 2147483648, %v1994_v40  ;;  %v2259_v36 = vand.u32 2147483647, %v1994_v40 }
 0x396   : > { %v2463_v1 = vmul.f32 %v3120_v47, %v2462_v27  ;;  %vm2255_vm14 = vweird.f32 %v1994_v40  ;;  %v1614_v34 = vsel %vm1590_vm0, %v4133_v25, 0.0 }
 0x397   : > { %3125 = vpow2.f32 %v2704_v7  ;;  %v2262_v32 = vor.u32 1.1754944e-38, %v2261_v61  ;;  %vm2260_vm3 = vcmp.eq.f32.partialorder %v2259_v36, 8.507059e+37 }
 0x398   : > { %v2464_v54 = vadd.f32 %v3120_v47, %v2463_v1 }
 0x39a   : > { %v2468_v2 = vsel %vm2467_vm11, %v3120_v47, %v2464_v54 }
 0x39b   : > { %v3124_v50 = vpop.eup %3123  ;;  %v2473_v53 = vsel %vm2470_vm12, %v2472_v3, %v2468_v2 }
 0x39c   : > { %2520 = vst [vmem:[%s4220_s5 + $0xf0] sm:$0xff] %v2473_v53  ;;  %v2251_v44 = vmul.f32 %v3124_v50, %v1994_v40  ;;  %vm2256_vm13 = vweird.f32 %v3124_v50 }
 0x39d   : > { %v3126_v6 = vpop.eup %3125  ;;  %vm2257_vm15 = vmor %vm2255_vm14, %vm2256_vm13 }
 0x39e   : > { %v2252_v0 = vsub.f32 1.0, %v2251_v44  ;;  %v1998_v10 = vadd.f32 1.0, %v3126_v6 }
 0x3a0   : > { %v2253_v15 = vmul.f32 %v3124_v50, %v2252_v0  ;;  %3127 = vrcp.f32 %v1998_v10  ;;  %v2321_v31 = vand.u32 2147483648, %v1998_v10  ;;  %v2319_v49 = vand.u32 2147483647, %v1998_v10 }
 0x3a1   : > { %vm2315_vm5 = vweird.f32 %v1998_v10 }
 0x3a2   : > { %v2254_v42 = vadd.f32 %v3124_v50, %v2253_v15  ;;  %v2322_v13 = vor.u32 1.1754944e-38, %v2321_v31  ;;  %vm2320_vm7 = vcmp.eq.f32.partialorder %v2319_v49, 8.507059e+37  ;;  %v1620_v49 = vsel %vm1590_vm0, %v4156_v30, 0.0 }
 0x3a3   : > { %1736 = vperm.xlu2 %2777, %v4435_v16   ;;  %v1448_v16 = vadd.f32 %v4029_v9, %v4420_v18 }
 0x3a4   : > { %v2258_v20 = vsel %vm2257_vm15, %v3124_v50, %v2254_v42 }
 0x3a5   : > { %v2263_v14 = vsel %vm2260_vm3, %v2262_v32, %v2258_v20  ;;  %3129 = vtanh.f32 %v1448_v16 }
 0x3a6   : > { %2506 = vst [vmem:[%s4220_s5 + $0x80] sm:$0xff] %v2263_v14  ;;  %v3128_v63 = vpop.eup %3127 }
 0x3a7   : > { %v2311_v12 = vmul.f32 %v3128_v63, %v1998_v10  ;;  %vm2316_vm4 = vweird.f32 %v3128_v63 }
 0x3a8   : > { %vm2317_vm6 = vmor %vm2315_vm5, %vm2316_vm4 }
 0x3a9   : > { %v2312_v26 = vsub.f32 1.0, %v2311_v12  ;;  %v1742_v51 = vpop.permute.xlu1 %1741 }
 0x3ab   : > { %v2313_v56 = vmul.f32 %v3128_v63, %v2312_v26  ;;  %v3130_v37 = vpop.eup %3129 }
 0x3ac   : > { %v1513_v52 = vmul.f32 %v3130_v37, %v4036_v33 }
 0x3ad   : > { %v2314_v39 = vadd.f32 %v3128_v63, %v2313_v56 }
 0x3af   : > { %v2318_v19 = vsel %vm2317_vm6, %v3128_v63, %v2314_v39 }
 0x3b0   : > { %v2323_v8 = vsel %vm2320_vm7, %v2322_v13, %v2318_v19 }
 0x3b1   : > { %2510 = vst [vmem:[%s4220_s5 + $0xa0] sm:$0xff] %v2323_v8 }
 0x3bd   : > { %v1555_v23 = vpop.xlane.xlu2 %1554 }
 0x3be   : > { %v1832_v41 = vsel %vm1816_vm1, %v1555_v23, %v4392_v29 }
 0x3bf   : > { %v1865_v5 = vadd.f32 %v4165_v58, %v1832_v41 }
 0x3c1   : > { %v2699_v47 = vmul.f32 -1.442695, %v1865_v5 }
 0x3c3   : > { %3131 = vpow2.f32 %v2699_v47 }
 0x3c5   : > { %v1722_v21 = vpop.permute.xlu2 %1721 }
 0x3c6   : > { %v1803_v24 = vsel %vm1623_vm2, %v1722_v21, %v1610_v4 }
 0x3c7   : > { %v1836_v9 = vsel %vm1816_vm1, %v4493_v48, %v1803_v24  ;;  %v1807_v48 = vsel %vm1623_vm2, %v1742_v51, %v1614_v34  ;;  %v1613_v51 = vsel %vm1590_vm0, %v4118_v43, 0.0 }
 0x3c8   : > { %v1869_v29 = vadd.f32 %v4165_v58, %v1836_v9 }
 0x3c9   : > { %v3132_v18 = vpop.eup %3131 }
 0x3ca   : > { %v1993_v17 = vadd.f32 1.0, %v3132_v18  ;;  %v2703_v59 = vmul.f32 -1.442695, %v1869_v29 }
 0x3cc   : > { %3133 = vrcp.f32 %v1993_v17  ;;  %1566 = vadd.xlane.f32.xlu2 %v1513_v52  ;;  %v2246_v7 = vand.u32 2147483648, %v1993_v17  ;;  %v2244_v3 = vand.u32 2147483647, %v1993_v17  ;;  %vm2240_vm9 = vweird.f32 %v1993_v17 }
 0x3cd   : > { %3135 = vpow2.f32 %v2703_v59 }
 0x3ce   : > { %v2247_v53 = vor.u32 1.1754944e-38, %v2246_v7  ;;  %vm2245_vm11 = vcmp.eq.f32.partialorder %v2244_v3, 8.507059e+37 }
 0x3d2   : > { %v3134_v38 = vpop.eup %3133 }
 0x3d3   : > { %v3136_v40 = vpop.eup %3135  ;;  %v2236_v27 = vmul.f32 %v3134_v38, %v1993_v17  ;;  %vm2241_vm8 = vweird.f32 %v3134_v38 }
 0x3d4   : > { %v1997_v55 = vadd.f32 1.0, %v3136_v40  ;;  %v1571_v1 = vpop.xlane.xlu1 %1570  ;;  %vm2242_vm10 = vmor %vm2240_vm9, %vm2241_vm8 }
 0x3d5   : > { %v2237_v22 = vsub.f32 1.0, %v2236_v27  ;;  %v1840_v33 = vsel %vm1816_vm1, %v1571_v1, %v1807_v48 }
 0x3d6   : > { %3137 = vrcp.f32 %v1997_v55  ;;  %v1873_v2 = vadd.f32 %v4165_v58, %v1840_v33  ;;  %v2306_v15 = vand.u32 2147483648, %v1997_v55  ;;  %v2304_v32 = vand.u32 2147483647, %v1997_v55 }
 0x3d7   : > { %v2238_v54 = vmul.f32 %v3134_v38, %v2237_v22  ;;  %vm2300_vm13 = vweird.f32 %v1997_v55 }
 0x3d8   : > { %v2707_v25 = vmul.f32 -1.442695, %v1873_v2  ;;  %v2307_v63 = vor.u32 1.1754944e-38, %v2306_v15  ;;  %vm2305_vm15 = vcmp.eq.f32.partialorder %v2304_v32, 8.507059e+37 }
 0x3d9   : > { %v2239_v50 = vadd.f32 %v3134_v38, %v2238_v54 }
 0x3da   : > { %3139 = vpow2.f32 %v2707_v25 }
 0x3db   : > { %v2243_v44 = vsel %vm2242_vm10, %v3134_v38, %v2239_v50 }
 0x3dc   : > { %v3138_v6 = vpop.eup %3137  ;;  %v2248_v0 = vsel %vm2245_vm11, %v2247_v53, %v2243_v44 }
 0x3dd   : > { %2505 = vst [vmem:[%s4220_s5 + $0x78] sm:$0xff] %v2248_v0  ;;  %v2296_v61 = vmul.f32 %v3138_v6, %v1997_v55  ;;  %vm2301_vm12 = vweird.f32 %v3138_v6 }
 0x3de   : > { %vm2302_vm14 = vmor %vm2300_vm13, %vm2301_vm12 }
 0x3df   : > { %v2297_v10 = vsub.f32 1.0, %v2296_v61 }
 0x3e0   : > { %v3140_v36 = vpop.eup %3139 }
 0x3e1   : > { %v2298_v42 = vmul.f32 %v3138_v6, %v2297_v10  ;;  %v2001_v20 = vadd.f32 1.0, %v3140_v36 }
 0x3e3   : > { %v2299_v14 = vadd.f32 %v3138_v6, %v2298_v42  ;;  %3141 = vrcp.f32 %v2001_v20  ;;  %v2366_v8 = vand.u32 2147483648, %v2001_v20  ;;  %v2364_v23 = vand.u32 2147483647, %v2001_v20 }
 0x3e4   : > { %1781 = vperm.xlu2 %2777, %v4311_v57   ;;  %vm2360_vm4 = vweird.f32 %v2001_v20 }
 0x3e5   : > { %v2303_v12 = vsel %vm2302_vm14, %v3138_v6, %v2299_v14  ;;  %v2367_v30 = vor.u32 1.1754944e-38, %v2366_v8  ;;  %vm2365_vm6 = vcmp.eq.f32.partialorder %v2364_v23, 8.507059e+37 }
 0x3e6   : > { %v2308_v26 = vsel %vm2305_vm15, %v2307_v63, %v2303_v12 }
 0x3e7   : > { %2509 = vst [vmem:[%s4220_s5 + $0x98] sm:$0xff] %v2308_v26 }
 0x3e9   : > { %v3142_v31 = vpop.eup %3141 }
 0x3ea   : > { %v2356_v56 = vmul.f32 %v3142_v31, %v2001_v20  ;;  %vm2361_vm3 = vweird.f32 %v3142_v31 }
 0x3eb   : > { %vm2362_vm5 = vmor %vm2360_vm4, %vm2361_vm3 }
 0x3ec   : > { %v1772_v39 = vpop.permute.xlu1 %1771  ;;  %v2357_v13 = vsub.f32 1.0, %v2356_v56 }
 0x3ed   : > { %v1813_v19 = vsel %vm1623_vm2, %v1772_v39, %v1620_v49 }
 0x3ee   : > { %v1846_v57 = vsel %vm1816_vm1, %v4476_v11, %v1813_v19  ;;  %v2358_v16 = vmul.f32 %v3142_v31, %v2357_v13 }
 0x3ef   : > { %v1879_v41 = vadd.f32 %v4165_v58, %v1846_v57  ;;  %v1622_v57 = vsel %vm1590_vm0, %v4148_v35, 0.0 }
 0x3f0   : > { %v2359_v5 = vadd.f32 %v3142_v31, %v2358_v16 }
 0x3f1   : > { %v2713_v47 = vmul.f32 -1.442695, %v1879_v41 }
 0x3f2   : > { %v2363_v4 = vsel %vm2362_vm5, %v3142_v31, %v2359_v5 }
 0x3f3   : > { %3143 = vpow2.f32 %v2713_v47  ;;  %v2368_v21 = vsel %vm2365_vm6, %v2367_v30, %v2363_v4 }
 0x3f4   : > { %2513 = vst [vmem:[%s4220_s5 + $0xb8] sm:$0xff] %v2368_v21 }
 0x3f9   : > { %v3144_v24 = vpop.eup %3143 }
 0x3fa   : > { %v2007_v37 = vadd.f32 1.0, %v3144_v24 }
 0x3fc   : > { %3145 = vrcp.f32 %v2007_v37  ;;  %v2456_v38 = vand.u32 2147483648, %v2007_v37  ;;  %v2454_v27 = vand.u32 2147483647, %v2007_v37  ;;  %vm2450_vm8 = vweird.f32 %v2007_v37 }
 0x3fe   : > { %v1561_v9 = vpop.xlane.xlu2 %1560  ;;  %v2457_v43 = vor.u32 1.1754944e-38, %v2456_v38  ;;  %vm2455_vm10 = vcmp.eq.f32.partialorder %v2454_v27, 8.507059e+37 }
 0x3ff   : > { %v1835_v11 = vsel %vm1816_vm1, %v1561_v9, %v4461_v45 }
 0x400   : > { %v1868_v29 = vadd.f32 %v4165_v58, %v1835_v11 }
 0x402   : > { %v3146_v18 = vpop.eup %3145  ;;  %v2702_v17 = vmul.f32 -1.442695, %v1868_v29 }
 0x403   : > { %v2446_v59 = vmul.f32 %v3146_v18, %v2007_v37  ;;  %vm2451_vm7 = vweird.f32 %v3146_v18 }
 0x404   : > { %3147 = vpow2.f32 %v2702_v17  ;;  %vm2452_vm9 = vmor %vm2450_vm8, %vm2451_vm7 }
 0x405   : > { %v2447_v52 = vsub.f32 1.0, %v2446_v59 }
 0x406   : > { %v1737_v40 = vpop.permute.xlu2 %1736 }
 0x407   : > { %v2448_v34 = vmul.f32 %v3146_v18, %v2447_v52  ;;  %v1806_v45 = vsel %vm1623_vm2, %v1737_v40, %v1613_v51 }
 0x408   : > { %v1839_v48 = vsel %vm1816_vm1, %v4533_v60, %v1806_v45 }
 0x409   : > { %v2449_v55 = vadd.f32 %v3146_v18, %v2448_v34  ;;  %v1872_v1 = vadd.f32 %v4165_v58, %v1839_v48 }
 0x40a   : > { %v3148_v22 = vpop.eup %3147 }
 0x40b   : > { %v2453_v33 = vsel %vm2452_vm9, %v3146_v18, %v2449_v55  ;;  %v1996_v7 = vadd.f32 1.0, %v3148_v22  ;;  %v2706_v54 = vmul.f32 -1.442695, %v1872_v1 }
 0x40c   : > { %v2458_v3 = vsel %vm2455_vm10, %v2457_v43, %v2453_v33 }
 0x40d   : > { %2519 = vst [vmem:[%s4220_s5 + $0xe8] sm:$0xff] %v2458_v3  ;;  %3149 = vrcp.f32 %v1996_v7  ;;  %v2291_v44 = vand.u32 2147483648, %v1996_v7  ;;  %v2289_v0 = vand.u32 2147483647, %v1996_v7  ;;  %vm2285_vm12 = vweird.f32 %v1996_v7 }
 0x40e   : > { %3151 = vpow2.f32 %v2706_v54 }
 0x40f   : > { %v2292_v10 = vor.u32 1.1754944e-38, %v2291_v44  ;;  %vm2290_vm14 = vcmp.eq.f32.partialorder %v2289_v0, 8.507059e+37 }
 0x413   : > { %v3150_v2 = vpop.eup %3149 }
 0x414   : > { %v3152_v50 = vpop.eup %3151  ;;  %v2281_v25 = vmul.f32 %v3150_v2, %v1996_v7  ;;  %vm2286_vm11 = vweird.f32 %v3150_v2 }
 0x415   : > { %v2000_v60 = vadd.f32 1.0, %v3152_v50  ;;  %vm2287_vm13 = vmor %vm2285_vm12, %vm2286_vm11 }
 0x416   : > { %v2282_v53 = vsub.f32 1.0, %v2281_v25 }
 0x417   : > { %3153 = vrcp.f32 %v2000_v60  ;;  %v2351_v14 = vand.u32 2147483648, %v2000_v60  ;;  %v2349_v12 = vand.u32 2147483647, %v2000_v60  ;;  %vm2345_vm3 = vweird.f32 %v2000_v60 }
 0x418   : > { %v2283_v6 = vmul.f32 %v3150_v2, %v2282_v53 }
 0x419   : > { %v2352_v31 = vor.u32 1.1754944e-38, %v2351_v14  ;;  %vm2350_vm5 = vcmp.eq.f32.partialorder %v2349_v12, 8.507059e+37 }
 0x41a   : > { %v2284_v61 = vadd.f32 %v3150_v2, %v2283_v6 }
 0x41c   : > { %v2288_v15 = vsel %vm2287_vm13, %v3150_v2, %v2284_v61 }
 0x41d   : > { %v3154_v36 = vpop.eup %3153  ;;  %v2293_v42 = vsel %vm2290_vm14, %v2292_v10, %v2288_v15 }
 0x41e   : > { %2508 = vst [vmem:[%s4220_s5 + $0x90] sm:$0xff] %v2293_v42  ;;  %v2341_v32 = vmul.f32 %v3154_v36, %v2000_v60  ;;  %vm2346_vm15 = vweird.f32 %v3154_v36 }
 0x41f   : > { %vm2347_vm4 = vmor %vm2345_vm3, %vm2346_vm15 }
 0x420   : > { %v2342_v20 = vsub.f32 1.0, %v2341_v32 }
 0x422   : > { %v2343_v63 = vmul.f32 %v3154_v36, %v2342_v20 }
 0x424   : > { %v2344_v26 = vadd.f32 %v3154_v36, %v2343_v63 }
 0x426   : > { %v2348_v56 = vsel %vm2347_vm4, %v3154_v36, %v2344_v26 }
 0x427   : > { %v2353_v49 = vsel %vm2350_vm5, %v2352_v31, %v2348_v56 }
 0x428   : > { %2512 = vst [vmem:[%s4220_s5 + $0xb0] sm:$0xff] %v2353_v49 }
 0x43f   : > { %v1567_v39 = vpop.xlane.xlu2 %1566 }
 0x440   : > { %v1838_v13 = vsel %vm1816_vm1, %v1567_v39, %v4501_v62 }
 0x441   : > { %v1871_v19 = vadd.f32 %v4165_v58, %v1838_v13 }
 0x443   : > { %v2705_v8 = vmul.f32 -1.442695, %v1871_v19 }
 0x445   : > { %3155 = vpow2.f32 %v2705_v8 }
 0x447   : > { %v1782_v16 = vpop.permute.xlu2 %1781 }
 0x448   : > { %v1815_v23 = vsel %vm1623_vm2, %v1782_v16, %v1622_v57 }
 0x449   : > { %v1848_v41 = vsel %vm1816_vm1, %v4444_v46, %v1815_v23 }
 0x44a   : > { %v1881_v5 = vadd.f32 %v4165_v58, %v1848_v41 }
 0x44b   : > { %v3156_v47 = vpop.eup %3155 }
 0x44c   : > { %v1999_v62 = vadd.f32 1.0, %v3156_v47  ;;  %v2715_v30 = vmul.f32 -1.442695, %v1881_v5 }
 0x44e   : > { %3157 = vrcp.f32 %v1999_v62  ;;  %v2336_v9 = vand.u32 2147483648, %v1999_v62  ;;  %v2334_v29 = vand.u32 2147483647, %v1999_v62  ;;  %vm2330_vm1 = vweird.f32 %v1999_v62 }
 0x44f   : > { %3159 = vpow2.f32 %v2715_v30 }
 0x450   : > { %v2337_v58 = vor.u32 1.1754944e-38, %v2336_v9  ;;  %vm2335_vm6 = vcmp.eq.f32.partialorder %v2334_v29, 8.507059e+37 }
 0x454   : > { %v3158_v4 = vpop.eup %3157 }
 0x455   : > { %v3160_v21 = vpop.eup %3159  ;;  %v2326_v24 = vmul.f32 %v3158_v4, %v1999_v62  ;;  %vm2331_vm0 = vweird.f32 %v3158_v4 }
 0x456   : > { %v2009_v35 = vadd.f32 1.0, %v3160_v21  ;;  %vm2332_vm2 = vmor %vm2330_vm1, %vm2331_vm0 }
 0x457   : > { %v2327_v37 = vsub.f32 1.0, %v2326_v24 }
 0x458   : > { %3161 = vrcp.f32 %v2009_v35  ;;  %v2486_v51 = vand.u32 2147483648, %v2009_v35  ;;  %v2484_v40 = vand.u32 2147483647, %v2009_v35  ;;  %vm2480_vm8 = vweird.f32 %v2009_v35 }
 0x459   : > { %v2328_v11 = vmul.f32 %v3158_v4, %v2327_v37 }
 0x45a   : > { %v2487_v27 = vor.u32 1.1754944e-38, %v2486_v51  ;;  %vm2485_vm10 = vcmp.eq.f32.partialorder %v2484_v40, 8.507059e+37 }
 0x45b   : > { %v2329_v28 = vadd.f32 %v3158_v4, %v2328_v11 }
 0x45d   : > { %v2333_v46 = vsel %vm2332_vm2, %v3158_v4, %v2329_v28 }
 0x45e   : > { %v3162_v18 = vpop.eup %3161  ;;  %v2338_v17 = vsel %vm2335_vm6, %v2337_v58, %v2333_v46 }
 0x45f   : > { %2511 = vst [vmem:[%s4220_s5 + $0xa8] sm:$0xff] %v2338_v17  ;;  %v2476_v59 = vmul.f32 %v3162_v18, %v2009_v35  ;;  %vm2481_vm7 = vweird.f32 %v3162_v18 }
 0x460   : > { %vm2482_vm9 = vmor %vm2480_vm8, %vm2481_vm7 }
 0x461   : > { %v2477_v52 = vsub.f32 1.0, %v2476_v59 }
 0x463   : > { %v2478_v38 = vmul.f32 %v3162_v18, %v2477_v52 }
 0x465   : > { %v2479_v34 = vadd.f32 %v3162_v18, %v2478_v38 }
 0x467   : > { %v2483_v45 = vsel %vm2482_vm9, %v3162_v18, %v2479_v34 }
 0x468   : > { %v2488_v48 = vsel %vm2485_vm10, %v2487_v27, %v2483_v45 }
 0x469   : > { %2521 = vst [vmem:[%s4220_s5 + $0xf8] sm:$0xff] %v2488_v48 }
 0x46a PF: > { %s14_s15 = sadd.s32 1, %s3170_s15  }
 0x46b   : > { %p11_p4 = scmp.ge.s32.totalorder %s14_s15, 4  }
 0x46d   :  { %13 = sbr.rel (!%p11_p4) target bundleno = 1 (0x1), region = 66 }

</bundles_post_ra>
